<compile_context>
chip_gen: v7x
topology: tpu7x:2x2x1
jax: 0.10.0
libtpu: 0.0.40
codegen_flags: <defaults>
</compile_context>

<pallas_src>
import jax
import jax.numpy as jnp
from jax.experimental import pallas as pl
from jax.experimental.pallas import tpu as pltpu


def _r3f_kernel(emb_ref, pert_ref, w_ref, b_ref, out_ref):
    """One grid step: TM token rows -> per-row KL partial sums (TM, 1)."""
    tm = emb_ref.shape[0]

    # Fused lm-head matmul: stack original + perturbed rows so the weights
    # go through the MXU once per tile (bf16 inputs, f32 accumulate).
    x = jnp.concatenate([emb_ref[...], pert_ref[...]], axis=0)          # (2TM, H)
    logits = jnp.dot(x, w_ref[...], preferred_element_type=jnp.float32)
    logits = logits + b_ref[...]                                        # (2TM, V) f32
    lo = logits[:tm]                                                    # original
    lp = logits[tm:]                                                    # perturbed

    # Numerically stable softmax / log_softmax along vocab (lane) axis.
    # Keep the elementwise (log_p - log_q) structure identical to the
    # reference so rounding/cancellation behaviour matches bit-for-bit-ish.
    zo = lo - jnp.max(lo, axis=-1, keepdims=True)
    eo = jnp.exp(zo)
    so = jnp.sum(eo, axis=-1, keepdims=True)
    log_p = zo - jnp.log(so)

    zp = lp - jnp.max(lp, axis=-1, keepdims=True)
    log_q = zp - jnp.log(jnp.sum(jnp.exp(zp), axis=-1, keepdims=True))

    # F.kl_div(input=log_q, target=p) elementwise: p * (log p - log q),
    # reduced over vocab.  The 1/so softmax normalisation is applied after
    # the lane reduce (per-row, (TM, 1)) rather than on the full (TM, V)
    # numerator.  Cross-row reduce + /B is done in the wrapper.
    unnorm = jnp.sum(eo * (log_p - log_q), axis=-1, keepdims=True)      # (TM, 1)
    out_ref[...] = unnorm * pl.reciprocal(so, approx=False)             # (TM, 1)


def _pick_tm(m):
    """Row tile: <=256, multiple of 16 (bf16 sublane packing).

    Prefer a tile that divides M exactly (no padded rows, no extra HBM copy
    of the embedding / perturbed-embedding streams); otherwise fall back to
    the largest tile and zero-pad.
    """
    cap = min(256, max(16, ((m + 15) // 16) * 16))
    for tm in range(cap, 15, -16):
        if m % tm == 0:
            return tm
    return cap


def r3f_loss_pallas(input_ids, attention_mask, embed_table, w_out, b_out,
                    epsilon=0.001, noise_key=None):
    """R3F KL loss.  input_ids: (B, S) int32.  Returns scalar f32."""
    # The synthetic model (embedding + lm head, no attention) does not consume
    # the mask; the reference r3f_loss also sums the KL over all positions.
    del attention_mask
    B, S = input_ids.shape
    V, H = embed_table.shape
    assert w_out.shape == (H, V) and b_out.shape == (V,)

    # --- glue: embedding lookup + gaussian perturbation (torch.randn_like) ---
    emb_f32 = jnp.take(embed_table.astype(jnp.float32),
                       input_ids.reshape(-1), axis=0)                   # (M, H)
    if noise_key is None:
        noise_key = jax.random.PRNGKey(42)
    noise = jax.random.normal(noise_key, emb_f32.shape, dtype=jnp.float32)
    pert_f32 = emb_f32 + epsilon * noise                                # (M, H)

    # bf16 activations/weights for the MXU (model runs in bf16, f32 accum);
    # softmax / KL math stays in f32 inside the kernel.
    emb = emb_f32.astype(jnp.bfloat16)
    pert = pert_f32.astype(jnp.bfloat16)
    w_bf16 = w_out.astype(jnp.bfloat16)
    b_row = b_out.reshape(1, V).astype(jnp.float32)

    M = B * S
    TM = _pick_tm(M)
    G = pl.cdiv(M, TM)
    Mpad = G * TM
    pad = Mpad - M
    if pad:
        # Zero rows => identical original/perturbed logits => zero KL terms.
        emb = jnp.pad(emb, ((0, pad), (0, 0)))
        pert = jnp.pad(pert, ((0, pad), (0, 0)))

    row_kl = pl.pallas_call(
        _r3f_kernel,
        out_shape=jax.ShapeDtypeStruct((Mpad, 1), jnp.float32),
        grid_spec=pltpu.PrefetchScalarGridSpec(
            num_scalar_prefetch=0,
            grid=(G,),
            in_specs=[
                pl.BlockSpec((TM, H), lambda i: (i, 0)),   # original embeds (bf16)
                pl.BlockSpec((TM, H), lambda i: (i, 0)),   # perturbed embeds (bf16)
                pl.BlockSpec((H, V), lambda i: (0, 0)),    # lm-head weight (bf16)
                pl.BlockSpec((1, V), lambda i: (0, 0)),    # lm-head bias (f32)
            ],
            out_specs=pl.BlockSpec((TM, 1), lambda i: (i, 0)),  # per-row KL
        ),
        compiler_params=pltpu.CompilerParams(
            dimension_semantics=("parallel",),
            vmem_limit_bytes=32 * 1024 * 1024,
        ),
    )(emb, pert, w_bf16, b_row)

    # reduction='batchmean' divides the total sum by input.size(0) == B
    return jnp.sum(row_kl) / B


def _reference(input_ids, embed_table, w_out, b_out, epsilon, noise_key):
    """Pure-JAX reference of the same (bf16-model) forward."""
    B = input_ids.shape[0]
    e = jnp.take(embed_table.astype(jnp.float32), input_ids.reshape(-1), axis=0)
    noise = jax.random.normal(noise_key, e.shape, dtype=jnp.float32)
    ep = e + epsilon * noise
    e16 = e.astype(jnp.bfloat16)
    ep16 = ep.astype(jnp.bfloat16)
    w16 = w_out.astype(jnp.bfloat16)
    b = b_out.astype(jnp.float32)
    lo = jnp.dot(e16, w16, preferred_element_type=jnp.float32) + b
    lp = jnp.dot(ep16, w16, preferred_element_type=jnp.float32) + b
    log_p = jax.nn.log_softmax(lo, axis=-1)
    log_q = jax.nn.log_softmax(lp, axis=-1)
    p = jnp.exp(log_p)
    return jnp.sum(p * (log_p - log_q)) / B


if __name__ == "__main__":
    # Small LM-ish shapes: batch=2, seq=320, hidden=128, vocab=512.
    # (M = 640 tokens -> divisor-picked TM=160, 4 grid steps, no padding.)
    B, S, H, V = 2, 320, 128, 512
    EPS = 0.001

    root = jax.random.PRNGKey(0)
    k_emb, k_w, k_b, k_ids, k_noise = jax.random.split(root, 5)

    embed_table = jax.random.normal(k_emb, (V, H), dtype=jnp.float32) * 0.02
    w_out = jax.random.normal(k_w, (H, V), dtype=jnp.float32) * 0.05
    b_out = jax.random.normal(k_b, (V,), dtype=jnp.float32) * 0.01
    input_ids = jax.random.randint(k_ids, (B, S), 0, V, dtype=jnp.int32)
    attention_mask = jnp.ones((B, S), dtype=jnp.int32)

    loss = r3f_loss_pallas(input_ids, attention_mask, embed_table, w_out,
                           b_out, epsilon=EPS, noise_key=k_noise)
    loss = jax.block_until_ready(loss)

    ref = _reference(input_ids, embed_table, w_out, b_out, EPS, k_noise)
    assert jnp.isfinite(loss), "non-finite loss"
    assert jnp.allclose(loss, ref, rtol=1e-3, atol=1e-9), (float(loss), float(ref))

    print("KERNEL_OK")
</pallas_src>

<mosaic_0001>
module attributes {stable_mosaic.version = 11 : i64} {
  func.func @_r3f_kernel(%arg0: i32, %arg1: memref<160x128xbf16, #tpu.memory_space<vmem>>, %arg2: memref<160x128xbf16, #tpu.memory_space<vmem>>, %arg3: memref<128x512xbf16, #tpu.memory_space<vmem>>, %arg4: memref<1x512xf32, #tpu.memory_space<vmem>>, %arg5: memref<160x1xf32, #tpu.memory_space<vmem>>) attributes {dimension_semantics = [#tpu.dimension_semantics<parallel>], iteration_bounds = array<i64: 4>, scalar_prefetch = 0 : i64, scratch_operands = 0 : i64, tpu.core_type = #tpu.core_type<tc>, window_params = [{transform_indices = @transform_0, window_bounds = array<i64: 160, 128>}, {transform_indices = @transform_1, window_bounds = array<i64: 160, 128>}, {pipeline_mode = #tpu.pipeline_mode<synchronous>, transform_indices = @transform_2, window_bounds = array<i64: 128, 512>}, {pipeline_mode = #tpu.pipeline_mode<synchronous>, transform_indices = @transform_3, window_bounds = array<i64: 1, 512>}, {transform_indices = @transform_4, window_bounds = array<i64: 160, 1>}]} {
    %c0 = arith.constant 0 : index
    %c0_0 = arith.constant 0 : index
    %0 = vector.load %arg1[%c0, %c0_0] : memref<160x128xbf16, #tpu.memory_space<vmem>>, vector<160x128xbf16>
    %c0_1 = arith.constant 0 : index
    %c0_2 = arith.constant 0 : index
    %1 = vector.load %arg2[%c0_1, %c0_2] : memref<160x128xbf16, #tpu.memory_space<vmem>>, vector<160x128xbf16>
    %2 = tpu.concatenate %0, %1 in 0 : vector<160x128xbf16>, vector<160x128xbf16> -> vector<320x128xbf16>
    %c0_3 = arith.constant 0 : index
    %c0_4 = arith.constant 0 : index
    %3 = vector.load %arg3[%c0_3, %c0_4] : memref<128x512xbf16, #tpu.memory_space<vmem>>, vector<128x512xbf16>
    %cst = arith.constant dense<0.000000e+00> : vector<320x512xf32>
    %4 = tpu.matmul %2, %3, %cst {dimension_numbers = #tpu.dot_dimension_numbers<[1], [0], [0], [1], [0, 0, 1, 1], [], []>} : vector<320x128xbf16>, vector<128x512xbf16>, vector<320x512xf32> -> vector<320x512xf32>
    %c0_5 = arith.constant 0 : index
    %c0_6 = arith.constant 0 : index
    %5 = vector.load %arg4[%c0_5, %c0_6] : memref<1x512xf32, #tpu.memory_space<vmem>>, vector<1x512xf32>
    %6 = vector.broadcast %5 : vector<1x512xf32> to vector<320x512xf32>
    %7 = arith.addf %4, %6 : vector<320x512xf32>
    %8 = vector.extract_strided_slice %7 {offsets = [0, 0], sizes = [160, 512], strides = [1, 1]} : vector<320x512xf32> to vector<160x512xf32>
    %9 = vector.extract_strided_slice %7 {offsets = [160, 0], sizes = [160, 512], strides = [1, 1]} : vector<320x512xf32> to vector<160x512xf32>
    %cst_7 = arith.constant dense<0xFF800000> : vector<160xf32>
    %10 = vector.multi_reduction <maximumf>, %8, %cst_7 [1] : vector<160x512xf32> to vector<160xf32>
    %11 = vector.shape_cast %10 : vector<160xf32> to vector<160x1xf32>
    %12 = vector.broadcast %11 : vector<160x1xf32> to vector<160x512xf32>
    %13 = arith.subf %8, %12 : vector<160x512xf32>
    %14 = math.exp %13 : vector<160x512xf32>
    %cst_8 = arith.constant dense<0.000000e+00> : vector<160xf32>
    %15 = vector.multi_reduction <add>, %14, %cst_8 [1] : vector<160x512xf32> to vector<160xf32>
    %16 = vector.shape_cast %15 : vector<160xf32> to vector<160x1xf32>
    %17 = math.log %16 : vector<160x1xf32>
    %18 = vector.broadcast %17 : vector<160x1xf32> to vector<160x512xf32>
    %19 = arith.subf %13, %18 : vector<160x512xf32>
    %cst_9 = arith.constant dense<0xFF800000> : vector<160xf32>
    %20 = vector.multi_reduction <maximumf>, %9, %cst_9 [1] : vector<160x512xf32> to vector<160xf32>
    %21 = vector.shape_cast %20 : vector<160xf32> to vector<160x1xf32>
    %22 = vector.broadcast %21 : vector<160x1xf32> to vector<160x512xf32>
    %23 = arith.subf %9, %22 : vector<160x512xf32>
    %24 = math.exp %23 : vector<160x512xf32>
    %cst_10 = arith.constant dense<0.000000e+00> : vector<160xf32>
    %25 = vector.multi_reduction <add>, %24, %cst_10 [1] : vector<160x512xf32> to vector<160xf32>
    %26 = vector.shape_cast %25 : vector<160xf32> to vector<160x1xf32>
    %27 = math.log %26 : vector<160x1xf32>
    %28 = vector.broadcast %27 : vector<160x1xf32> to vector<160x512xf32>
    %29 = arith.subf %23, %28 : vector<160x512xf32>
    %30 = arith.subf %19, %29 : vector<160x512xf32>
    %31 = arith.mulf %14, %30 : vector<160x512xf32>
    %cst_11 = arith.constant dense<0.000000e+00> : vector<160xf32>
    %32 = vector.multi_reduction <add>, %31, %cst_11 [1] : vector<160x512xf32> to vector<160xf32>
    %33 = vector.shape_cast %32 : vector<160xf32> to vector<160x1xf32>
    %34 = tpu.reciprocal %16 : vector<160x1xf32> -> vector<160x1xf32>
    %35 = arith.mulf %33, %34 : vector<160x1xf32>
    %c0_12 = arith.constant 0 : index
    %c0_13 = arith.constant 0 : index
    %36 = vector.load %arg5[%c0_12, %c0_13] : memref<160x1xf32, #tpu.memory_space<vmem>>, vector<160x1xf32>
    tpu.vector_store %arg5[%c0_12, %c0_13], %35 {strides = array<i32>} : memref<160x1xf32, #tpu.memory_space<vmem>>, vector<160x1xf32>,
    return
  }
  func.func @transform_0(%arg0: i32) -> (i32, i32) {
    %c0_i32 = arith.constant 0 : i32
    %c0_i32_0 = arith.constant 0 : i32
    return %arg0, %c0_i32 : i32, i32
  }
  func.func @transform_1(%arg0: i32) -> (i32, i32) {
    %c0_i32 = arith.constant 0 : i32
    %c0_i32_0 = arith.constant 0 : i32
    return %arg0, %c0_i32 : i32, i32
  }
  func.func @transform_2(%arg0: i32) -> (i32, i32) {
    %c0_i32 = arith.constant 0 : i32
    %c0_i32_0 = arith.constant 0 : i32
    %c0_i32_1 = arith.constant 0 : i32
    return %c0_i32, %c0_i32_0 : i32, i32
  }
  func.func @transform_3(%arg0: i32) -> (i32, i32) {
    %c0_i32 = arith.constant 0 : i32
    %c0_i32_0 = arith.constant 0 : i32
    %c0_i32_1 = arith.constant 0 : i32
    return %c0_i32, %c0_i32_0 : i32, i32
  }
  func.func @transform_4(%arg0: i32) -> (i32, i32) {
    %c0_i32 = arith.constant 0 : i32
    %c0_i32_0 = arith.constant 0 : i32
    return %arg0, %c0_i32 : i32, i32
  }
}

</mosaic_0001>

<bundles_post_ra>
// kernel: tpu_custom_call.1
= control target key start
LH: loop header
LB: loop body
LE: loop exit
PB: predicated region body
PF: predicated region fallthrough
CT: control target
= control target key end

     0   :  { %9 = vsyncpa [#allocation3], 0  ;;  %s5983_s0 = inlined_call_operand.hbm [shape: bf16[640,128], index: 0, kind: input, shape index: {}]   ;;  %s5984_s1 = inlined_call_operand.hbm [shape: bf16[640,128], index: 1, kind: input, shape index: {}]   ;;  %s5985_s2 = inlined_call_operand.hbm [shape: bf16[128,512], index: 2, kind: input, shape index: {}]   ;;  %s5986_s3 = inlined_call_operand.vmem [shape: f32[1,512], index: 3, kind: input, shape index: {}]   ;;  %s5987_s4 = inlined_call_operand.vmem [shape: f32[640,1], index: 4, kind: output, shape index: {}]  }
   0x1   :  { %11 = vsyncpa [#allocation3 + $0x1], 0 }
   0x2   :  { %12 = vsyncpa [#allocation5], 0 }
   0x3   :  { %14 = vsyncpa [#allocation5 + $0x1], 0  ;;  %s3458_s15 = smov 0   ;;  %s3460_s16 = smov 0  }
   0x4   :  { %s3462_s17 = smov 0   ;;  %s3464_s18 = smov 0  }
   0x5 LB: > { %s3477_s19 = sadd.s32 4294967295, %s3423_s18   ;;  %p40_p0 = scmp.ne.s32.totalorder %s3415_s16, %s3411_s15  ;;  %s3423_s18 = sphi %s3464_s18, %s7255_s18   ;;  %s3419_s17 = sphi %s3462_s17, %s7254_s17   ;;  %s3415_s16 = sphi %s3460_s16, %s7253_s16   ;;  %s3411_s15 = sphi %s3458_s15, %s7252_s15  }
   0x6   : > { %p5988_p1 = scmp.eq.s32.totalorder %s3477_s19, 0  ;;  %p2658_p2 = scmp.ge.s32.totalorder %s3423_s18, 1 }
   0x7   : > { %p145_p3 = scmp.lt.s32.totalorder %s3423_s18, 5  ;;  %s3425_s22 = smov [#allocation6]  }
   0x8   : > { %p3485_p4 = por %p5988_p1, %p40_p0  ;;  %s157_s23 = sshll.u32 %s3425_s22, 4  ;;  %s158_s23 = int_to_ptr.vmem [resolvable:$true] %s157_s23 }
   0x9   : > { %p3489_p5 = pnand %p2658_p2, %p145_p3  ;;  %s3502_s25 = sadd.s32 1, %s3423_s18  }
   0xa   : > { %s6412_s20 = scalar_select %p3485_p4, 1, 0 }
   0xb   : > { %s6413_s21 = scalar_select %p3489_p5, 1, 0 }
   0xc   : > { %p2733_p6 = pneg %p3489_p5  ;;  %s27_s26 = sadd.s32 1, %s3419_s17 }
   0xd   : > { %s24_s27 = ssub.s32 %s3423_s18, %s3502_s25  ;;  %s3293_s30 = scalar_lea.hbm %s5985_s2, 4096 }
   0xe   : > { %p3497_p7 = pnand %p2733_p6, %p5988_p1  ;;  %p3294_p8 = scmp.ne.s32.totalorder %s5985_s2, %s3293_s30 }
   0xf   : > { %p3300_p12 = scmp.lt.u32.totalorder %s3293_s30, %s5985_s2 }
  0x10   : > { %p3295_p9 = pneg %p3497_p7 }
  0x12   : > { %p3296_p10 = pnand %p3295_p9, %p3294_p8 }
  0x14   : > { %p3297_p11 = pneg %p3296_p10 }
  0x16   : > { %p3302_p13 = pnand %p3300_p12, %p3297_p11 }
  0x18   : > { %3305 = shalt.err (!%p3302_p13)
}
  0x19   : > { %s3306_s9 = scalar_lea.vmem %s158_s23, 4096  ;;  %p3314_p6 = scmp.lt.s32.totalorder %s158_s23, %s158_s23 }
  0x1a   : > { %p3307_p0 = scmp.ne.s32.totalorder %s158_s23, %s3306_s9  ;;  %p3315_p1 = scmp.lt.s32.totalorder %s3306_s9, %s3306_s9 }
  0x1c   : > { %p3309_p2 = pnand %p3307_p0, %p3295_p9  ;;  %p3316_p4 = por %p3315_p1, %p3314_p6 }
  0x1e   : > { %p3310_p3 = pneg %p3309_p2 }
  0x20   : > { %p3317_p5 = pnand %p3316_p4, %p3310_p3 }
  0x22   : > { %3320 = shalt.err (!%p3317_p5)
}
  0x23   : > { %s3426_s10 = smov 256   ;;  %s3427_s11 = smov 16  }
  0x24   : > { %2736 = dma.hbm_to_vmem [thread:$0]  (!%p3497_p7), %s5985_s2, 4096, %s158_s23, [#allocation5], %s3426_s10, %s3426_s10, %s3427_s11  }
  0x25   : > { %p25_p1 = scmp.eq.s32.totalorder %s24_s27, 0  ;;  %p34_p4 = scmp.ne.s32.totalorder %s3419_s17, %s3415_s16 }
  0x26   : > { %p35_p5 = scmp.eq.s32.totalorder %s3423_s18, 0  ;;  %p2745_p8 = scmp.lt.s32.totalorder %s3423_s18, 4 }
  0x27   : > { %s3528_s14 = scalar_select %p25_p1, %s3419_s17, %s27_s26  }
  0x28   : > { %p36_p9 = por %p35_p5, %p34_p4  ;;  %s174_s15 = sand.u32 1, %s3419_s17  }
  0x29   : > { %s3531_s22 = smul.u32 80, %s174_s15  ;;  %s195_s5 = sand.u32 1, %s3423_s18  }
  0x2a   : > { %s2720_s28 = smul.u32 1280, %s3423_s18  ;;  %p3534_p10 = pnand %p2745_p8, %p36_p9 }
  0x2b   : > { %s178_s26 = scalar_lea.vmem [#allocation2], %s3531_s22  ;;  %s3549_s6 = scalar_lea.sflag [#allocation3], %s174_s15 }
  0x2c   : > { %s3543_s23 = scalar_lea.hbm %s5983_s0, %s2720_s28  ;;  %s185_s27 = sshll.u32 %s178_s26, 4  ;;  %s3546_s27 = int_to_ptr.vmem [resolvable:$true] %s185_s27 }
  0x2d   : > { %s3321_s7 = scalar_lea.hbm %s3543_s23, 1280  ;;  %p3323_p11 = pneg %p3534_p10 }
  0x2e   : > { %p3322_p7 = scmp.ne.s32.totalorder %s3543_s23, %s3321_s7  ;;  %s3326_s10 = scalar_lea.hbm %s5983_s0, 5120 }
  0x2f   : > { %p3327_p0 = scmp.lt.u32.totalorder %s3543_s23, %s5983_s0  ;;  %p3328_p2 = scmp.lt.u32.totalorder %s3326_s10, %s3321_s7 }
  0x30   : > { %p3324_p12 = pnand %p3323_p11, %p3322_p7  ;;  %p3330_p6 = scmp.lt.u32.totalorder %s3321_s7, %s3543_s23 }
  0x31   : > { %p3329_p3 = por %p3328_p2, %p3327_p0 }
  0x32   : > { %p3325_p13 = pneg %p3324_p12 }
  0x33   : > { %p3331_p1 = por %p3330_p6, %p3329_p3 }
  0x35   : > { %p3332_p4 = pnand %p3331_p1, %p3325_p13 }
  0x37   : > { %3335 = shalt.err (!%p3332_p4)
}
  0x38   : > { %s3336_s13 = scalar_lea.vmem %s3546_s27, 1280  ;;  %s3428_s15 = smov [#allocation2]  }
  0x39   : > { %p3337_p5 = scmp.ne.s32.totalorder %s3546_s27, %s3336_s13  ;;  %s3341_s24 = sshll.u32 %s3428_s15, 4  ;;  %s3342_s24 = int_to_ptr.vmem [resolvable:$false] %s3341_s24 }
  0x3a   : > { %s3343_s30 = scalar_lea.vmem %s3342_s24, 2560  ;;  %p3344_p7 = scmp.lt.s32.totalorder %s3546_s27, %s3342_s24 }
  0x3b   : > { %p3339_p8 = pnand %p3337_p5, %p3323_p11  ;;  %p3345_p12 = scmp.lt.s32.totalorder %s3343_s30, %s3336_s13 }
  0x3d   : > { %p3340_p9 = pneg %p3339_p8  ;;  %p3346_p0 = por %p3345_p12, %p3344_p7 }
  0x3f   : > { %p3347_p2 = pnand %p3346_p0, %p3340_p9 }
  0x41   : > { %3350 = shalt.err (!%p3347_p2)
}
  0x42   : > { %s3429_s26 = smov 64   ;;  %s3430_s7 = smov 4  }
  0x43   : > { %2740 = dma.hbm_to_vmem [thread:$0]  (!%p3534_p10), %s3543_s23, 1280, %s3546_s27, %s3549_s6, %s3429_s26, %s3429_s26, %s3430_s7  }
  0x44   : > { %s3585_s10 = scalar_lea.hbm %s5984_s1, %s2720_s28  ;;  %s199_s11 = scalar_lea.vmem [#allocation4], %s3531_s22 }
  0x45   : > { %s206_s12 = sshll.u32 %s199_s11, 4  ;;  %s3592_s13 = scalar_lea.sflag [#allocation5], %s195_s5  ;;  %s3588_s12 = int_to_ptr.vmem [resolvable:$true] %s206_s12 }
  0x46   : > { %s3351_s15 = scalar_lea.hbm %s3585_s10, 1280  ;;  %s3356_s27 = scalar_lea.hbm %s5984_s1, 5120 }
  0x47   : > { %p3352_p13 = scmp.ne.s32.totalorder %s3585_s10, %s3351_s15  ;;  %p3357_p1 = scmp.lt.u32.totalorder %s3585_s10, %s5984_s1 }
  0x48   : > { %p3358_p4 = scmp.lt.u32.totalorder %s3356_s27, %s3351_s15  ;;  %p3360_p8 = scmp.lt.u32.totalorder %s3351_s15, %s3585_s10 }
  0x49   : > { %p3354_p3 = pnand %p3352_p13, %p3323_p11 }
  0x4a   : > { %p3359_p5 = por %p3358_p4, %p3357_p1 }
  0x4b   : > { %p3355_p6 = pneg %p3354_p3 }
  0x4c   : > { %p3361_p9 = por %p3360_p8, %p3359_p5 }
  0x4e   : > { %p3362_p7 = pnand %p3361_p9, %p3355_p6 }
  0x50   : > { %3365 = shalt.err (!%p3362_p7)
}
  0x51   : > { %s3366_s18 = scalar_lea.vmem %s3588_s12, 1280  ;;  %s3431_s22 = smov [#allocation4]  }
  0x52   : > { %p3367_p12 = scmp.ne.s32.totalorder %s3588_s12, %s3366_s18  ;;  %s3371_s5 = sshll.u32 %s3431_s22, 4  ;;  %s3372_s5 = int_to_ptr.vmem [resolvable:$false] %s3371_s5 }
  0x53   : > { %s3373_s30 = scalar_lea.vmem %s3372_s5, 2560  ;;  %p3374_p13 = scmp.lt.s32.totalorder %s3588_s12, %s3372_s5 }
  0x54   : > { %p3369_p0 = pnand %p3367_p12, %p3323_p11  ;;  %p3375_p3 = scmp.lt.s32.totalorder %s3373_s30, %s3366_s18 }
  0x56   : > { %p3370_p2 = pneg %p3369_p0  ;;  %p3376_p1 = por %p3375_p3, %p3374_p13 }
  0x58   : > { %p3377_p4 = pnand %p3376_p1, %p3370_p2 }
  0x5a   : > { %3380 = shalt.err (!%p3377_p4)
}
  0x5b   : > { %2743 = dma.hbm_to_vmem [thread:$0]  (!%p3534_p10), %s3585_s10, 1280, %s3588_s12, %s3592_s13, %s3429_s26, %s3429_s26, %s3430_s7  }
  0x5c   : > { %p6416_p11 = scmp.ne.s32.totalorder %s6413_s21, 0 }
  0x5e   : > { %218 = sbr.rel (%p6416_p11) target bundleno = 1027 (0x403), region = 36 }
  0x65   : > { %s220_s8 = sand.u32 1, %s3415_s16   ;;  %p6417_p6 = scmp.ne.s32.totalorder %s6412_s20, 0 }
  0x66   : > { %s2724_s9 = smul.u32 80, %s220_s8  ;;  %s221_s11 = scalar_lea.sflag [#allocation3], %s220_s8 }
  0x68   : > { %s3624_s15 = scalar_lea.vmem [#allocation2], %s2724_s9 }
  0x69   : > { %3398 = dma.done.wait (%p6417_p6), %s221_s11, 1280  }
  0x6a   : > { %3400 = vsyncadd (%p6417_p6), %s221_s11, 4294966016  ;;  %s229_s29 = sand.u32 1, %s3477_s19   ;;  %s3631_s26 = scalar_lea.vmem [#allocation4], %s2724_s9 }
  0x6b   : > { %s230_s23 = scalar_lea.sflag [#allocation5], %s229_s29 }
  0x6c   : > { %3402 = dma.done.wait (%p6417_p6), %s230_s23, 1280  }
  0x6d   : > { %3404 = vsyncadd (%p6417_p6), %s230_s23, 4294966016  ;;  %p6418_p10 = scmp.eq.s32.totalorder %s3477_s19, 0 }
  0x6f   : > { %3406 = dma.done.wait (%p6418_p10), [#allocation5], 4096   ;;  %p6419_p5 = pmov %p6418_p10 }
  0x70   : > { %v3432_v0 = vmov 0   ;;  %v2785_v1 = vld [vmem:[#allocation6 + $0x4] ss:$16 sps:$4 sm:$0xff]   ;;  %v2787_v2 = vld [vmem:[#allocation6 + $0xc] ss:$16 sps:$4 sm:$0xff]   ;;  %v470_v53 = vlaneseq  ;;  %s269_s7 = smul.u32 20, %s3477_s19 }
  0x71   : > { %3408 = vsyncadd (%p6419_p5), [#allocation5], 4294963200  ;;  %682 = vmatprep.mubr.bf16.mxu0 %v3432_v0  ;;  %915 = vmatprep.mubr.bf16.mxu1 %v3432_v0  ;;  %v2789_v3 = vld [vmem:[#allocation6] ss:$16 sps:$4 sm:$0xff]   ;;  %v2790_v4 = vld [vmem:[#allocation6 + $0x8] ss:$16 sps:$4 sm:$0xff]  }
  0x72   : > { %650 = vmatprep.subr.bf16.mxu0 %v2785_v1  ;;  %883 = vmatprep.subr.bf16.mxu1 %v2787_v2  ;;  %v2791_v5 = vld [vmem:[#allocation6 + $0x24] ss:$16 sps:$4 sm:$0xff]   ;;  %v2793_v6 = vld [vmem:[#allocation6 + $0x2c] ss:$16 sps:$4 sm:$0xff]   ;;  %v2795_v7 = vld [vmem:[#allocation6 + $0x20] ss:$16 sps:$4 sm:$0xff]  }
  0x73   : > { %651 = vmatpush1.bf16.msra.mxu0 %v2789_v3  ;;  %884 = vmatpush1.bf16.msra.mxu1 %v2790_v4  ;;  %v2796_v8 = vld [vmem:[#allocation6 + $0x28] ss:$16 sps:$4 sm:$0xff]   ;;  %v2797_v9 = vld [vmem:[#allocation6 + $0x44] ss:$16 sps:$4 sm:$0xff]   ;;  %v2799_v10 = vld [vmem:[#allocation6 + $0x4c] ss:$16 sps:$4 sm:$0xff]  }
  0x74   : > { %652 = vmatprep.subr.bf16.mxu0 %v2791_v5  ;;  %885 = vmatprep.subr.bf16.mxu1 %v2793_v6  ;;  %v2801_v11 = vld [vmem:[#allocation6 + $0x40] ss:$16 sps:$4 sm:$0xff]   ;;  %v2802_v12 = vld [vmem:[#allocation6 + $0x48] ss:$16 sps:$4 sm:$0xff]   ;;  %v2803_v13 = vld [vmem:[#allocation6 + $0x64] ss:$16 sps:$4 sm:$0xff]  }
  0x75   : > { %v2805_v14 = vld [vmem:[#allocation6 + $0x6c] ss:$16 sps:$4 sm:$0xff]   ;;  %v2807_v15 = vld [vmem:[#allocation6 + $0x60] ss:$16 sps:$4 sm:$0xff]   ;;  %v2808_v16 = vld [vmem:[#allocation6 + $0x68] ss:$16 sps:$4 sm:$0xff]  }
  0x76   : > { %v2809_v17 = vld [vmem:[#allocation6 + $0x84] ss:$16 sps:$4 sm:$0xff]   ;;  %v2811_v18 = vld [vmem:[#allocation6 + $0x8c] ss:$16 sps:$4 sm:$0xff]   ;;  %v2813_v19 = vld [vmem:[#allocation6 + $0x80] ss:$16 sps:$4 sm:$0xff]  }
  0x77   : > { %653 = vmatpush1.bf16.msra.mxu0 %v2795_v7  ;;  %886 = vmatpush1.bf16.msra.mxu1 %v2796_v8  ;;  %v2814_v20 = vld [vmem:[#allocation6 + $0x88] ss:$16 sps:$4 sm:$0xff]   ;;  %v2815_v21 = vld [vmem:[#allocation6 + $0xa4] ss:$16 sps:$4 sm:$0xff]   ;;  %v2817_v22 = vld [vmem:[#allocation6 + $0xac] ss:$16 sps:$4 sm:$0xff]  }
  0x78   : > { %654 = vmatprep.subr.bf16.mxu0 %v2797_v9  ;;  %887 = vmatprep.subr.bf16.mxu1 %v2799_v10  ;;  %v2819_v23 = vld [vmem:[#allocation6 + $0xa0] ss:$16 sps:$4 sm:$0xff]   ;;  %v2820_v24 = vld [vmem:[#allocation6 + $0xa8] ss:$16 sps:$4 sm:$0xff]   ;;  %v2821_v25 = vld [vmem:[#allocation6 + $0xc4] ss:$16 sps:$4 sm:$0xff]  }
  0x79   : > { %v2823_v26 = vld [vmem:[#allocation6 + $0xcc] ss:$16 sps:$4 sm:$0xff]   ;;  %v2825_v27 = vld [vmem:[#allocation6 + $0xc0] ss:$16 sps:$4 sm:$0xff]   ;;  %v2826_v28 = vld [vmem:[#allocation6 + $0xc8] ss:$16 sps:$4 sm:$0xff]  }
  0x7a   : > { %v2827_v29 = vld [vmem:[#allocation6 + $0xe4] ss:$16 sps:$4 sm:$0xff]   ;;  %v2829_v30 = vld [vmem:[#allocation6 + $0xec] ss:$16 sps:$4 sm:$0xff]   ;;  %v2831_v31 = vld [vmem:[#allocation6 + $0xe0] ss:$16 sps:$4 sm:$0xff]  }
  0x7b   : > { %655 = vmatpush1.bf16.msra.mxu0 %v2801_v11  ;;  %888 = vmatpush1.bf16.msra.mxu1 %v2802_v12  ;;  %v2832_v32 = vld [vmem:[#allocation6 + $0xe8] ss:$16 sps:$4 sm:$0xff]   ;;  %v2833_v33 = vld [vmem:[%s3624_s15] sm:$0xff]   ;;  %v2835_v35 = vld [vmem:[%s3624_s15 + $0x10] sm:$0xff]   ;;  %v471_v54 = vshrl.u32 %v470_v53, 7  ;;  %p270_p8 = scmp.lt.s32.totalorder %s269_s7, 79 }
  0x7c   : > { %656 = vmatprep.subr.bf16.mxu0 %v2803_v13  ;;  %889 = vmatprep.subr.bf16.mxu1 %v2805_v14  ;;  %v2834_v34 = vld [vmem:[%s3624_s15 + $0x8] sm:$0xff]   ;;  %v2836_v36 = vld [vmem:[%s3624_s15 + $0x18] sm:$0xff]   ;;  %v2837_v37 = vld [vmem:[%s3624_s15 + $0x20] sm:$0xff]   ;;  %vm2536_vm0 = vcmask 7168  }
  0x7d   : > { %v2838_v38 = vld [vmem:[%s3624_s15 + $0x28] sm:$0xff]   ;;  %v2839_v39 = vld [vmem:[%s3624_s15 + $0x30] sm:$0xff]   ;;  %v2840_v40 = vld [vmem:[%s3624_s15 + $0x38] sm:$0xff]   ;;  %v472_v55 = vsub.s32 0, %v471_v54  ;;  %v480_v57 = vsub.s32 2, %v471_v54  ;;  %v476_v58 = vsub.s32 1, %v471_v54 }
  0x7e   : > { %v2841_v41 = vld [vmem:[%s3624_s15 + $0x40] sm:$0xff]   ;;  %v2842_v42 = vld [vmem:[%s3624_s15 + $0x48] sm:$0xff]   ;;  %v2845_v45 = vld [vmem:[%s3631_s26 + $0x10] sm:$0xff]   ;;  %v484_v62 = vsub.s32 3, %v471_v54  ;;  %s7257_s7 = smov (!%p270_p8, %s269_s7), 79 }
  0x7f   : > { %657 = vmatpush1.bf16.msra.mxu0 %v2807_v15  ;;  %890 = vmatpush1.bf16.msra.mxu1 %v2808_v16  ;;  %v2843_v43 = vld [vmem:[%s3631_s26] sm:$0xff]   ;;  %v2844_v44 = vld [vmem:[%s3631_s26 + $0x8] sm:$0xff]   ;;  %v2846_v46 = vld [vmem:[%s3631_s26 + $0x18] sm:$0xff]   ;;  %s2665_s10 = sshll.u32 %s7257_s7, 3 }
  0x80   : > { %658 = vmatprep.subr.bf16.mxu0 %v2809_v17  ;;  %891 = vmatprep.subr.bf16.mxu1 %v2811_v18  ;;  %v2847_v47 = vld [vmem:[%s3631_s26 + $0x20] sm:$0xff]   ;;  %v2848_v48 = vld [vmem:[%s3631_s26 + $0x28] sm:$0xff]   ;;  %v2849_v49 = vld [vmem:[%s3631_s26 + $0x30] sm:$0xff]   ;;  %s5911_s28 = scalar_lea.vmem %s5987_s4, %s2665_s10 }
  0x81   : > { %v2850_v50 = vld [vmem:[%s3631_s26 + $0x38] sm:$0xff]   ;;  %v2851_v51 = vld [vmem:[%s3631_s26 + $0x40] sm:$0xff]   ;;  %v2852_v52 = vld [vmem:[%s3631_s26 + $0x48] sm:$0xff]  }
  0x82   : > { %v468_v56 = vld [vmem:[%s5986_s3] sm:$0xf] }
  0x83   : > { %659 = vmatpush1.bf16.msra.mxu0 %v2813_v19  ;;  %892 = vmatpush1.bf16.msra.mxu1 %v2814_v20  ;;  %v3704_v59 = vrot.slane %v468_v56, %v472_v55  ;;  %v3706_v60 = vrot.slane %v468_v56, %v480_v57  ;;  %v3708_v61 = vrot.slane %v468_v56, %v476_v58 }
  0x84   : > { %660 = vmatprep.subr.bf16.mxu0 %v2815_v21  ;;  %893 = vmatprep.subr.bf16.mxu1 %v2817_v22  ;;  %v3719_v6 = vrot.slane %v468_v56, %v484_v62 }
  0x87   : > { %661 = vmatpush1.bf16.msra.mxu0 %v2819_v23  ;;  %894 = vmatpush1.bf16.msra.mxu1 %v2820_v24 }
  0x88   : > { %662 = vmatprep.subr.bf16.mxu0 %v2821_v25  ;;  %895 = vmatprep.subr.bf16.mxu1 %v2823_v26 }
  0x8b   : > { %663 = vmatpush1.bf16.msra.mxu0 %v2825_v27  ;;  %896 = vmatpush1.bf16.msra.mxu1 %v2826_v28 }
  0x8c   : > { %664 = vmatprep.subr.bf16.mxu0 %v2827_v29  ;;  %897 = vmatprep.subr.bf16.mxu1 %v2829_v30 }
  0x8f   : > { %665 = vmatpush1.bf16.msra.mxu0 %v2831_v31  ;;  %898 = vmatpush1.bf16.msra.mxu1 %v2832_v32 }
  0x92   : > { %683 = vmatmul.mubr.bf16.vlgmr.msra.gmra.mrb[0].mxu0 %v2833_v33  ;;  %916 = vmatmul.mubr.bf16.vlgmr.msra.gmra.mrb[0].mxu1 %v2833_v33 }
  0x93   : > { %692 = vmatprep.mubr.bf16.mxu0 %v3432_v0  ;;  %925 = vmatprep.mubr.bf16.mxu1 %v3432_v0 }
  0x9a   : > { %693 = vmatmul.mubr.bf16.gmra.mrb[4].mxu0 %v2834_v34  ;;  %926 = vmatmul.mubr.bf16.gmra.mrb[4].mxu1 %v2834_v34 }
  0x9b   : > { %702 = vmatprep.mubr.bf16.mxu0 %v3432_v0  ;;  %935 = vmatprep.mubr.bf16.mxu1 %v3432_v0 }
  0xa2   : > { %703 = vmatmul.mubr.bf16.gmra.mrb[8].mxu0 %v2835_v35  ;;  %936 = vmatmul.mubr.bf16.gmra.mrb[8].mxu1 %v2835_v35 }
  0xa3   : > { %712 = vmatprep.mubr.bf16.mxu0 %v3432_v0  ;;  %945 = vmatprep.mubr.bf16.mxu1 %v3432_v0 }
  0xaa   : > { %713 = vmatmul.mubr.bf16.gmra.mrb[12].mxu0 %v2836_v36  ;;  %946 = vmatmul.mubr.bf16.gmra.mrb[12].mxu1 %v2836_v36 }
  0xab   : > { %722 = vmatprep.mubr.bf16.mxu0 %v3432_v0  ;;  %955 = vmatprep.mubr.bf16.mxu1 %v3432_v0 }
  0xb2   : > { %723 = vmatmul.mubr.bf16.gmra.mrb[16].mxu0 %v2837_v37  ;;  %956 = vmatmul.mubr.bf16.gmra.mrb[16].mxu1 %v2837_v37 }
  0xb3   : > { %732 = vmatprep.mubr.bf16.mxu0 %v3432_v0  ;;  %965 = vmatprep.mubr.bf16.mxu1 %v3432_v0 }
  0xba   : > { %733 = vmatmul.mubr.bf16.gmra.mrb[20].mxu0 %v2838_v38  ;;  %966 = vmatmul.mubr.bf16.gmra.mrb[20].mxu1 %v2838_v38 }
  0xbb   : > { %742 = vmatprep.mubr.bf16.mxu0 %v3432_v0  ;;  %975 = vmatprep.mubr.bf16.mxu1 %v3432_v0 }
  0xc2   : > { %743 = vmatmul.mubr.bf16.gmra.mrb[24].mxu0 %v2839_v39  ;;  %976 = vmatmul.mubr.bf16.gmra.mrb[24].mxu1 %v2839_v39 }
  0xc3   : > { %752 = vmatprep.mubr.bf16.mxu0 %v3432_v0  ;;  %985 = vmatprep.mubr.bf16.mxu1 %v3432_v0 }
  0xca   : > { %753 = vmatmul.mubr.bf16.gmra.mrb[28].mxu0 %v2840_v40  ;;  %986 = vmatmul.mubr.bf16.gmra.mrb[28].mxu1 %v2840_v40 }
  0xcb   : > { %762 = vmatprep.mubr.bf16.mxu0 %v3432_v0  ;;  %995 = vmatprep.mubr.bf16.mxu1 %v3432_v0 }
  0xd2   : > { %763 = vmatmul.mubr.bf16.gmra.mrb[32].mxu0 %v2841_v41  ;;  %996 = vmatmul.mubr.bf16.gmra.mrb[32].mxu1 %v2841_v41 }
  0xd3   : > { %772 = vmatprep.mubr.bf16.mxu0 %v3432_v0  ;;  %1005 = vmatprep.mubr.bf16.mxu1 %v3432_v0 }
  0xda   : > { %773 = vmatmul.mubr.bf16.gmra.mrb[36].mxu0 %v2842_v42  ;;  %1006 = vmatmul.mubr.bf16.gmra.mrb[36].mxu1 %v2842_v42 }
  0xdb   : > { %782 = vmatprep.mubr.bf16.mxu0 %v3432_v0  ;;  %1015 = vmatprep.mubr.bf16.mxu1 %v3432_v0 }
  0xe2   : > { %783 = vmatmul.mubr.bf16.gmra.mrb[40].mxu0 %v2843_v43  ;;  %1016 = vmatmul.mubr.bf16.gmra.mrb[40].mxu1 %v2843_v43 }
  0xe3   : > { %792 = vmatprep.mubr.bf16.mxu0 %v3432_v0  ;;  %1025 = vmatprep.mubr.bf16.mxu1 %v3432_v0 }
  0xea   : > { %793 = vmatmul.mubr.bf16.gmra.mrb[44].mxu0 %v2844_v44  ;;  %1026 = vmatmul.mubr.bf16.gmra.mrb[44].mxu1 %v2844_v44 }
  0xeb   : > { %802 = vmatprep.mubr.bf16.mxu0 %v3432_v0  ;;  %1035 = vmatprep.mubr.bf16.mxu1 %v3432_v0 }
  0xf2   : > { %803 = vmatmul.mubr.bf16.gmra.mrb[48].mxu0 %v2845_v45  ;;  %1036 = vmatmul.mubr.bf16.gmra.mrb[48].mxu1 %v2845_v45 }
  0xf3   : > { %812 = vmatprep.mubr.bf16.mxu0 %v3432_v0  ;;  %1045 = vmatprep.mubr.bf16.mxu1 %v3432_v0 }
  0xfa   : > { %813 = vmatmul.mubr.bf16.gmra.mrb[52].mxu0 %v2846_v46  ;;  %1046 = vmatmul.mubr.bf16.gmra.mrb[52].mxu1 %v2846_v46 }
  0xfb   : > { %822 = vmatprep.mubr.bf16.mxu0 %v3432_v0  ;;  %1055 = vmatprep.mubr.bf16.mxu1 %v3432_v0 }
 0x102   : > { %823 = vmatmul.mubr.bf16.gmra.mrb[56].mxu0 %v2847_v47  ;;  %1056 = vmatmul.mubr.bf16.gmra.mrb[56].mxu1 %v2847_v47 }
 0x103   : > { %832 = vmatprep.mubr.bf16.mxu0 %v3432_v0  ;;  %1065 = vmatprep.mubr.bf16.mxu1 %v3432_v0 }
 0x10a   : > { %833 = vmatmul.mubr.bf16.gmra.mrb[60].mxu0 %v2848_v48  ;;  %1066 = vmatmul.mubr.bf16.gmra.mrb[60].mxu1 %v2848_v48 }
 0x10b   : > { %842 = vmatprep.mubr.bf16.mxu0 %v3432_v0  ;;  %1075 = vmatprep.mubr.bf16.mxu1 %v3432_v0 }
 0x112   : > { %843 = vmatmul.mubr.bf16.gmra.mrb[64].mxu0 %v2849_v49  ;;  %1076 = vmatmul.mubr.bf16.gmra.mrb[64].mxu1 %v2849_v49 }
 0x113   : > { %852 = vmatprep.mubr.bf16.mxu0 %v3432_v0  ;;  %1085 = vmatprep.mubr.bf16.mxu1 %v3432_v0 }
 0x11a   : > { %853 = vmatmul.mubr.bf16.gmra.mrb[68].mxu0 %v2850_v50  ;;  %1086 = vmatmul.mubr.bf16.gmra.mrb[68].mxu1 %v2850_v50 }
 0x11b   : > { %862 = vmatprep.mubr.bf16.mxu0 %v3432_v0  ;;  %1095 = vmatprep.mubr.bf16.mxu1 %v3432_v0 }
 0x122   : > { %863 = vmatmul.mubr.bf16.gmra.mrb[72].mxu0 %v2851_v51  ;;  %1096 = vmatmul.mubr.bf16.gmra.mrb[72].mxu1 %v2851_v51 }
 0x123   : > { %872 = vmatprep.mubr.bf16.mxu0 %v3432_v0  ;;  %1105 = vmatprep.mubr.bf16.mxu1 %v3432_v0 }
 0x12a   : > { %873 = vmatmul.mubr.bf16.gmra.mrb[76].mxu0 %v2852_v52  ;;  %1106 = vmatmul.mubr.bf16.gmra.mrb[76].mxu1 %v2852_v52 }
 0x165   : > { %v684_v63 = vpop.f32.mrb[0].mxu0  ;;  %v917_v0 = vpop.f32.mrb[0].mxu1 }
 0x166   : > { %v3711_v1 = vadd.f32 %v684_v63, %v3704_v59  ;;  %v686_v2 = vpop.f32.mrb[1].mxu0  ;;  %v919_v3 = vpop.f32.mrb[1].mxu1  ;;  %v3714_v4 = vadd.f32 %v917_v0, %v3706_v60 }
 0x167   : > { %v3717_v5 = vadd.f32 %v686_v2, %v3708_v61  ;;  %v688_v7 = vpop.f32.mrb[2].mxu0  ;;  %v921_v8 = vpop.f32.mrb[2].mxu1  ;;  %v3730_v14 = vadd.f32 %v919_v3, %v3719_v6 }
 0x168   : > { %v3722_v9 = vadd.f32 %v688_v7, %v3704_v59  ;;  %v690_v10 = vpop.f32.mrb[3].mxu0  ;;  %v923_v11 = vpop.f32.mrb[3].mxu1  ;;  %v3733_v15 = vadd.f32 %v921_v8, %v3706_v60 }
 0x169   : > { %v1116_v12 = vmax.f32 %v3711_v1, %v3717_v5  ;;  %v3727_v13 = vadd.f32 %v690_v10, %v3708_v61  ;;  %v3744_v25 = vadd.f32 %v923_v11, %v3719_v6 }
 0x16b   : > { %v1121_v16 = vmax.f32 %v3722_v9, %v3727_v13  ;;  %v1117_v17 = vmax.f32 %v1116_v12, %v3714_v4 }
 0x16d   : > { %v694_v18 = vpop.f32.mrb[4].mxu0  ;;  %v927_v19 = vpop.f32.mrb[4].mxu1  ;;  %v1118_v20 = vmax.f32 %v1117_v17, %v3730_v14  ;;  %v1122_v21 = vmax.f32 %v1121_v16, %v3733_v15 }
 0x16e   : > { %v3741_v22 = vadd.f32 %v694_v18, %v3704_v59  ;;  %v696_v23 = vpop.f32.mrb[5].mxu0  ;;  %v929_v24 = vpop.f32.mrb[5].mxu1  ;;  %v3747_v26 = vadd.f32 %v927_v19, %v3706_v60 }
 0x16f   : > { %v3750_v27 = vadd.f32 %v696_v23, %v3708_v61  ;;  %v698_v28 = vpop.f32.mrb[6].mxu0  ;;  %v931_v29 = vpop.f32.mrb[6].mxu1  ;;  %1119 = vmax.xlane.f32.xlu0 %v1118_v20  ;;  %v1123_v35 = vmax.f32 %v1122_v21, %v3744_v25  ;;  %v3762_v36 = vadd.f32 %v929_v24, %v3719_v6 }
 0x170   : > { %v3753_v30 = vadd.f32 %v698_v28, %v3704_v59  ;;  %v700_v31 = vpop.f32.mrb[7].mxu0  ;;  %v933_v32 = vpop.f32.mrb[7].mxu1  ;;  %v3765_v37 = vadd.f32 %v931_v29, %v3706_v60 }
 0x171   : > { %v1126_v33 = vmax.f32 %v3741_v22, %v3750_v27  ;;  %v3758_v34 = vadd.f32 %v700_v31, %v3708_v61  ;;  %v3776_v47 = vadd.f32 %v933_v32, %v3719_v6 }
 0x173   : > { %v1131_v38 = vmax.f32 %v3753_v30, %v3758_v34  ;;  %1124 = vmax.xlane.f32.xlu0 %v1123_v35  ;;  %v1127_v39 = vmax.f32 %v1126_v33, %v3747_v26 }
 0x175   : > { %v704_v40 = vpop.f32.mrb[8].mxu0  ;;  %v937_v41 = vpop.f32.mrb[8].mxu1  ;;  %v1128_v42 = vmax.f32 %v1127_v39, %v3762_v36  ;;  %v1132_v43 = vmax.f32 %v1131_v38, %v3765_v37 }
 0x176   : > { %v3773_v44 = vadd.f32 %v704_v40, %v3704_v59  ;;  %v706_v45 = vpop.f32.mrb[9].mxu0  ;;  %v939_v46 = vpop.f32.mrb[9].mxu1  ;;  %v3779_v48 = vadd.f32 %v937_v41, %v3706_v60 }
 0x177   : > { %v3782_v49 = vadd.f32 %v706_v45, %v3708_v61  ;;  %v708_v50 = vpop.f32.mrb[10].mxu0  ;;  %v941_v51 = vpop.f32.mrb[10].mxu1  ;;  %1129 = vmax.xlane.f32.xlu1 %v1128_v42  ;;  %v1133_v57 = vmax.f32 %v1132_v43, %v3776_v47  ;;  %v3794_v58 = vadd.f32 %v939_v46, %v3719_v6 }
 0x178   : > { %v3785_v52 = vadd.f32 %v708_v50, %v3704_v59  ;;  %v710_v53 = vpop.f32.mrb[11].mxu0  ;;  %v943_v54 = vpop.f32.mrb[11].mxu1  ;;  %v3797_v62 = vadd.f32 %v941_v51, %v3706_v60 }
 0x179   : > { %v1136_v55 = vmax.f32 %v3773_v44, %v3782_v49  ;;  %v3790_v56 = vadd.f32 %v710_v53, %v3708_v61  ;;  %v3803_v2 = vadd.f32 %v943_v54, %v3719_v6 }
 0x17b   : > { %v1141_v63 = vmax.f32 %v3785_v52, %v3790_v56  ;;  %1134 = vmax.xlane.f32.xlu1 %v1133_v57  ;;  %v1137_v0 = vmax.f32 %v1136_v55, %v3779_v48 }
 0x17d   : > { %v714_v3 = vpop.f32.mrb[12].mxu0  ;;  %v947_v7 = vpop.f32.mrb[12].mxu1  ;;  %v1138_v8 = vmax.f32 %v1137_v0, %v3794_v58  ;;  %v1142_v10 = vmax.f32 %v1141_v63, %v3797_v62 }
 0x17e   : > { %v3808_v11 = vadd.f32 %v714_v3, %v3704_v59  ;;  %v716_v12 = vpop.f32.mrb[13].mxu0  ;;  %v949_v16 = vpop.f32.mrb[13].mxu1  ;;  %v3811_v17 = vadd.f32 %v947_v7, %v3706_v60 }
 0x17f   : > { %v3814_v18 = vadd.f32 %v716_v12, %v3708_v61  ;;  %v718_v19 = vpop.f32.mrb[14].mxu0  ;;  %v951_v20 = vpop.f32.mrb[14].mxu1  ;;  %1139 = vmax.xlane.f32.xlu0 %v1138_v8  ;;  %v1143_v21 = vmax.f32 %v1142_v10, %v3803_v2  ;;  %v3826_v32 = vadd.f32 %v949_v16, %v3719_v6 }
 0x180   : > { %v3818_v23 = vadd.f32 %v718_v19, %v3704_v59  ;;  %v720_v24 = vpop.f32.mrb[15].mxu0  ;;  %v953_v28 = vpop.f32.mrb[15].mxu1  ;;  %v3829_v33 = vadd.f32 %v951_v20, %v3706_v60 }
 0x181   : > { %v1146_v29 = vmax.f32 %v3808_v11, %v3814_v18  ;;  %v3823_v31 = vadd.f32 %v720_v24, %v3708_v61  ;;  %1144 = vmax.xlane.f32.xlu1 %v1143_v21  ;;  %v3835_v39 = vadd.f32 %v953_v28, %v3719_v6 }
 0x183   : > { %v1151_v35 = vmax.f32 %v3818_v23, %v3823_v31  ;;  %v1147_v38 = vmax.f32 %v1146_v29, %v3811_v17 }
 0x185   : > { %v724_v40 = vpop.f32.mrb[16].mxu0  ;;  %v957_v41 = vpop.f32.mrb[16].mxu1  ;;  %v1148_v42 = vmax.f32 %v1147_v38, %v3826_v32  ;;  %v1152_v43 = vmax.f32 %v1151_v35, %v3829_v33 }
 0x186   : > { %v3840_v45 = vadd.f32 %v724_v40, %v3704_v59  ;;  %v726_v46 = vpop.f32.mrb[17].mxu0  ;;  %v959_v50 = vpop.f32.mrb[17].mxu1  ;;  %v3843_v51 = vadd.f32 %v957_v41, %v3706_v60 }
 0x187   : > { %v3846_v53 = vadd.f32 %v726_v46, %v3708_v61  ;;  %v728_v54 = vpop.f32.mrb[18].mxu0  ;;  %v961_v55 = vpop.f32.mrb[18].mxu1  ;;  %1149 = vmax.xlane.f32.xlu0 %v1148_v42  ;;  %v1153_v57 = vmax.f32 %v1152_v43, %v3835_v39  ;;  %v3858_v10 = vadd.f32 %v959_v50, %v3719_v6 }
 0x188   : > { %v3850_v63 = vadd.f32 %v728_v54, %v3704_v59  ;;  %v730_v0 = vpop.f32.mrb[19].mxu0  ;;  %v963_v3 = vpop.f32.mrb[19].mxu1  ;;  %v3861_v12 = vadd.f32 %v961_v55, %v3706_v60 }
 0x189   : > { %v1156_v7 = vmax.f32 %v3840_v45, %v3846_v53  ;;  %v3855_v8 = vadd.f32 %v730_v0, %v3708_v61  ;;  %1154 = vmax.xlane.f32.xlu1 %v1153_v57  ;;  %v3867_v20 = vadd.f32 %v963_v3, %v3719_v6 }
 0x18b   : > { %v1161_v16 = vmax.f32 %v3850_v63, %v3855_v8  ;;  %v1157_v19 = vmax.f32 %v1156_v7, %v3843_v51 }
 0x18d   : > { %v734_v21 = vpop.f32.mrb[20].mxu0  ;;  %v967_v24 = vpop.f32.mrb[20].mxu1  ;;  %v1158_v28 = vmax.f32 %v1157_v19, %v3858_v10  ;;  %v1162_v29 = vmax.f32 %v1161_v16, %v3861_v12 }
 0x18e   : > { %v3872_v35 = vadd.f32 %v734_v21, %v3704_v59  ;;  %v736_v38 = vpop.f32.mrb[21].mxu0  ;;  %v969_v40 = vpop.f32.mrb[21].mxu1  ;;  %v3875_v41 = vadd.f32 %v967_v24, %v3706_v60 }
 0x18f   : > { %v3878_v42 = vadd.f32 %v736_v38, %v3708_v61  ;;  %v738_v43 = vpop.f32.mrb[22].mxu0  ;;  %v971_v46 = vpop.f32.mrb[22].mxu1  ;;  %1159 = vmax.xlane.f32.xlu0 %v1158_v28  ;;  %v1163_v50 = vmax.f32 %v1162_v29, %v3867_v20  ;;  %v3890_v7 = vadd.f32 %v969_v40, %v3719_v6 }
 0x190   : > { %6420 = vst [vmem:[#allocation10_spill] sm:$0xff] %v3875_v41  ;;  %v3882_v54 = vadd.f32 %v738_v43, %v3704_v59  ;;  %v740_v55 = vpop.f32.mrb[23].mxu0  ;;  %v973_v57 = vpop.f32.mrb[23].mxu1  ;;  %v3893_v16 = vadd.f32 %v971_v46, %v3706_v60 }
 0x191   : > { %6421 = vst [vmem:[#allocation11_spill] sm:$0xff] %v3878_v42  ;;  %v1166_v0 = vmax.f32 %v3872_v35, %v3878_v42  ;;  %v3887_v3 = vadd.f32 %v740_v55, %v3708_v61  ;;  %1164 = vmax.xlane.f32.xlu1 %v1163_v50  ;;  %6424 = vst [vmem:[#allocation14_spill] sm:$0xff] %v3890_v7  ;;  %v3899_v24 = vadd.f32 %v973_v57, %v3719_v6 }
 0x192   : > { %6422 = vst [vmem:[#allocation12_spill] sm:$0xff] %v3882_v54  ;;  %6425 = vst [vmem:[#allocation15_spill] sm:$0xff] %v3893_v16 }
 0x193   : > { %6423 = vst [vmem:[#allocation13_spill] sm:$0xff] %v3887_v3  ;;  %v1171_v19 = vmax.f32 %v3882_v54, %v3887_v3  ;;  %v1167_v21 = vmax.f32 %v1166_v0, %v3875_v41  ;;  %6426 = vst [vmem:[#allocation16_spill] sm:$0xff] %v3899_v24 }
 0x195   : > { %v744_v28 = vpop.f32.mrb[24].mxu0  ;;  %v977_v29 = vpop.f32.mrb[24].mxu1  ;;  %v1168_v38 = vmax.f32 %v1167_v21, %v3890_v7  ;;  %v1172_v43 = vmax.f32 %v1171_v19, %v3893_v16 }
 0x196   : > { %v3904_v40 = vadd.f32 %v744_v28, %v3704_v59  ;;  %v746_v50 = vpop.f32.mrb[25].mxu0  ;;  %v979_v46 = vpop.f32.mrb[25].mxu1  ;;  %v3907_v55 = vadd.f32 %v977_v29, %v3706_v60 }
 0x197   : > { %v3910_v3 = vadd.f32 %v746_v50, %v3708_v61  ;;  %v748_v0 = vpop.f32.mrb[26].mxu0  ;;  %v981_v57 = vpop.f32.mrb[26].mxu1  ;;  %1169 = vmax.xlane.f32.xlu0 %v1168_v38  ;;  %v1173_v54 = vmax.f32 %v1172_v43, %v3899_v24  ;;  %v3922_v29 = vadd.f32 %v979_v46, %v3719_v6 }
 0x198   : > { %6427 = vst [vmem:[#allocation17_spill] sm:$0xff] %v3904_v40  ;;  %6428 = vst [vmem:[#allocation18_spill] sm:$0xff] %v3907_v55  ;;  %v3914_v21 = vadd.f32 %v748_v0, %v3704_v59  ;;  %v750_v19 = vpop.f32.mrb[27].mxu0  ;;  %v983_v16 = vpop.f32.mrb[27].mxu1  ;;  %v3925_v50 = vadd.f32 %v981_v57, %v3706_v60 }
 0x199   : > { %6429 = vst [vmem:[#allocation19_spill] sm:$0xff] %v3910_v3  ;;  %v1176_v28 = vmax.f32 %v3904_v40, %v3910_v3  ;;  %v3919_v7 = vadd.f32 %v750_v19, %v3708_v61  ;;  %1174 = vmax.xlane.f32.xlu1 %v1173_v54  ;;  %6432 = vst [vmem:[#allocation22_spill] sm:$0xff] %v3922_v29  ;;  %v3931_v0 = vadd.f32 %v983_v16, %v3719_v6 }
 0x19a   : > { %6430 = vst [vmem:[#allocation20_spill] sm:$0xff] %v3914_v21  ;;  %6433 = vst [vmem:[#allocation23_spill] sm:$0xff] %v3925_v50 }
 0x19b   : > { %6431 = vst [vmem:[#allocation21_spill] sm:$0xff] %v3919_v7  ;;  %v1181_v38 = vmax.f32 %v3914_v21, %v3919_v7  ;;  %v1177_v43 = vmax.f32 %v1176_v28, %v3907_v55  ;;  %6434 = vst [vmem:[#allocation24_spill] sm:$0xff] %v3931_v0 }
 0x19d   : > { %v754_v24 = vpop.f32.mrb[28].mxu0  ;;  %v987_v3 = vpop.f32.mrb[28].mxu1  ;;  %v1178_v19 = vmax.f32 %v1177_v43, %v3922_v29  ;;  %v1182_v54 = vmax.f32 %v1181_v38, %v3925_v50 }
 0x19e   : > { %v3936_v46 = vadd.f32 %v754_v24, %v3704_v59  ;;  %v756_v40 = vpop.f32.mrb[29].mxu0  ;;  %v989_v57 = vpop.f32.mrb[29].mxu1  ;;  %v3939_v41 = vadd.f32 %v987_v3, %v3706_v60 }
 0x19f   : > { %v3942_v7 = vadd.f32 %v756_v40, %v3708_v61  ;;  %v758_v28 = vpop.f32.mrb[30].mxu0  ;;  %v991_v16 = vpop.f32.mrb[30].mxu1  ;;  %1179 = vmax.xlane.f32.xlu0 %v1178_v19  ;;  %v1183_v21 = vmax.f32 %v1182_v54, %v3931_v0  ;;  %v3954_v3 = vadd.f32 %v989_v57, %v3719_v6 }
 0x1a0   : > { %6435 = vst [vmem:[#allocation25_spill] sm:$0xff] %v3936_v46  ;;  %6436 = vst [vmem:[#allocation26_spill] sm:$0xff] %v3939_v41  ;;  %v3946_v43 = vadd.f32 %v758_v28, %v3704_v59  ;;  %v760_v38 = vpop.f32.mrb[31].mxu0  ;;  %v993_v50 = vpop.f32.mrb[31].mxu1  ;;  %v3957_v40 = vadd.f32 %v991_v16, %v3706_v60 }
 0x1a1   : > { %6437 = vst [vmem:[#allocation27_spill] sm:$0xff] %v3942_v7  ;;  %v1186_v24 = vmax.f32 %v3936_v46, %v3942_v7  ;;  %v3951_v29 = vadd.f32 %v760_v38, %v3708_v61  ;;  %1184 = vmax.xlane.f32.xlu1 %v1183_v21  ;;  %6440 = vst [vmem:[#allocation30_spill] sm:$0xff] %v3954_v3  ;;  %v3963_v28 = vadd.f32 %v993_v50, %v3719_v6 }
 0x1a2   : > { %6438 = vst [vmem:[#allocation28_spill] sm:$0xff] %v3946_v43  ;;  %6441 = vst [vmem:[#allocation31_spill] sm:$0xff] %v3957_v40 }
 0x1a3   : > { %6439 = vst [vmem:[#allocation29_spill] sm:$0xff] %v3951_v29  ;;  %v1191_v19 = vmax.f32 %v3946_v43, %v3951_v29  ;;  %v1187_v54 = vmax.f32 %v1186_v24, %v3939_v41  ;;  %6442 = vst [vmem:[#allocation32_spill] sm:$0xff] %v3963_v28 }
 0x1a5   : > { %v764_v0 = vpop.f32.mrb[32].mxu0  ;;  %v997_v7 = vpop.f32.mrb[32].mxu1  ;;  %v1188_v38 = vmax.f32 %v1187_v54, %v3954_v3  ;;  %v1192_v21 = vmax.f32 %v1191_v19, %v3957_v40 }
 0x1a6   : > { %v3968_v57 = vadd.f32 %v764_v0, %v3704_v59  ;;  %v766_v46 = vpop.f32.mrb[33].mxu0  ;;  %v999_v16 = vpop.f32.mrb[33].mxu1  ;;  %v3971_v55 = vadd.f32 %v997_v7, %v3706_v60 }
 0x1a7   : > { %v3974_v29 = vadd.f32 %v766_v46, %v3708_v61  ;;  %v768_v24 = vpop.f32.mrb[34].mxu0  ;;  %v1001_v50 = vpop.f32.mrb[34].mxu1  ;;  %1189 = vmax.xlane.f32.xlu0 %v1188_v38  ;;  %v1193_v43 = vmax.f32 %v1192_v21, %v3963_v28  ;;  %v3986_v7 = vadd.f32 %v999_v16, %v3719_v6 }
 0x1a8   : > { %6443 = vst [vmem:[#allocation33_spill] sm:$0xff] %v3968_v57  ;;  %6444 = vst [vmem:[#allocation34_spill] sm:$0xff] %v3971_v55  ;;  %v3978_v54 = vadd.f32 %v768_v24, %v3704_v59  ;;  %v770_v19 = vpop.f32.mrb[35].mxu0  ;;  %v1003_v40 = vpop.f32.mrb[35].mxu1  ;;  %v3989_v46 = vadd.f32 %v1001_v50, %v3706_v60 }
 0x1a9   : > { %6445 = vst [vmem:[#allocation35_spill] sm:$0xff] %v3974_v29  ;;  %v1196_v0 = vmax.f32 %v3968_v57, %v3974_v29  ;;  %v3983_v3 = vadd.f32 %v770_v19, %v3708_v61  ;;  %1194 = vmax.xlane.f32.xlu1 %v1193_v43  ;;  %6448 = vst [vmem:[#allocation38_spill] sm:$0xff] %v3986_v7  ;;  %v3995_v24 = vadd.f32 %v1003_v40, %v3719_v6 }
 0x1aa   : > { %6446 = vst [vmem:[#allocation36_spill] sm:$0xff] %v3978_v54  ;;  %6449 = vst [vmem:[#allocation39_spill] sm:$0xff] %v3989_v46 }
 0x1ab   : > { %6447 = vst [vmem:[#allocation37_spill] sm:$0xff] %v3983_v3  ;;  %v1201_v38 = vmax.f32 %v3978_v54, %v3983_v3  ;;  %v1197_v21 = vmax.f32 %v1196_v0, %v3971_v55  ;;  %6450 = vst [vmem:[#allocation40_spill] sm:$0xff] %v3995_v24 }
 0x1ad   : > { %v774_v28 = vpop.f32.mrb[36].mxu0  ;;  %v1007_v29 = vpop.f32.mrb[36].mxu1  ;;  %v1198_v19 = vmax.f32 %v1197_v21, %v3986_v7  ;;  %v1202_v43 = vmax.f32 %v1201_v38, %v3989_v46 }
 0x1ae   : > { %v4000_v16 = vadd.f32 %v774_v28, %v3704_v59  ;;  %v776_v57 = vpop.f32.mrb[37].mxu0  ;;  %v1009_v50 = vpop.f32.mrb[37].mxu1  ;;  %v4003_v41 = vadd.f32 %v1007_v29, %v3706_v60 }
 0x1af   : > { %v4006_v3 = vadd.f32 %v776_v57, %v3708_v61  ;;  %v778_v0 = vpop.f32.mrb[38].mxu0  ;;  %v1011_v40 = vpop.f32.mrb[38].mxu1  ;;  %1199 = vmax.xlane.f32.xlu0 %v1198_v19  ;;  %v1203_v54 = vmax.f32 %v1202_v43, %v3995_v24  ;;  %v4018_v29 = vadd.f32 %v1009_v50, %v3719_v6 }
 0x1b0   : > { %6451 = vst [vmem:[#allocation41_spill] sm:$0xff] %v4000_v16  ;;  %6452 = vst [vmem:[#allocation42_spill] sm:$0xff] %v4003_v41  ;;  %v4010_v21 = vadd.f32 %v778_v0, %v3704_v59  ;;  %v780_v38 = vpop.f32.mrb[39].mxu0  ;;  %v1013_v46 = vpop.f32.mrb[39].mxu1  ;;  %v4021_v57 = vadd.f32 %v1011_v40, %v3706_v60 }
 0x1b1   : > { %6453 = vst [vmem:[#allocation43_spill] sm:$0xff] %v4006_v3  ;;  %v1206_v28 = vmax.f32 %v4000_v16, %v4006_v3  ;;  %v4015_v7 = vadd.f32 %v780_v38, %v3708_v61  ;;  %1204 = vmax.xlane.f32.xlu1 %v1203_v54  ;;  %6456 = vst [vmem:[#allocation46_spill] sm:$0xff] %v4018_v29  ;;  %v4027_v0 = vadd.f32 %v1013_v46, %v3719_v6 }
 0x1b2   : > { %6454 = vst [vmem:[#allocation44_spill] sm:$0xff] %v4010_v21  ;;  %6457 = vst [vmem:[#allocation47_spill] sm:$0xff] %v4021_v57 }
 0x1b3   : > { %6455 = vst [vmem:[#allocation45_spill] sm:$0xff] %v4015_v7  ;;  %v1211_v19 = vmax.f32 %v4010_v21, %v4015_v7  ;;  %v1207_v43 = vmax.f32 %v1206_v28, %v4003_v41  ;;  %6458 = vst [vmem:[#allocation48_spill] sm:$0xff] %v4027_v0 }
 0x1b5   : > { %v784_v24 = vpop.f32.mrb[40].mxu0  ;;  %v1017_v3 = vpop.f32.mrb[40].mxu1  ;;  %v1208_v38 = vmax.f32 %v1207_v43, %v4018_v29  ;;  %v1212_v54 = vmax.f32 %v1211_v19, %v4021_v57 }
 0x1b6   : > { %v4032_v50 = vadd.f32 %v784_v24, %v3704_v59  ;;  %v786_v16 = vpop.f32.mrb[41].mxu0  ;;  %v1019_v40 = vpop.f32.mrb[41].mxu1  ;;  %v4035_v55 = vadd.f32 %v1017_v3, %v3706_v60 }
 0x1b7   : > { %v4038_v7 = vadd.f32 %v786_v16, %v3708_v61  ;;  %v788_v28 = vpop.f32.mrb[42].mxu0  ;;  %v1021_v46 = vpop.f32.mrb[42].mxu1  ;;  %1209 = vmax.xlane.f32.xlu0 %v1208_v38  ;;  %v1213_v21 = vmax.f32 %v1212_v54, %v4027_v0  ;;  %v4050_v3 = vadd.f32 %v1019_v40, %v3719_v6 }
 0x1b8   : > { %6459 = vst [vmem:[#allocation49_spill] sm:$0xff] %v4032_v50  ;;  %6460 = vst [vmem:[#allocation50_spill] sm:$0xff] %v4035_v55  ;;  %v4042_v43 = vadd.f32 %v788_v28, %v3704_v59  ;;  %v790_v19 = vpop.f32.mrb[43].mxu0  ;;  %v1023_v57 = vpop.f32.mrb[43].mxu1  ;;  %v4053_v16 = vadd.f32 %v1021_v46, %v3706_v60 }
 0x1b9   : > { %6461 = vst [vmem:[#allocation51_spill] sm:$0xff] %v4038_v7  ;;  %v1676_v24 = vmax.f32 %v4032_v50, %v4038_v7  ;;  %v4047_v29 = vadd.f32 %v790_v19, %v3708_v61  ;;  %1214 = vmax.xlane.f32.xlu1 %v1213_v21  ;;  %6464 = vst [vmem:[#allocation54_spill] sm:$0xff] %v4050_v3  ;;  %v4059_v28 = vadd.f32 %v1023_v57, %v3719_v6 }
 0x1ba   : > { %6462 = vst [vmem:[#allocation52_spill] sm:$0xff] %v4042_v43  ;;  %6465 = vst [vmem:[#allocation55_spill] sm:$0xff] %v4053_v16 }
 0x1bb   : > { %6463 = vst [vmem:[#allocation53_spill] sm:$0xff] %v4047_v29  ;;  %v1681_v38 = vmax.f32 %v4042_v43, %v4047_v29  ;;  %v1677_v54 = vmax.f32 %v1676_v24, %v4035_v55  ;;  %6466 = vst [vmem:[#allocation56_spill] sm:$0xff] %v4059_v28 }
 0x1bd   : > { %v794_v0 = vpop.f32.mrb[44].mxu0  ;;  %v1027_v7 = vpop.f32.mrb[44].mxu1  ;;  %v1678_v19 = vmax.f32 %v1677_v54, %v4050_v3  ;;  %v1682_v21 = vmax.f32 %v1681_v38, %v4053_v16 }
 0x1be   : > { %v4064_v40 = vadd.f32 %v794_v0, %v3704_v59  ;;  %v796_v50 = vpop.f32.mrb[45].mxu0  ;;  %v1029_v46 = vpop.f32.mrb[45].mxu1  ;;  %v4067_v41 = vadd.f32 %v1027_v7, %v3706_v60 }
 0x1bf   : > { %v4070_v29 = vadd.f32 %v796_v50, %v3708_v61  ;;  %v798_v24 = vpop.f32.mrb[46].mxu0  ;;  %v1031_v57 = vpop.f32.mrb[46].mxu1  ;;  %1679 = vmax.xlane.f32.xlu0 %v1678_v19  ;;  %v1683_v43 = vmax.f32 %v1682_v21, %v4059_v28  ;;  %v4082_v7 = vadd.f32 %v1029_v46, %v3719_v6 }
 0x1c0   : > { %6467 = vst [vmem:[#allocation57_spill] sm:$0xff] %v4064_v40  ;;  %6468 = vst [vmem:[#allocation58_spill] sm:$0xff] %v4067_v41  ;;  %v4074_v54 = vadd.f32 %v798_v24, %v3704_v59  ;;  %v800_v38 = vpop.f32.mrb[47].mxu0  ;;  %v1033_v16 = vpop.f32.mrb[47].mxu1  ;;  %v4085_v50 = vadd.f32 %v1031_v57, %v3706_v60 }
 0x1c1   : > { %6469 = vst [vmem:[#allocation59_spill] sm:$0xff] %v4070_v29  ;;  %v1686_v0 = vmax.f32 %v4064_v40, %v4070_v29  ;;  %v4079_v3 = vadd.f32 %v800_v38, %v3708_v61  ;;  %1684 = vmax.xlane.f32.xlu1 %v1683_v43  ;;  %6472 = vst [vmem:[#allocation62_spill] sm:$0xff] %v4082_v7  ;;  %v4091_v24 = vadd.f32 %v1033_v16, %v3719_v6 }
 0x1c2   : > { %6470 = vst [vmem:[#allocation60_spill] sm:$0xff] %v4074_v54  ;;  %6473 = vst [vmem:[#allocation63_spill] sm:$0xff] %v4085_v50 }
 0x1c3   : > { %6471 = vst [vmem:[#allocation61_spill] sm:$0xff] %v4079_v3  ;;  %v1691_v19 = vmax.f32 %v4074_v54, %v4079_v3  ;;  %v1687_v21 = vmax.f32 %v1686_v0, %v4067_v41  ;;  %6474 = vst [vmem:[#allocation64_spill] sm:$0xff] %v4091_v24 }
 0x1c5   : > { %v804_v28 = vpop.f32.mrb[48].mxu0  ;;  %v1037_v29 = vpop.f32.mrb[48].mxu1  ;;  %v1688_v38 = vmax.f32 %v1687_v21, %v4082_v7  ;;  %v1692_v43 = vmax.f32 %v1691_v19, %v4085_v50 }
 0x1c6   : > { %v4096_v46 = vadd.f32 %v804_v28, %v3704_v59  ;;  %v806_v40 = vpop.f32.mrb[49].mxu0  ;;  %v1039_v57 = vpop.f32.mrb[49].mxu1  ;;  %v4099_v55 = vadd.f32 %v1037_v29, %v3706_v60 }
 0x1c7   : > { %v4102_v3 = vadd.f32 %v806_v40, %v3708_v61  ;;  %v808_v0 = vpop.f32.mrb[50].mxu0  ;;  %v1041_v16 = vpop.f32.mrb[50].mxu1  ;;  %1689 = vmax.xlane.f32.xlu0 %v1688_v38  ;;  %v1693_v54 = vmax.f32 %v1692_v43, %v4091_v24  ;;  %v4114_v29 = vadd.f32 %v1039_v57, %v3719_v6 }
 0x1c8   : > { %6475 = vst [vmem:[#allocation65_spill] sm:$0xff] %v4096_v46  ;;  %6476 = vst [vmem:[#allocation66_spill] sm:$0xff] %v4099_v55  ;;  %v4106_v21 = vadd.f32 %v808_v0, %v3704_v59  ;;  %v810_v19 = vpop.f32.mrb[51].mxu0  ;;  %v1043_v50 = vpop.f32.mrb[51].mxu1  ;;  %v4117_v40 = vadd.f32 %v1041_v16, %v3706_v60 }
 0x1c9   : > { %6477 = vst [vmem:[#allocation67_spill] sm:$0xff] %v4102_v3  ;;  %v1696_v28 = vmax.f32 %v4096_v46, %v4102_v3  ;;  %v4111_v7 = vadd.f32 %v810_v19, %v3708_v61  ;;  %1694 = vmax.xlane.f32.xlu1 %v1693_v54  ;;  %6480 = vst [vmem:[#allocation70_spill] sm:$0xff] %v4114_v29  ;;  %v4123_v0 = vadd.f32 %v1043_v50, %v3719_v6 }
 0x1ca   : > { %6478 = vst [vmem:[#allocation68_spill] sm:$0xff] %v4106_v21  ;;  %6481 = vst [vmem:[#allocation71_spill] sm:$0xff] %v4117_v40 }
 0x1cb   : > { %6479 = vst [vmem:[#allocation69_spill] sm:$0xff] %v4111_v7  ;;  %v1701_v38 = vmax.f32 %v4106_v21, %v4111_v7  ;;  %v1697_v43 = vmax.f32 %v1696_v28, %v4099_v55  ;;  %6482 = vst [vmem:[#allocation72_spill] sm:$0xff] %v4123_v0 }
 0x1cd   : > { %v814_v24 = vpop.f32.mrb[52].mxu0  ;;  %v1047_v3 = vpop.f32.mrb[52].mxu1  ;;  %v1698_v19 = vmax.f32 %v1697_v43, %v4114_v29  ;;  %v1702_v54 = vmax.f32 %v1701_v38, %v4117_v40 }
 0x1ce   : > { %v4128_v57 = vadd.f32 %v814_v24, %v3704_v59  ;;  %v816_v46 = vpop.f32.mrb[53].mxu0  ;;  %v1049_v16 = vpop.f32.mrb[53].mxu1  ;;  %v4131_v41 = vadd.f32 %v1047_v3, %v3706_v60 }
 0x1cf   : > { %v4134_v7 = vadd.f32 %v816_v46, %v3708_v61  ;;  %v818_v28 = vpop.f32.mrb[54].mxu0  ;;  %v1051_v50 = vpop.f32.mrb[54].mxu1  ;;  %1699 = vmax.xlane.f32.xlu0 %v1698_v19  ;;  %v1703_v21 = vmax.f32 %v1702_v54, %v4123_v0  ;;  %v4146_v3 = vadd.f32 %v1049_v16, %v3719_v6 }
 0x1d0   : > { %6483 = vst [vmem:[#allocation73_spill] sm:$0xff] %v4128_v57  ;;  %6484 = vst [vmem:[#allocation74_spill] sm:$0xff] %v4131_v41  ;;  %v4138_v43 = vadd.f32 %v818_v28, %v3704_v59  ;;  %v820_v38 = vpop.f32.mrb[55].mxu0  ;;  %v1053_v40 = vpop.f32.mrb[55].mxu1  ;;  %v4149_v46 = vadd.f32 %v1051_v50, %v3706_v60 }
 0x1d1   : > { %6485 = vst [vmem:[#allocation75_spill] sm:$0xff] %v4134_v7  ;;  %v1706_v24 = vmax.f32 %v4128_v57, %v4134_v7  ;;  %v4143_v29 = vadd.f32 %v820_v38, %v3708_v61  ;;  %1704 = vmax.xlane.f32.xlu1 %v1703_v21  ;;  %6488 = vst [vmem:[#allocation78_spill] sm:$0xff] %v4146_v3  ;;  %v4155_v28 = vadd.f32 %v1053_v40, %v3719_v6 }
 0x1d2   : > { %6486 = vst [vmem:[#allocation76_spill] sm:$0xff] %v4138_v43  ;;  %6489 = vst [vmem:[#allocation79_spill] sm:$0xff] %v4149_v46 }
 0x1d3   : > { %6487 = vst [vmem:[#allocation77_spill] sm:$0xff] %v4143_v29  ;;  %v1711_v19 = vmax.f32 %v4138_v43, %v4143_v29  ;;  %v1707_v54 = vmax.f32 %v1706_v24, %v4131_v41  ;;  %6490 = vst [vmem:[#allocation80_spill] sm:$0xff] %v4155_v28 }
 0x1d5   : > { %v824_v0 = vpop.f32.mrb[56].mxu0  ;;  %v1057_v7 = vpop.f32.mrb[56].mxu1  ;;  %v1708_v38 = vmax.f32 %v1707_v54, %v4146_v3  ;;  %v1712_v21 = vmax.f32 %v1711_v19, %v4149_v46 }
 0x1d6   : > { %v4160_v16 = vadd.f32 %v824_v0, %v3704_v59  ;;  %v826_v57 = vpop.f32.mrb[57].mxu0  ;;  %v1059_v50 = vpop.f32.mrb[57].mxu1  ;;  %v4163_v55 = vadd.f32 %v1057_v7, %v3706_v60 }
 0x1d7   : > { %v4166_v29 = vadd.f32 %v826_v57, %v3708_v61  ;;  %v828_v24 = vpop.f32.mrb[58].mxu0  ;;  %v1061_v40 = vpop.f32.mrb[58].mxu1  ;;  %1709 = vmax.xlane.f32.xlu0 %v1708_v38  ;;  %v1713_v43 = vmax.f32 %v1712_v21, %v4155_v28  ;;  %v4178_v7 = vadd.f32 %v1059_v50, %v3719_v6 }
 0x1d8   : > { %6491 = vst [vmem:[#allocation81_spill] sm:$0xff] %v4160_v16  ;;  %6492 = vst [vmem:[#allocation82_spill] sm:$0xff] %v4163_v55  ;;  %v4170_v54 = vadd.f32 %v828_v24, %v3704_v59  ;;  %v830_v19 = vpop.f32.mrb[59].mxu0  ;;  %v1063_v46 = vpop.f32.mrb[59].mxu1  ;;  %v4181_v57 = vadd.f32 %v1061_v40, %v3706_v60 }
 0x1d9   : > { %6493 = vst [vmem:[#allocation83_spill] sm:$0xff] %v4166_v29  ;;  %v1716_v0 = vmax.f32 %v4160_v16, %v4166_v29  ;;  %v4175_v3 = vadd.f32 %v830_v19, %v3708_v61  ;;  %1714 = vmax.xlane.f32.xlu1 %v1713_v43  ;;  %6496 = vst [vmem:[#allocation86_spill] sm:$0xff] %v4178_v7  ;;  %v4187_v24 = vadd.f32 %v1063_v46, %v3719_v6 }
 0x1da   : > { %6494 = vst [vmem:[#allocation84_spill] sm:$0xff] %v4170_v54  ;;  %6497 = vst [vmem:[#allocation87_spill] sm:$0xff] %v4181_v57 }
 0x1db   : > { %6495 = vst [vmem:[#allocation85_spill] sm:$0xff] %v4175_v3  ;;  %v1721_v38 = vmax.f32 %v4170_v54, %v4175_v3  ;;  %v1717_v21 = vmax.f32 %v1716_v0, %v4163_v55  ;;  %6498 = vst [vmem:[#allocation88_spill] sm:$0xff] %v4187_v24 }
 0x1dd   : > { %v834_v28 = vpop.f32.mrb[60].mxu0  ;;  %v1067_v29 = vpop.f32.mrb[60].mxu1  ;;  %v1718_v19 = vmax.f32 %v1717_v21, %v4178_v7  ;;  %v1722_v43 = vmax.f32 %v1721_v38, %v4181_v57 }
 0x1de   : > { %v4192_v50 = vadd.f32 %v834_v28, %v3704_v59  ;;  %v836_v16 = vpop.f32.mrb[61].mxu0  ;;  %v1069_v40 = vpop.f32.mrb[61].mxu1  ;;  %v4195_v41 = vadd.f32 %v1067_v29, %v3706_v60 }
 0x1df   : > { %v4198_v3 = vadd.f32 %v836_v16, %v3708_v61  ;;  %v838_v0 = vpop.f32.mrb[62].mxu0  ;;  %v1071_v46 = vpop.f32.mrb[62].mxu1  ;;  %1719 = vmax.xlane.f32.xlu0 %v1718_v19  ;;  %v1723_v54 = vmax.f32 %v1722_v43, %v4187_v24  ;;  %v4210_v29 = vadd.f32 %v1069_v40, %v3719_v6 }
 0x1e0   : > { %6499 = vst [vmem:[#allocation89_spill] sm:$0xff] %v4192_v50  ;;  %6500 = vst [vmem:[#allocation90_spill] sm:$0xff] %v4195_v41  ;;  %v4202_v21 = vadd.f32 %v838_v0, %v3704_v59  ;;  %v840_v38 = vpop.f32.mrb[63].mxu0  ;;  %v1073_v57 = vpop.f32.mrb[63].mxu1  ;;  %v4213_v16 = vadd.f32 %v1071_v46, %v3706_v60 }
 0x1e1   : > { %6501 = vst [vmem:[#allocation91_spill] sm:$0xff] %v4198_v3  ;;  %v1726_v28 = vmax.f32 %v4192_v50, %v4198_v3  ;;  %v4207_v7 = vadd.f32 %v840_v38, %v3708_v61  ;;  %1724 = vmax.xlane.f32.xlu1 %v1723_v54  ;;  %6504 = vst [vmem:[#allocation94_spill] sm:$0xff] %v4210_v29  ;;  %v4219_v0 = vadd.f32 %v1073_v57, %v3719_v6 }
 0x1e2   : > { %6502 = vst [vmem:[#allocation92_spill] sm:$0xff] %v4202_v21  ;;  %6505 = vst [vmem:[#allocation95_spill] sm:$0xff] %v4213_v16 }
 0x1e3   : > { %6503 = vst [vmem:[#allocation93_spill] sm:$0xff] %v4207_v7  ;;  %v1731_v19 = vmax.f32 %v4202_v21, %v4207_v7  ;;  %v1727_v43 = vmax.f32 %v1726_v28, %v4195_v41  ;;  %6506 = vst [vmem:[#allocation96_spill] sm:$0xff] %v4219_v0 }
 0x1e5   : > { %v844_v24 = vpop.f32.mrb[64].mxu0  ;;  %v1077_v3 = vpop.f32.mrb[64].mxu1  ;;  %v1728_v38 = vmax.f32 %v1727_v43, %v4210_v29  ;;  %v1732_v54 = vmax.f32 %v1731_v19, %v4213_v16 }
 0x1e6   : > { %v4224_v40 = vadd.f32 %v844_v24, %v3704_v59  ;;  %v846_v50 = vpop.f32.mrb[65].mxu0  ;;  %v1079_v46 = vpop.f32.mrb[65].mxu1  ;;  %v4227_v55 = vadd.f32 %v1077_v3, %v3706_v60 }
 0x1e7   : > { %v4230_v7 = vadd.f32 %v846_v50, %v3708_v61  ;;  %v848_v28 = vpop.f32.mrb[66].mxu0  ;;  %v1081_v57 = vpop.f32.mrb[66].mxu1  ;;  %1729 = vmax.xlane.f32.xlu0 %v1728_v38  ;;  %v1733_v21 = vmax.f32 %v1732_v54, %v4219_v0  ;;  %v4242_v3 = vadd.f32 %v1079_v46, %v3719_v6 }
 0x1e8   : > { %6507 = vst [vmem:[#allocation97_spill] sm:$0xff] %v4224_v40  ;;  %6508 = vst [vmem:[#allocation98_spill] sm:$0xff] %v4227_v55  ;;  %v4234_v43 = vadd.f32 %v848_v28, %v3704_v59  ;;  %v850_v19 = vpop.f32.mrb[67].mxu0  ;;  %v1083_v16 = vpop.f32.mrb[67].mxu1  ;;  %v4245_v50 = vadd.f32 %v1081_v57, %v3706_v60 }
 0x1e9   : > { %6509 = vst [vmem:[#allocation99_spill] sm:$0xff] %v4230_v7  ;;  %v1736_v24 = vmax.f32 %v4224_v40, %v4230_v7  ;;  %v4239_v29 = vadd.f32 %v850_v19, %v3708_v61  ;;  %1734 = vmax.xlane.f32.xlu1 %v1733_v21  ;;  %6512 = vst [vmem:[#allocation102_spill] sm:$0xff] %v4242_v3  ;;  %v4251_v28 = vadd.f32 %v1083_v16, %v3719_v6 }
 0x1ea   : > { %6510 = vst [vmem:[#allocation100_spill] sm:$0xff] %v4234_v43  ;;  %6513 = vst [vmem:[#allocation103_spill] sm:$0xff] %v4245_v50 }
 0x1eb   : > { %6511 = vst [vmem:[#allocation101_spill] sm:$0xff] %v4239_v29  ;;  %v1741_v38 = vmax.f32 %v4234_v43, %v4239_v29  ;;  %v1737_v54 = vmax.f32 %v1736_v24, %v4227_v55  ;;  %6514 = vst [vmem:[#allocation104_spill] sm:$0xff] %v4251_v28 }
 0x1ed   : > { %v854_v0 = vpop.f32.mrb[68].mxu0  ;;  %v1087_v7 = vpop.f32.mrb[68].mxu1  ;;  %v1738_v19 = vmax.f32 %v1737_v54, %v4242_v3  ;;  %v1742_v21 = vmax.f32 %v1741_v38, %v4245_v50 }
 0x1ee   : > { %v4256_v46 = vadd.f32 %v854_v0, %v3704_v59  ;;  %v856_v40 = vpop.f32.mrb[69].mxu0  ;;  %v1089_v57 = vpop.f32.mrb[69].mxu1  ;;  %v4259_v41 = vadd.f32 %v1087_v7, %v3706_v60 }
 0x1ef   : > { %v4262_v29 = vadd.f32 %v856_v40, %v3708_v61  ;;  %v858_v24 = vpop.f32.mrb[70].mxu0  ;;  %v1091_v16 = vpop.f32.mrb[70].mxu1  ;;  %1739 = vmax.xlane.f32.xlu0 %v1738_v19  ;;  %v1743_v43 = vmax.f32 %v1742_v21, %v4251_v28  ;;  %v4274_v7 = vadd.f32 %v1089_v57, %v3719_v6 }
 0x1f0   : > { %6515 = vst [vmem:[#allocation105_spill] sm:$0xff] %v4256_v46  ;;  %6516 = vst [vmem:[#allocation106_spill] sm:$0xff] %v4259_v41  ;;  %v4266_v54 = vadd.f32 %v858_v24, %v3704_v59  ;;  %v860_v38 = vpop.f32.mrb[71].mxu0  ;;  %v1093_v50 = vpop.f32.mrb[71].mxu1  ;;  %v4277_v40 = vadd.f32 %v1091_v16, %v3706_v60 }
 0x1f1   : > { %6517 = vst [vmem:[#allocation107_spill] sm:$0xff] %v4262_v29  ;;  %v1746_v0 = vmax.f32 %v4256_v46, %v4262_v29  ;;  %v4271_v3 = vadd.f32 %v860_v38, %v3708_v61  ;;  %1744 = vmax.xlane.f32.xlu1 %v1743_v43  ;;  %6520 = vst [vmem:[#allocation110_spill] sm:$0xff] %v4274_v7  ;;  %v4283_v24 = vadd.f32 %v1093_v50, %v3719_v6 }
 0x1f2   : > { %6518 = vst [vmem:[#allocation108_spill] sm:$0xff] %v4266_v54  ;;  %6521 = vst [vmem:[#allocation111_spill] sm:$0xff] %v4277_v40 }
 0x1f3   : > { %6519 = vst [vmem:[#allocation109_spill] sm:$0xff] %v4271_v3  ;;  %v1751_v19 = vmax.f32 %v4266_v54, %v4271_v3  ;;  %v1747_v21 = vmax.f32 %v1746_v0, %v4259_v41  ;;  %6522 = vst [vmem:[#allocation112_spill] sm:$0xff] %v4283_v24 }
 0x1f5   : > { %v864_v28 = vpop.f32.mrb[72].mxu0  ;;  %v1097_v29 = vpop.f32.mrb[72].mxu1  ;;  %v1748_v38 = vmax.f32 %v1747_v21, %v4274_v7  ;;  %v1752_v43 = vmax.f32 %v1751_v19, %v4277_v40 }
 0x1f6   : > { %v4288_v57 = vadd.f32 %v864_v28, %v3704_v59  ;;  %v866_v46 = vpop.f32.mrb[73].mxu0  ;;  %v1099_v16 = vpop.f32.mrb[73].mxu1  ;;  %v4291_v55 = vadd.f32 %v1097_v29, %v3706_v60 }
 0x1f7   : > { %v4294_v3 = vadd.f32 %v866_v46, %v3708_v61  ;;  %v868_v0 = vpop.f32.mrb[74].mxu0  ;;  %v1101_v50 = vpop.f32.mrb[74].mxu1  ;;  %1749 = vmax.xlane.f32.xlu0 %v1748_v38  ;;  %v1753_v54 = vmax.f32 %v1752_v43, %v4283_v24  ;;  %v4309_v38 = vadd.f32 %v1099_v16, %v3719_v6 }
 0x1f8   : > { %6523 = vst [vmem:[#allocation113_spill] sm:$0xff] %v4288_v57  ;;  %6524 = vst [vmem:[#allocation114_spill] sm:$0xff] %v4291_v55  ;;  %v4298_v21 = vadd.f32 %v868_v0, %v3704_v59  ;;  %v870_v19 = vpop.f32.mrb[75].mxu0  ;;  %v1103_v40 = vpop.f32.mrb[75].mxu1  ;;  %v4312_v43 = vadd.f32 %v1101_v50, %v3706_v60 }
 0x1f9   : > { %6525 = vst [vmem:[#allocation115_spill] sm:$0xff] %v4294_v3  ;;  %v1756_v28 = vmax.f32 %v4288_v57, %v4294_v3  ;;  %v4303_v7 = vadd.f32 %v870_v19, %v3708_v61  ;;  %1754 = vmax.xlane.f32.xlu1 %v1753_v54  ;;  %v4327_v16 = vadd.f32 %v1103_v40, %v3719_v6 }
 0x1fa   : > { %6526 = vst [vmem:[#allocation116_spill] sm:$0xff] %v4298_v21 }
 0x1fb   : > { %6527 = vst [vmem:[#allocation117_spill] sm:$0xff] %v4303_v7  ;;  %v1761_v29 = vmax.f32 %v4298_v21, %v4303_v7  ;;  %v1757_v46 = vmax.f32 %v1756_v28, %v4291_v55 }
 0x1fc   : > { %v1120_v0 = vpop.xlane.xlu0 %1119 }
 0x1fd   : > { %v4315_v24 = vsub.f32 %v3711_v1, %v1120_v0  ;;  %v4318_v3 = vsub.f32 %v3717_v5, %v1120_v0  ;;  %v4321_v54 = vsub.f32 %v3714_v4, %v1120_v0  ;;  %v4324_v19 = vsub.f32 %v3730_v14, %v1120_v0  ;;  %v874_v28 = vpop.f32.mrb[76].mxu0  ;;  %v1107_v7 = vpop.f32.mrb[76].mxu1 }
 0x1fe   : > { %v4330_v50 = vadd.f32 %v874_v28, %v3704_v59  ;;  %v876_v21 = vpop.f32.mrb[77].mxu0  ;;  %v1109_v1 = vpop.f32.mrb[77].mxu1  ;;  %v1758_v55 = vmax.f32 %v1757_v46, %v4309_v38  ;;  %v1762_v5 = vmax.f32 %v1761_v29, %v4312_v43  ;;  %v4342_v28 = vadd.f32 %v1107_v7, %v3706_v60 }
 0x1ff   : > { %6528 = vst [vmem:[#allocation118_spill] sm:$0xff] %v4318_v3  ;;  %6529 = vst [vmem:[#allocation119_spill] sm:$0xff] %v4321_v54  ;;  %v1296_v4 = vmul.f32 1.442695, %v4315_v24  ;;  %v1298_v57 = vmul.f32 1.442695, %v4318_v3  ;;  %v4338_v0 = vadd.f32 %v876_v21, %v3708_v61 }
 0x200   : > { %6530 = vst [vmem:[#allocation120_spill] sm:$0xff] %v4324_v19  ;;  %v1300_v14 = vmul.f32 1.442695, %v4321_v54  ;;  %v1302_v40 = vmul.f32 1.442695, %v4324_v19  ;;  %v878_v41 = vpop.f32.mrb[78].mxu0  ;;  %1759 = vmax.xlane.f32.xlu0 %v1758_v55  ;;  %v1763_v46 = vmax.f32 %v1762_v5, %v4327_v16  ;;  %v4351_v19 = vadd.f32 %v1109_v1, %v3719_v6  ;;  %v1125_v5 = vpop.xlane.xlu0 %1124 }
 0x201   : > { %v1111_v42 = vpop.f32.mrb[78].mxu1  ;;  %2853 = vpow2.f32 %v1296_v4  ;;  %v1766_v29 = vmax.f32 %v4330_v50, %v4338_v0  ;;  %v4348_v3 = vadd.f32 %v878_v41, %v3704_v59  ;;  %v880_v54 = vpop.f32.mrb[79].mxu0  ;;  %v4360_v4 = vsub.f32 %v3722_v9, %v1125_v5 }
 0x202   : > { %v1113_v21 = vpop.f32.mrb[79].mxu1  ;;  %2855 = vpow2.f32 %v1298_v57  ;;  %v4354_v7 = vadd.f32 %v1111_v42, %v3706_v60  ;;  %v4357_v55 = vadd.f32 %v880_v54, %v3708_v61  ;;  %1764 = vmax.xlane.f32.xlu1 %v1763_v46  ;;  %v4363_v59 = vsub.f32 %v3727_v13, %v1125_v5 }
 0x203   : > { %2857 = vpow2.f32 %v1300_v14  ;;  %v4366_v41 = vsub.f32 %v3733_v15, %v1125_v5  ;;  %v4371_v42 = vsub.f32 %v3744_v25, %v1125_v5  ;;  %v1767_v57 = vmax.f32 %v1766_v29, %v4342_v28 }
 0x204   : > { %2859 = vpow2.f32 %v1302_v40  ;;  %v1771_v60 = vmax.f32 %v4348_v3, %v4357_v55  ;;  %v1130_v61 = vpop.xlane.xlu1 %1129  ;;  %v1304_v54 = vmul.f32 1.442695, %v4360_v4  ;;  %v1306_v9 = vmul.f32 1.442695, %v4363_v59 }
 0x205   : > { %6531 = vst [vmem:[#allocation121_spill] sm:$0xff] %v4371_v42  ;;  %v1308_v13 = vmul.f32 1.442695, %v4366_v41  ;;  %v4378_v1 = vsub.f32 %v3741_v22, %v1130_v61  ;;  %v1310_v15 = vmul.f32 1.442695, %v4371_v42  ;;  %v4382_v14 = vsub.f32 %v3750_v27, %v1130_v61 }
 0x206   : > { %v4385_v25 = vsub.f32 %v3747_v26, %v1130_v61  ;;  %v4388_v40 = vsub.f32 %v3762_v36, %v1130_v61  ;;  %2861 = vpow2.f32 %v1304_v54  ;;  %v1768_v29 = vmax.f32 %v1767_v57, %v4351_v19 }
 0x207   : > { %v1312_v46 = vmul.f32 1.442695, %v4378_v1  ;;  %v1772_v5 = vmax.f32 %v1771_v60, %v4354_v7  ;;  %v4394_v22 = vadd.f32 %v1113_v21, %v3719_v6  ;;  %2863 = vpow2.f32 %v1306_v9 }
 0x208   : > { %v1314_v27 = vmul.f32 1.442695, %v4382_v14  ;;  %v1316_v42 = vmul.f32 1.442695, %v4385_v25  ;;  %v1135_v26 = vpop.xlane.xlu1 %1134  ;;  %2865 = vpow2.f32 %v1308_v13  ;;  %1769 = vmax.xlane.f32.xlu0 %v1768_v29  ;;  %v1318_v6 = vmul.f32 1.442695, %v4388_v40 }
 0x209   : > { %v4399_v36 = vsub.f32 %v3753_v30, %v1135_v26  ;;  %v4402_v61 = vsub.f32 %v3758_v34, %v1135_v26  ;;  %v4405_v57 = vsub.f32 %v3765_v37, %v1135_v26  ;;  %2867 = vpow2.f32 %v1310_v15 }
 0x20a   : > { %v4409_v21 = vsub.f32 %v3776_v47, %v1135_v26  ;;  %v1773_v60 = vmax.f32 %v1772_v5, %v4394_v22  ;;  %2869 = vpow2.f32 %v1312_v46 }
 0x20b   : > { %v4412_v54 = vpop.eup %2853  ;;  %v1320_v30 = vmul.f32 1.442695, %v4399_v36  ;;  %2871 = vpow2.f32 %v1314_v27  ;;  %v1322_v34 = vmul.f32 1.442695, %v4402_v61  ;;  %v1324_v37 = vmul.f32 1.442695, %v4405_v57 }
 0x20c   : > { %6532 = vst [vmem:[#allocation122_spill] sm:$0xff] %v4409_v21  ;;  %6533 = vst [vmem:[#allocation123_spill] sm:$0xff] %v4412_v54  ;;  %v4415_v9 = vpop.eup %2855  ;;  %1774 = vmax.xlane.f32.xlu1 %v1773_v60  ;;  %v1140_v13 = vpop.xlane.xlu0 %1139  ;;  %2873 = vpow2.f32 %v1316_v42  ;;  %v1326_v27 = vmul.f32 1.442695, %v4409_v21 }
 0x20d   : > { %6534 = vst [vmem:[#allocation124_spill] sm:$0xff] %v4415_v9  ;;  %v4419_v15 = vpop.eup %2857  ;;  %v4422_v47 = vsub.f32 %v3773_v44, %v1140_v13  ;;  %v4425_v29 = vsub.f32 %v3782_v49, %v1140_v13  ;;  %v4428_v46 = vsub.f32 %v3779_v48, %v1140_v13  ;;  %2875 = vpow2.f32 %v1318_v6 }
 0x20e   : > { %6535 = vst [vmem:[#allocation125_spill] sm:$0xff] %v4419_v15  ;;  %v4430_v5 = vpop.eup %2859  ;;  %v4434_v26 = vsub.f32 %v3794_v58, %v1140_v13  ;;  %v1145_v60 = vpop.xlane.xlu1 %1144  ;;  %v1456_v42 = vadd.f32 %v4415_v9, %v4412_v54  ;;  %2877 = vpow2.f32 %v1320_v30 }
 0x20f   : > { %6536 = vst [vmem:[#allocation126_spill] sm:$0xff] %v4428_v46  ;;  %6537 = vst [vmem:[#allocation127_spill] sm:$0xff] %v4430_v5  ;;  %v1328_v44 = vmul.f32 1.442695, %v4422_v47  ;;  %2879 = vpow2.f32 %v1322_v34  ;;  %v1330_v49 = vmul.f32 1.442695, %v4425_v29  ;;  %v4441_v48 = vsub.f32 %v3785_v52, %v1145_v60 }
 0x210   : > { %v4444_v6 = vsub.f32 %v3790_v56, %v1145_v60  ;;  %v4446_v21 = vpop.eup %2861  ;;  %2881 = vpow2.f32 %v1324_v37  ;;  %v1332_v58 = vmul.f32 1.442695, %v4428_v46  ;;  %v4450_v13 = vsub.f32 %v3797_v62, %v1145_v60 }
 0x211   : > { %6538 = vst [vmem:[#allocation128_spill] sm:$0xff] %v4446_v21  ;;  %v1457_v30 = vadd.f32 %v4419_v15, %v1456_v42  ;;  %v4453_v9 = vpop.eup %2863  ;;  %2883 = vpow2.f32 %v1326_v27  ;;  %v1334_v34 = vmul.f32 1.442695, %v4434_v26  ;;  %v4457_v52 = vsub.f32 %v3803_v2, %v1145_v60 }
 0x212   : > { %6539 = vst [vmem:[#allocation129_spill] sm:$0xff] %v4453_v9  ;;  %v4459_v56 = vpop.eup %2865  ;;  %2885 = vpow2.f32 %v1328_v44  ;;  %v1336_v37 = vmul.f32 1.442695, %v4441_v48  ;;  %v1338_v62 = vmul.f32 1.442695, %v4444_v6  ;;  %v1461_v15 = vadd.f32 %v4453_v9, %v4446_v21 }
 0x213   : > { %6540 = vst [vmem:[#allocation130_spill] sm:$0xff] %v4457_v52  ;;  %6541 = vst [vmem:[#allocation131_spill] sm:$0xff] %v4459_v56  ;;  %v1458_v54 = vadd.f32 %v4430_v5, %v1457_v30  ;;  %v4463_v46 = vpop.eup %2867  ;;  %2887 = vpow2.f32 %v1330_v49  ;;  %v1340_v42 = vmul.f32 1.442695, %v4450_v13  ;;  %v1342_v5 = vmul.f32 1.442695, %v4457_v52 }
 0x214   : > { %6542 = vst [vmem:[#allocation132_spill] sm:$0xff] %v4463_v46  ;;  %v1150_v27 = vpop.xlane.xlu0 %1149  ;;  %v4469_v2 = vpop.eup %2869  ;;  %2889 = vpow2.f32 %v1332_v58 }
 0x215   : > { %6543 = vst [vmem:[#allocation133_spill] sm:$0xff] %v4469_v2  ;;  %1459 = vadd.xlane.f32.xlu0 %v1458_v54  ;;  %v4472_v60 = vsub.f32 %v3808_v11, %v1150_v27  ;;  %v4475_v44 = vsub.f32 %v3814_v18, %v1150_v27  ;;  %v4478_v49 = vsub.f32 %v3811_v17, %v1150_v27  ;;  %v4480_v30 = vpop.eup %2871  ;;  %2891 = vpow2.f32 %v1334_v34 }
 0x216   : > { %6545 = vst [vmem:[#allocation135_spill] sm:$0xff] %v4480_v30  ;;  %v4484_v9 = vsub.f32 %v3826_v32, %v1150_v27  ;;  %v1155_v21 = vpop.xlane.xlu1 %1154  ;;  %v1462_v54 = vadd.f32 %v4459_v56, %v1461_v15  ;;  %v4487_v58 = vpop.eup %2873  ;;  %2893 = vpow2.f32 %v1336_v37 }
 0x217   : > { %6544 = vst [vmem:[#allocation134_spill] sm:$0xff] %v4478_v49  ;;  %6546 = vst [vmem:[#allocation136_spill] sm:$0xff] %v4487_v58  ;;  %v1344_v11 = vmul.f32 1.442695, %v4472_v60  ;;  %v1346_v18 = vmul.f32 1.442695, %v4475_v44  ;;  %v4491_v17 = vpop.eup %2875  ;;  %2895 = vpow2.f32 %v1338_v62  ;;  %v4495_v52 = vsub.f32 %v3818_v23, %v1155_v21 }
 0x218   : > { %6547 = vst [vmem:[#allocation137_spill] sm:$0xff] %v4491_v17  ;;  %v1348_v34 = vmul.f32 1.442695, %v4478_v49  ;;  %v4498_v32 = vsub.f32 %v3823_v31, %v1155_v21  ;;  %v4500_v27 = vpop.eup %2877  ;;  %2897 = vpow2.f32 %v1340_v42  ;;  %v4503_v15 = vsub.f32 %v3829_v33, %v1155_v21 }
 0x219   : > { %6548 = vst [vmem:[#allocation138_spill] sm:$0xff] %v4500_v27  ;;  %v4506_v37 = vsub.f32 %v3835_v39, %v1155_v21  ;;  %v1463_v56 = vadd.f32 %v4463_v46, %v1462_v54  ;;  %v4509_v62 = vpop.eup %2879  ;;  %2899 = vpow2.f32 %v1342_v5  ;;  %v1350_v23 = vmul.f32 1.442695, %v4484_v9 }
 0x21a   : > { %6550 = vst [vmem:[#allocation140_spill] sm:$0xff] %v4509_v62  ;;  %v1466_v31 = vadd.f32 %v4480_v30, %v4469_v2  ;;  %v4514_v49 = vpop.eup %2881  ;;  %2901 = vpow2.f32 %v1344_v11  ;;  %v1352_v42 = vmul.f32 1.442695, %v4495_v52  ;;  %v1354_v33 = vmul.f32 1.442695, %v4498_v32 }
 0x21b   : > { %6549 = vst [vmem:[#allocation139_spill] sm:$0xff] %v4506_v37  ;;  %6551 = vst [vmem:[#allocation141_spill] sm:$0xff] %v4514_v49  ;;  %1464 = vadd.xlane.f32.xlu1 %v1463_v56  ;;  %v1471_v39 = vadd.f32 %v4509_v62, %v4500_v27  ;;  %v4520_v21 = vpop.eup %2883  ;;  %2903 = vpow2.f32 %v1346_v18  ;;  %v1356_v5 = vmul.f32 1.442695, %v4503_v15  ;;  %v1358_v54 = vmul.f32 1.442695, %v4506_v37 }
 0x21c   : > { %6552 = vst [vmem:[#allocation142_spill] sm:$0xff] %v4520_v21  ;;  %v1467_v30 = vadd.f32 %v4487_v58, %v1466_v31  ;;  %v1160_v2 = vpop.xlane.xlu0 %1159  ;;  %v4525_v46 = vpop.eup %2885  ;;  %2905 = vpow2.f32 %v1348_v34 }
 0x21d   : > { %6553 = vst [vmem:[#allocation143_spill] sm:$0xff] %v4525_v46  ;;  %v4528_v11 = vsub.f32 %v3840_v45, %v1160_v2  ;;  %v4531_v56 = vsub.f32 %v3846_v53, %v1160_v2  ;;  %v4534_v62 = vsub.f32 %v3843_v51, %v1160_v2  ;;  %v4536_v18 = vpop.eup %2887  ;;  %2907 = vpow2.f32 %v1350_v23 }
 0x21e   : > { %6556 = vst [vmem:[#allocation146_spill] sm:$0xff] %v4536_v18  ;;  %v1468_v27 = vadd.f32 %v4491_v17, %v1467_v30  ;;  %v4540_v31 = vsub.f32 %v3858_v10, %v1160_v2  ;;  %v1165_v58 = vpop.xlane.xlu1 %1164  ;;  %v1472_v34 = vadd.f32 %v4514_v49, %v1471_v39  ;;  %v4543_v37 = vpop.eup %2889  ;;  %2909 = vpow2.f32 %v1352_v42  ;;  %v6570_v17 = vld [vmem:[#allocation11_spill] sm:$0xff] }
 0x21f   : > { %6554 = vst [vmem:[#allocation144_spill] sm:$0xff] %v4531_v56  ;;  %6555 = vst [vmem:[#allocation145_spill] sm:$0xff] %v4534_v62  ;;  %v1360_v45 = vmul.f32 1.442695, %v4528_v11  ;;  %v1362_v53 = vmul.f32 1.442695, %v4531_v56  ;;  %v4547_v51 = vpop.eup %2891  ;;  %2911 = vpow2.f32 %v1354_v33  ;;  %v4551_v30 = vsub.f32 %v3850_v63, %v1165_v58 }
 0x220   : > { %6557 = vst [vmem:[#allocation147_spill] sm:$0xff] %v4540_v31  ;;  %6558 = vst [vmem:[#allocation148_spill] sm:$0xff] %v4543_v37  ;;  %1469 = vadd.xlane.f32.xlu0 %v1468_v27  ;;  %v1364_v23 = vmul.f32 1.442695, %v4534_v62  ;;  %v4554_v10 = vsub.f32 %v3855_v8, %v1165_v58  ;;  %v4556_v2 = vpop.eup %2893  ;;  %2913 = vpow2.f32 %v1356_v5  ;;  %v4559_v42 = vsub.f32 %v3861_v12, %v1165_v58  ;;  %v6757_v62 = vld [vmem:[#allocation78_spill] sm:$0xff] }
 0x221   : > { %6559 = vst [vmem:[#allocation149_spill] sm:$0xff] %v4547_v51  ;;  %6560 = vst [vmem:[#allocation150_spill] sm:$0xff] %v4551_v30  ;;  %v4562_v39 = vsub.f32 %v3867_v20, %v1165_v58  ;;  %v1473_v33 = vadd.f32 %v4520_v21, %v1472_v34  ;;  %v4565_v27 = vpop.eup %2895  ;;  %2915 = vpow2.f32 %v1358_v54  ;;  %v1366_v63 = vmul.f32 1.442695, %v4540_v31 }
 0x222   : > { %6561 = vst [vmem:[#allocation151_spill] sm:$0xff] %v4554_v10  ;;  %6562 = vst [vmem:[#allocation152_spill] sm:$0xff] %v4556_v2  ;;  %v1476_v8 = vadd.f32 %v4536_v18, %v4525_v46  ;;  %v4570_v49 = vpop.eup %2897  ;;  %2917 = vpow2.f32 %v1360_v45  ;;  %v1368_v5 = vmul.f32 1.442695, %v4551_v30  ;;  %v1370_v12 = vmul.f32 1.442695, %v4554_v10 }
 0x223   : > { %6563 = vst [vmem:[#allocation153_spill] sm:$0xff] %v4559_v42  ;;  %6564 = vst [vmem:[#allocation154_spill] sm:$0xff] %v4562_v39  ;;  %1474 = vadd.xlane.f32.xlu1 %v1473_v33  ;;  %v1481_v20 = vadd.f32 %v4565_v27, %v4556_v2  ;;  %v4576_v58 = vpop.eup %2899  ;;  %2919 = vpow2.f32 %v1362_v53  ;;  %v1372_v54 = vmul.f32 1.442695, %v4559_v42  ;;  %v1374_v34 = vmul.f32 1.442695, %v4562_v39 }
 0x224   : > { %6565 = vst [vmem:[#allocation155_spill] sm:$0xff] %v4565_v27  ;;  %6566 = vst [vmem:[#allocation156_spill] sm:$0xff] %v4570_v49  ;;  %v1477_v18 = vadd.f32 %v4543_v37, %v1476_v8  ;;  %v1170_v46 = vpop.xlane.xlu0 %1169  ;;  %v4581_v21 = vpop.eup %2901  ;;  %2921 = vpow2.f32 %v1364_v23  ;;  %v6573_v39 = vld [vmem:[#allocation10_spill] sm:$0xff] }
 0x225   : > { %6567 = vst [vmem:[#allocation157_spill] sm:$0xff] %v4576_v58  ;;  %6568 = vst [vmem:[#allocation158_spill] sm:$0xff] %v4581_v21  ;;  %v1482_v45 = vadd.f32 %v4570_v49, %v1481_v20  ;;  %v4585_v33 = vsub.f32 %v3872_v35, %v1170_v46  ;;  %v4588_v27 = vsub.f32 %v6570_v17, %v1170_v46  ;;  %v4590_v2 = vpop.eup %2903  ;;  %2923 = vpow2.f32 %v1366_v63  ;;  %v6575_v8 = vld [vmem:[#allocation14_spill] sm:$0xff]  ;;  %v6579_v63 = vld [vmem:[#allocation12_spill] sm:$0xff] }
 0x226   : > { %6572 = vst [vmem:[#allocation160_spill] sm:$0xff] %v4590_v2  ;;  %v1478_v53 = vadd.f32 %v4547_v51, %v1477_v18  ;;  %v4594_v42 = vsub.f32 %v6573_v39, %v1170_v46  ;;  %v4597_v37 = vsub.f32 %v6575_v8, %v1170_v46  ;;  %v1175_v23 = vpop.xlane.xlu1 %1174  ;;  %v4599_v10 = vpop.eup %2905  ;;  %2925 = vpow2.f32 %v1368_v5  ;;  %v6582_v5 = vld [vmem:[#allocation13_spill] sm:$0xff]  ;;  %v6586_v51 = vld [vmem:[#allocation16_spill] sm:$0xff] }
 0x227   : > { %6569 = vst [vmem:[#allocation159_spill] sm:$0xff] %v4585_v33  ;;  %6571 = vst [vmem:[#allocation11_spill] sm:$0xff] %v4588_v27  ;;  %v1483_v35 = vadd.f32 %v4576_v58, %v1482_v45  ;;  %v1376_v17 = vmul.f32 1.442695, %v4585_v33  ;;  %v4603_v20 = vpop.eup %2907  ;;  %2927 = vpow2.f32 %v1370_v12  ;;  %v1378_v18 = vmul.f32 1.442695, %v4588_v27 }
 0x228   : > { %6574 = vst [vmem:[#allocation10_spill] sm:$0xff] %v4594_v42  ;;  %6576 = vst [vmem:[#allocation14_spill] sm:$0xff] %v4597_v37  ;;  %1479 = vadd.xlane.f32.xlu0 %v1478_v53  ;;  %v1380_v39 = vmul.f32 1.442695, %v4594_v42  ;;  %v4608_v49 = vsub.f32 %v6579_v63, %v1175_v23  ;;  %v4610_v46 = vpop.eup %2909  ;;  %2929 = vpow2.f32 %v1372_v54  ;;  %v4613_v8 = vsub.f32 %v6582_v5, %v1175_v23  ;;  %v6584_v45 = vld [vmem:[#allocation15_spill] sm:$0xff] }
 0x229   : > { %6577 = vst [vmem:[#allocation161_spill] sm:$0xff] %v4599_v10  ;;  %6578 = vst [vmem:[#allocation162_spill] sm:$0xff] %v4603_v20  ;;  %1484 = vadd.xlane.f32.xlu1 %v1483_v35  ;;  %v4616_v58 = vsub.f32 %v6584_v45, %v1175_v23  ;;  %v4619_v12 = vsub.f32 %v6586_v51, %v1175_v23  ;;  %v4621_v53 = vpop.eup %2911  ;;  %2931 = vpow2.f32 %v1374_v34  ;;  %v1382_v42 = vmul.f32 1.442695, %v4597_v37 }
 0x22a   : > { %6580 = vst [vmem:[#allocation12_spill] sm:$0xff] %v4608_v49  ;;  %6581 = vst [vmem:[#allocation163_spill] sm:$0xff] %v4610_v46  ;;  %v1486_v63 = vadd.f32 %v4590_v2, %v4581_v21  ;;  %v4626_v27 = vpop.eup %2913  ;;  %2933 = vpow2.f32 %v1376_v17  ;;  %v1384_v54 = vmul.f32 1.442695, %v4608_v49  ;;  %v1386_v35 = vmul.f32 1.442695, %v4613_v8 }
 0x22b   : > { %6583 = vst [vmem:[#allocation13_spill] sm:$0xff] %v4613_v8  ;;  %6585 = vst [vmem:[#allocation15_spill] sm:$0xff] %v4616_v58  ;;  %v1388_v5 = vmul.f32 1.442695, %v4616_v58  ;;  %v4631_v45 = vpop.eup %2915  ;;  %2935 = vpow2.f32 %v1378_v18  ;;  %v1390_v51 = vmul.f32 1.442695, %v4619_v12  ;;  %v1491_v23 = vadd.f32 %v4621_v53, %v4610_v46 }
 0x22c   : > { %6587 = vst [vmem:[#allocation16_spill] sm:$0xff] %v4619_v12  ;;  %6588 = vst [vmem:[#allocation164_spill] sm:$0xff] %v4621_v53  ;;  %v1487_v34 = vadd.f32 %v4599_v10, %v1486_v63  ;;  %v1180_v2 = vpop.xlane.xlu0 %1179  ;;  %v4637_v21 = vpop.eup %2917  ;;  %2937 = vpow2.f32 %v1380_v39  ;;  %v6592_v17 = vld [vmem:[#allocation17_spill] sm:$0xff]  ;;  %v6594_v8 = vld [vmem:[#allocation19_spill] sm:$0xff] }
 0x22d   : > { %6589 = vst [vmem:[#allocation165_spill] sm:$0xff] %v4626_v27  ;;  %6590 = vst [vmem:[#allocation166_spill] sm:$0xff] %v4631_v45  ;;  %v4640_v49 = vsub.f32 %v6592_v17, %v1180_v2  ;;  %v4643_v37 = vsub.f32 %v6594_v8, %v1180_v2  ;;  %v6596_v58 = vld [vmem:[#allocation18_spill] sm:$0xff]  ;;  %v4648_v18 = vpop.eup %2919  ;;  %2939 = vpow2.f32 %v1382_v42  ;;  %v1492_v53 = vadd.f32 %v4626_v27, %v1491_v23  ;;  %v6603_v23 = vld [vmem:[#allocation20_spill] sm:$0xff] }
 0x22e   : > { %6591 = vst [vmem:[#allocation167_spill] sm:$0xff] %v4637_v21  ;;  %v4646_v33 = vsub.f32 %v6596_v58, %v1180_v2  ;;  %6598 = vst [vmem:[#allocation168_spill] sm:$0xff] %v4648_v18  ;;  %v1488_v63 = vadd.f32 %v4603_v20, %v1487_v34  ;;  %v6599_v46 = vld [vmem:[#allocation22_spill] sm:$0xff]  ;;  %v1185_v39 = vpop.xlane.xlu1 %1184  ;;  %v4655_v12 = vpop.eup %2921  ;;  %2941 = vpow2.f32 %v1384_v54  ;;  %v6608_v20 = vld [vmem:[#allocation23_spill] sm:$0xff] }
 0x22f   : > { %6593 = vst [vmem:[#allocation17_spill] sm:$0xff] %v4640_v49  ;;  %6595 = vst [vmem:[#allocation19_spill] sm:$0xff] %v4643_v37  ;;  %v4653_v10 = vsub.f32 %v6599_v46, %v1180_v2  ;;  %v1392_v8 = vmul.f32 1.442695, %v4640_v49  ;;  %v1394_v17 = vmul.f32 1.442695, %v4643_v37  ;;  %v4659_v58 = vpop.eup %2923  ;;  %2943 = vpow2.f32 %v1386_v35 }
 0x230   : > { %6597 = vst [vmem:[#allocation18_spill] sm:$0xff] %v4646_v33  ;;  %6601 = vst [vmem:[#allocation169_spill] sm:$0xff] %v4655_v12  ;;  %1489 = vadd.xlane.f32.xlu0 %v1488_v63  ;;  %v1493_v42 = vadd.f32 %v4631_v45, %v1492_v53  ;;  %v1396_v34 = vmul.f32 1.442695, %v4646_v33  ;;  %v4664_v27 = vsub.f32 %v6603_v23, %v1185_v39  ;;  %v4666_v2 = vpop.eup %2925  ;;  %2945 = vpow2.f32 %v1388_v5  ;;  %v6606_v46 = vld [vmem:[#allocation21_spill] sm:$0xff]  ;;  %v6610_v37 = vld [vmem:[#allocation24_spill] sm:$0xff] }
 0x231   : > { %6600 = vst [vmem:[#allocation22_spill] sm:$0xff] %v4653_v10  ;;  %6602 = vst [vmem:[#allocation170_spill] sm:$0xff] %v4659_v58  ;;  %v4669_v54 = vsub.f32 %v6606_v46, %v1185_v39  ;;  %v4672_v49 = vsub.f32 %v6608_v20, %v1185_v39  ;;  %v4675_v30 = vsub.f32 %v6610_v37, %v1185_v39  ;;  %v4677_v35 = vpop.eup %2927  ;;  %2947 = vpow2.f32 %v1390_v51 }
 0x232   : > { %6604 = vst [vmem:[#allocation20_spill] sm:$0xff] %v4664_v27  ;;  %6605 = vst [vmem:[#allocation171_spill] sm:$0xff] %v4666_v2  ;;  %1494 = vadd.xlane.f32.xlu1 %v1493_v42  ;;  %v1398_v53 = vmul.f32 1.442695, %v4653_v10  ;;  %v1496_v63 = vadd.f32 %v4648_v18, %v4637_v21  ;;  %v4682_v23 = vpop.eup %2929  ;;  %2949 = vpow2.f32 %v1392_v8  ;;  %v1400_v5 = vmul.f32 1.442695, %v4664_v27 }
 0x233   : > { %6607 = vst [vmem:[#allocation21_spill] sm:$0xff] %v4669_v54  ;;  %6609 = vst [vmem:[#allocation23_spill] sm:$0xff] %v4672_v49  ;;  %v1402_v20 = vmul.f32 1.442695, %v4669_v54  ;;  %v1404_v46 = vmul.f32 1.442695, %v4672_v49  ;;  %v4687_v37 = vpop.eup %2931  ;;  %2951 = vpow2.f32 %v1394_v17  ;;  %v1501_v42 = vadd.f32 %v4677_v35, %v4666_v2 }
 0x234   : > { %6611 = vst [vmem:[#allocation24_spill] sm:$0xff] %v4675_v30  ;;  %6612 = vst [vmem:[#allocation172_spill] sm:$0xff] %v4677_v35  ;;  %v1406_v51 = vmul.f32 1.442695, %v4675_v30  ;;  %v1497_v39 = vadd.f32 %v4655_v12, %v1496_v63  ;;  %v1190_v18 = vpop.xlane.xlu0 %1189  ;;  %v4693_v21 = vpop.eup %2933  ;;  %2953 = vpow2.f32 %v1396_v34  ;;  %v6616_v8 = vld [vmem:[#allocation25_spill] sm:$0xff]  ;;  %v6618_v54 = vld [vmem:[#allocation27_spill] sm:$0xff] }
 0x235   : > { %6613 = vst [vmem:[#allocation173_spill] sm:$0xff] %v4682_v23  ;;  %6614 = vst [vmem:[#allocation174_spill] sm:$0xff] %v4687_v37  ;;  %v4696_v45 = vsub.f32 %v6616_v8, %v1190_v18  ;;  %v4699_v27 = vsub.f32 %v6618_v54, %v1190_v18  ;;  %v6620_v49 = vld [vmem:[#allocation26_spill] sm:$0xff]  ;;  %v4704_v17 = vpop.eup %2935  ;;  %2955 = vpow2.f32 %v1398_v53  ;;  %v1502_v35 = vadd.f32 %v4682_v23, %v1501_v42  ;;  %v6627_v42 = vld [vmem:[#allocation28_spill] sm:$0xff] }
 0x236   : > { %6615 = vst [vmem:[#allocation175_spill] sm:$0xff] %v4693_v21  ;;  %v4702_v10 = vsub.f32 %v6620_v49, %v1190_v18  ;;  %6622 = vst [vmem:[#allocation176_spill] sm:$0xff] %v4704_v17  ;;  %v1498_v63 = vadd.f32 %v4659_v58, %v1497_v39  ;;  %v6623_v2 = vld [vmem:[#allocation30_spill] sm:$0xff]  ;;  %v1195_v34 = vpop.xlane.xlu1 %1194  ;;  %v4711_v30 = vpop.eup %2937  ;;  %2957 = vpow2.f32 %v1400_v5  ;;  %v6632_v58 = vld [vmem:[#allocation31_spill] sm:$0xff] }
 0x237   : > { %6617 = vst [vmem:[#allocation25_spill] sm:$0xff] %v4696_v45  ;;  %6619 = vst [vmem:[#allocation27_spill] sm:$0xff] %v4699_v27  ;;  %v4709_v12 = vsub.f32 %v6623_v2, %v1190_v18  ;;  %v1408_v54 = vmul.f32 1.442695, %v4696_v45  ;;  %v1410_v8 = vmul.f32 1.442695, %v4699_v27  ;;  %v4715_v49 = vpop.eup %2939  ;;  %2959 = vpow2.f32 %v1402_v20 }
 0x238   : > { %6621 = vst [vmem:[#allocation26_spill] sm:$0xff] %v4702_v10  ;;  %6625 = vst [vmem:[#allocation177_spill] sm:$0xff] %v4711_v30  ;;  %1499 = vadd.xlane.f32.xlu0 %v1498_v63  ;;  %v1503_v53 = vadd.f32 %v4687_v37, %v1502_v35  ;;  %v1412_v39 = vmul.f32 1.442695, %v4702_v10  ;;  %v4720_v23 = vsub.f32 %v6627_v42, %v1195_v34  ;;  %v4722_v18 = vpop.eup %2941  ;;  %2961 = vpow2.f32 %v1404_v46  ;;  %v6630_v2 = vld [vmem:[#allocation29_spill] sm:$0xff]  ;;  %v6634_v27 = vld [vmem:[#allocation32_spill] sm:$0xff] }
 0x239   : > { %6624 = vst [vmem:[#allocation30_spill] sm:$0xff] %v4709_v12  ;;  %6626 = vst [vmem:[#allocation178_spill] sm:$0xff] %v4715_v49  ;;  %v4725_v5 = vsub.f32 %v6630_v2, %v1195_v34  ;;  %v4728_v45 = vsub.f32 %v6632_v58, %v1195_v34  ;;  %v4731_v33 = vsub.f32 %v6634_v27, %v1195_v34  ;;  %v4733_v20 = vpop.eup %2943  ;;  %2963 = vpow2.f32 %v1406_v51 }
 0x23a   : > { %6628 = vst [vmem:[#allocation28_spill] sm:$0xff] %v4720_v23  ;;  %6629 = vst [vmem:[#allocation179_spill] sm:$0xff] %v4722_v18  ;;  %1504 = vadd.xlane.f32.xlu1 %v1503_v53  ;;  %v1414_v35 = vmul.f32 1.442695, %v4709_v12  ;;  %v1506_v63 = vadd.f32 %v4704_v17, %v4693_v21  ;;  %v4738_v42 = vpop.eup %2945  ;;  %2965 = vpow2.f32 %v1408_v54  ;;  %v1416_v46 = vmul.f32 1.442695, %v4720_v23 }
 0x23b   : > { %6631 = vst [vmem:[#allocation29_spill] sm:$0xff] %v4725_v5  ;;  %6633 = vst [vmem:[#allocation31_spill] sm:$0xff] %v4728_v45  ;;  %v1418_v58 = vmul.f32 1.442695, %v4725_v5  ;;  %v1420_v2 = vmul.f32 1.442695, %v4728_v45  ;;  %v4743_v27 = vpop.eup %2947  ;;  %2967 = vpow2.f32 %v1410_v8  ;;  %v1511_v53 = vadd.f32 %v4733_v20, %v4722_v18 }
 0x23c   : > { %6635 = vst [vmem:[#allocation32_spill] sm:$0xff] %v4731_v33  ;;  %6636 = vst [vmem:[#allocation180_spill] sm:$0xff] %v4733_v20  ;;  %v1422_v51 = vmul.f32 1.442695, %v4731_v33  ;;  %v1507_v34 = vadd.f32 %v4711_v30, %v1506_v63  ;;  %v1200_v17 = vpop.xlane.xlu0 %1199  ;;  %v4749_v21 = vpop.eup %2949  ;;  %2969 = vpow2.f32 %v1412_v39  ;;  %v6640_v54 = vld [vmem:[#allocation33_spill] sm:$0xff]  ;;  %v6642_v5 = vld [vmem:[#allocation35_spill] sm:$0xff] }
 0x23d   : > { %6637 = vst [vmem:[#allocation181_spill] sm:$0xff] %v4738_v42  ;;  %6638 = vst [vmem:[#allocation182_spill] sm:$0xff] %v4743_v27  ;;  %v4752_v37 = vsub.f32 %v6640_v54, %v1200_v17  ;;  %v4755_v23 = vsub.f32 %v6642_v5, %v1200_v17  ;;  %v6644_v45 = vld [vmem:[#allocation34_spill] sm:$0xff]  ;;  %v4760_v8 = vpop.eup %2951  ;;  %2971 = vpow2.f32 %v1414_v35  ;;  %v1512_v20 = vadd.f32 %v4738_v42, %v1511_v53  ;;  %v6651_v53 = vld [vmem:[#allocation36_spill] sm:$0xff] }
 0x23e   : > { %6639 = vst [vmem:[#allocation183_spill] sm:$0xff] %v4749_v21  ;;  %v4758_v12 = vsub.f32 %v6644_v45, %v1200_v17  ;;  %6646 = vst [vmem:[#allocation184_spill] sm:$0xff] %v4760_v8  ;;  %v1508_v63 = vadd.f32 %v4715_v49, %v1507_v34  ;;  %v6647_v18 = vld [vmem:[#allocation38_spill] sm:$0xff]  ;;  %v1205_v39 = vpop.xlane.xlu1 %1204  ;;  %v4767_v33 = vpop.eup %2953  ;;  %2973 = vpow2.f32 %v1416_v46  ;;  %v6656_v49 = vld [vmem:[#allocation39_spill] sm:$0xff] }
 0x23f   : > { %6641 = vst [vmem:[#allocation33_spill] sm:$0xff] %v4752_v37  ;;  %6643 = vst [vmem:[#allocation35_spill] sm:$0xff] %v4755_v23  ;;  %v4765_v30 = vsub.f32 %v6647_v18, %v1200_v17  ;;  %v1424_v5 = vmul.f32 1.442695, %v4752_v37  ;;  %v1426_v54 = vmul.f32 1.442695, %v4755_v23  ;;  %v4771_v45 = vpop.eup %2955  ;;  %2975 = vpow2.f32 %v1418_v58 }
 0x240   : > { %6645 = vst [vmem:[#allocation34_spill] sm:$0xff] %v4758_v12  ;;  %6649 = vst [vmem:[#allocation185_spill] sm:$0xff] %v4767_v33  ;;  %1509 = vadd.xlane.f32.xlu0 %v1508_v63  ;;  %v1513_v35 = vadd.f32 %v4743_v27, %v1512_v20  ;;  %v1428_v34 = vmul.f32 1.442695, %v4758_v12  ;;  %v4776_v42 = vsub.f32 %v6651_v53, %v1205_v39  ;;  %v4778_v17 = vpop.eup %2957  ;;  %2977 = vpow2.f32 %v1420_v2  ;;  %v6654_v18 = vld [vmem:[#allocation37_spill] sm:$0xff]  ;;  %v6658_v23 = vld [vmem:[#allocation40_spill] sm:$0xff] }
 0x241   : > { %6648 = vst [vmem:[#allocation38_spill] sm:$0xff] %v4765_v30  ;;  %6650 = vst [vmem:[#allocation186_spill] sm:$0xff] %v4771_v45  ;;  %v4781_v46 = vsub.f32 %v6654_v18, %v1205_v39  ;;  %v4784_v37 = vsub.f32 %v6656_v49, %v1205_v39  ;;  %v4787_v10 = vsub.f32 %v6658_v23, %v1205_v39  ;;  %v4789_v58 = vpop.eup %2959  ;;  %2979 = vpow2.f32 %v1422_v51 }
 0x242   : > { %6652 = vst [vmem:[#allocation36_spill] sm:$0xff] %v4776_v42  ;;  %6653 = vst [vmem:[#allocation187_spill] sm:$0xff] %v4778_v17  ;;  %1514 = vadd.xlane.f32.xlu1 %v1513_v35  ;;  %v1430_v20 = vmul.f32 1.442695, %v4765_v30  ;;  %v1516_v63 = vadd.f32 %v4760_v8, %v4749_v21  ;;  %v4794_v53 = vpop.eup %2961  ;;  %2981 = vpow2.f32 %v1424_v5  ;;  %v1432_v2 = vmul.f32 1.442695, %v4776_v42 }
 0x243   : > { %6655 = vst [vmem:[#allocation37_spill] sm:$0xff] %v4781_v46  ;;  %6657 = vst [vmem:[#allocation39_spill] sm:$0xff] %v4784_v37  ;;  %v1434_v49 = vmul.f32 1.442695, %v4781_v46  ;;  %v1436_v18 = vmul.f32 1.442695, %v4784_v37  ;;  %v4799_v23 = vpop.eup %2963  ;;  %2983 = vpow2.f32 %v1426_v54  ;;  %v1521_v35 = vadd.f32 %v4789_v58, %v4778_v17 }
 0x244   : > { %6659 = vst [vmem:[#allocation40_spill] sm:$0xff] %v4787_v10  ;;  %6660 = vst [vmem:[#allocation188_spill] sm:$0xff] %v4789_v58  ;;  %v1438_v51 = vmul.f32 1.442695, %v4787_v10  ;;  %v1517_v39 = vadd.f32 %v4767_v33, %v1516_v63  ;;  %v1210_v8 = vpop.xlane.xlu0 %1209  ;;  %v4805_v21 = vpop.eup %2965  ;;  %2985 = vpow2.f32 %v1428_v34  ;;  %v6664_v5 = vld [vmem:[#allocation41_spill] sm:$0xff]  ;;  %v6666_v46 = vld [vmem:[#allocation43_spill] sm:$0xff] }
 0x245   : > { %6661 = vst [vmem:[#allocation189_spill] sm:$0xff] %v4794_v53  ;;  %6662 = vst [vmem:[#allocation190_spill] sm:$0xff] %v4799_v23  ;;  %v4808_v27 = vsub.f32 %v6664_v5, %v1210_v8  ;;  %v4811_v42 = vsub.f32 %v6666_v46, %v1210_v8  ;;  %v6668_v37 = vld [vmem:[#allocation42_spill] sm:$0xff]  ;;  %v4816_v54 = vpop.eup %2967  ;;  %2987 = vpow2.f32 %v1430_v20  ;;  %v1522_v58 = vadd.f32 %v4794_v53, %v1521_v35  ;;  %v6675_v35 = vld [vmem:[#allocation44_spill] sm:$0xff] }
 0x246   : > { %6663 = vst [vmem:[#allocation191_spill] sm:$0xff] %v4805_v21  ;;  %v4814_v30 = vsub.f32 %v6668_v37, %v1210_v8  ;;  %6670 = vst [vmem:[#allocation192_spill] sm:$0xff] %v4816_v54  ;;  %v1518_v63 = vadd.f32 %v4771_v45, %v1517_v39  ;;  %v6671_v17 = vld [vmem:[#allocation46_spill] sm:$0xff]  ;;  %v1215_v34 = vpop.xlane.xlu1 %1214  ;;  %v4823_v10 = vpop.eup %2969  ;;  %2989 = vpow2.f32 %v1432_v2  ;;  %v6680_v45 = vld [vmem:[#allocation47_spill] sm:$0xff] }
 0x247   : > { %6665 = vst [vmem:[#allocation41_spill] sm:$0xff] %v4808_v27  ;;  %6667 = vst [vmem:[#allocation43_spill] sm:$0xff] %v4811_v42  ;;  %v4821_v33 = vsub.f32 %v6671_v17, %v1210_v8  ;;  %v1440_v46 = vmul.f32 1.442695, %v4808_v27  ;;  %v1442_v5 = vmul.f32 1.442695, %v4811_v42  ;;  %v4827_v37 = vpop.eup %2971  ;;  %2991 = vpow2.f32 %v1434_v49 }
 0x248   : > { %6669 = vst [vmem:[#allocation42_spill] sm:$0xff] %v4814_v30  ;;  %6673 = vst [vmem:[#allocation193_spill] sm:$0xff] %v4823_v10  ;;  %1519 = vadd.xlane.f32.xlu0 %v1518_v63  ;;  %v1523_v20 = vadd.f32 %v4799_v23, %v1522_v58  ;;  %v1444_v39 = vmul.f32 1.442695, %v4814_v30  ;;  %v4832_v53 = vsub.f32 %v6675_v35, %v1215_v34  ;;  %v4834_v8 = vpop.eup %2973  ;;  %2993 = vpow2.f32 %v1436_v18  ;;  %v6678_v17 = vld [vmem:[#allocation45_spill] sm:$0xff]  ;;  %v6682_v42 = vld [vmem:[#allocation48_spill] sm:$0xff] }
 0x249   : > { %6672 = vst [vmem:[#allocation46_spill] sm:$0xff] %v4821_v33  ;;  %6674 = vst [vmem:[#allocation194_spill] sm:$0xff] %v4827_v37  ;;  %v4837_v2 = vsub.f32 %v6678_v17, %v1215_v34  ;;  %v4840_v27 = vsub.f32 %v6680_v45, %v1215_v34  ;;  %v4843_v12 = vsub.f32 %v6682_v42, %v1215_v34  ;;  %v4845_v49 = vpop.eup %2975  ;;  %2995 = vpow2.f32 %v1438_v51 }
 0x24a   : > { %6676 = vst [vmem:[#allocation44_spill] sm:$0xff] %v4832_v53  ;;  %6677 = vst [vmem:[#allocation195_spill] sm:$0xff] %v4834_v8  ;;  %1524 = vadd.xlane.f32.xlu1 %v1523_v20  ;;  %v1446_v58 = vmul.f32 1.442695, %v4821_v33  ;;  %v1526_v63 = vadd.f32 %v4816_v54, %v4805_v21  ;;  %v4850_v35 = vpop.eup %2977  ;;  %2997 = vpow2.f32 %v1440_v46  ;;  %v1448_v18 = vmul.f32 1.442695, %v4832_v53 }
 0x24b   : > { %6679 = vst [vmem:[#allocation45_spill] sm:$0xff] %v4837_v2  ;;  %6681 = vst [vmem:[#allocation47_spill] sm:$0xff] %v4840_v27  ;;  %v1450_v45 = vmul.f32 1.442695, %v4837_v2  ;;  %v1452_v17 = vmul.f32 1.442695, %v4840_v27  ;;  %v4855_v42 = vpop.eup %2979  ;;  %2999 = vpow2.f32 %v1442_v5  ;;  %v1531_v20 = vadd.f32 %v4845_v49, %v4834_v8 }
 0x24c   : > { %6683 = vst [vmem:[#allocation48_spill] sm:$0xff] %v4843_v12  ;;  %6684 = vst [vmem:[#allocation196_spill] sm:$0xff] %v4845_v49  ;;  %v1454_v51 = vmul.f32 1.442695, %v4843_v12  ;;  %v1527_v34 = vadd.f32 %v4823_v10, %v1526_v63  ;;  %v1680_v54 = vpop.xlane.xlu0 %1679  ;;  %v4861_v21 = vpop.eup %2981  ;;  %3001 = vpow2.f32 %v1444_v39  ;;  %v6688_v46 = vld [vmem:[#allocation49_spill] sm:$0xff]  ;;  %v6690_v2 = vld [vmem:[#allocation51_spill] sm:$0xff] }
 0x24d   : > { %6685 = vst [vmem:[#allocation197_spill] sm:$0xff] %v4850_v35  ;;  %6686 = vst [vmem:[#allocation198_spill] sm:$0xff] %v4855_v42  ;;  %v4864_v23 = vsub.f32 %v6688_v46, %v1680_v54  ;;  %v4867_v33 = vsub.f32 %v6690_v2, %v1680_v54  ;;  %v6692_v27 = vld [vmem:[#allocation50_spill] sm:$0xff]  ;;  %v4872_v5 = vpop.eup %2983  ;;  %3003 = vpow2.f32 %v1446_v58  ;;  %v1532_v49 = vadd.f32 %v4850_v35, %v1531_v20  ;;  %v6699_v20 = vld [vmem:[#allocation52_spill] sm:$0xff] }
 0x24e   : > { %6687 = vst [vmem:[#allocation199_spill] sm:$0xff] %v4861_v21  ;;  %v4870_v30 = vsub.f32 %v6692_v27, %v1680_v54  ;;  %6694 = vst [vmem:[#allocation200_spill] sm:$0xff] %v4872_v5  ;;  %v1528_v63 = vadd.f32 %v4827_v37, %v1527_v34  ;;  %v6695_v8 = vld [vmem:[#allocation54_spill] sm:$0xff]  ;;  %v1685_v39 = vpop.xlane.xlu1 %1684  ;;  %v4879_v12 = vpop.eup %2985  ;;  %3005 = vpow2.f32 %v1448_v18  ;;  %v6704_v37 = vld [vmem:[#allocation55_spill] sm:$0xff] }
 0x24f   : > { %6689 = vst [vmem:[#allocation49_spill] sm:$0xff] %v4864_v23  ;;  %6691 = vst [vmem:[#allocation51_spill] sm:$0xff] %v4867_v33  ;;  %v4877_v10 = vsub.f32 %v6695_v8, %v1680_v54  ;;  %v1856_v2 = vmul.f32 1.442695, %v4864_v23  ;;  %v1858_v46 = vmul.f32 1.442695, %v4867_v33  ;;  %v4883_v27 = vpop.eup %2987  ;;  %3007 = vpow2.f32 %v1450_v45 }
 0x250   : > { %6693 = vst [vmem:[#allocation50_spill] sm:$0xff] %v4870_v30  ;;  %6697 = vst [vmem:[#allocation201_spill] sm:$0xff] %v4879_v12  ;;  %1529 = vadd.xlane.f32.xlu0 %v1528_v63  ;;  %v1533_v58 = vadd.f32 %v4855_v42, %v1532_v49  ;;  %v1860_v34 = vmul.f32 1.442695, %v4870_v30  ;;  %v4888_v35 = vsub.f32 %v6699_v20, %v1685_v39  ;;  %v4890_v54 = vpop.eup %2989  ;;  %3009 = vpow2.f32 %v1452_v17  ;;  %v6702_v8 = vld [vmem:[#allocation53_spill] sm:$0xff]  ;;  %v6706_v33 = vld [vmem:[#allocation56_spill] sm:$0xff] }
 0x251   : > { %6696 = vst [vmem:[#allocation54_spill] sm:$0xff] %v4877_v10  ;;  %6698 = vst [vmem:[#allocation202_spill] sm:$0xff] %v4883_v27  ;;  %v4893_v18 = vsub.f32 %v6702_v8, %v1685_v39  ;;  %v4896_v53 = vsub.f32 %v6704_v37, %v1685_v39  ;;  %v4899_v23 = vsub.f32 %v6706_v33, %v1685_v39  ;;  %v4901_v45 = vpop.eup %2991  ;;  %3011 = vpow2.f32 %v1454_v51 }
 0x252   : > { %6700 = vst [vmem:[#allocation52_spill] sm:$0xff] %v4888_v35  ;;  %6701 = vst [vmem:[#allocation203_spill] sm:$0xff] %v4890_v54  ;;  %1534 = vadd.xlane.f32.xlu1 %v1533_v58  ;;  %v1862_v49 = vmul.f32 1.442695, %v4877_v10  ;;  %v1536_v63 = vadd.f32 %v4872_v5, %v4861_v21  ;;  %v4906_v20 = vpop.eup %2993  ;;  %3013 = vpow2.f32 %v1856_v2  ;;  %v1864_v17 = vmul.f32 1.442695, %v4888_v35 }
 0x253   : > { %6703 = vst [vmem:[#allocation53_spill] sm:$0xff] %v4893_v18  ;;  %6705 = vst [vmem:[#allocation55_spill] sm:$0xff] %v4896_v53  ;;  %v1866_v37 = vmul.f32 1.442695, %v4893_v18  ;;  %v1868_v8 = vmul.f32 1.442695, %v4896_v53  ;;  %v4911_v33 = vpop.eup %2995  ;;  %3015 = vpow2.f32 %v1858_v46  ;;  %v1541_v58 = vadd.f32 %v4901_v45, %v4890_v54 }
 0x254   : > { %6707 = vst [vmem:[#allocation56_spill] sm:$0xff] %v4899_v23  ;;  %6708 = vst [vmem:[#allocation204_spill] sm:$0xff] %v4901_v45  ;;  %v1870_v51 = vmul.f32 1.442695, %v4899_v23  ;;  %v1537_v39 = vadd.f32 %v4879_v12, %v1536_v63  ;;  %v1690_v5 = vpop.xlane.xlu0 %1689  ;;  %v4917_v21 = vpop.eup %2997  ;;  %3017 = vpow2.f32 %v1860_v34  ;;  %v6712_v2 = vld [vmem:[#allocation57_spill] sm:$0xff]  ;;  %v6714_v18 = vld [vmem:[#allocation59_spill] sm:$0xff] }
 0x255   : > { %6709 = vst [vmem:[#allocation205_spill] sm:$0xff] %v4906_v20  ;;  %6710 = vst [vmem:[#allocation206_spill] sm:$0xff] %v4911_v33  ;;  %v4920_v42 = vsub.f32 %v6712_v2, %v1690_v5  ;;  %v4923_v35 = vsub.f32 %v6714_v18, %v1690_v5  ;;  %v6716_v53 = vld [vmem:[#allocation58_spill] sm:$0xff]  ;;  %v4928_v46 = vpop.eup %2999  ;;  %3019 = vpow2.f32 %v1862_v49  ;;  %v1542_v45 = vadd.f32 %v4906_v20, %v1541_v58  ;;  %v6723_v58 = vld [vmem:[#allocation60_spill] sm:$0xff] }
 0x256   : > { %6711 = vst [vmem:[#allocation207_spill] sm:$0xff] %v4917_v21  ;;  %v4926_v10 = vsub.f32 %v6716_v53, %v1690_v5  ;;  %6718 = vst [vmem:[#allocation208_spill] sm:$0xff] %v4928_v46  ;;  %v1538_v63 = vadd.f32 %v4883_v27, %v1537_v39  ;;  %v6719_v54 = vld [vmem:[#allocation62_spill] sm:$0xff]  ;;  %v1695_v34 = vpop.xlane.xlu1 %1694  ;;  %v4935_v23 = vpop.eup %3001  ;;  %3021 = vpow2.f32 %v1864_v17  ;;  %v6728_v27 = vld [vmem:[#allocation63_spill] sm:$0xff] }
 0x257   : > { %6713 = vst [vmem:[#allocation57_spill] sm:$0xff] %v4920_v42  ;;  %6715 = vst [vmem:[#allocation59_spill] sm:$0xff] %v4923_v35  ;;  %v4933_v12 = vsub.f32 %v6719_v54, %v1690_v5  ;;  %v1872_v18 = vmul.f32 1.442695, %v4920_v42  ;;  %v1874_v2 = vmul.f32 1.442695, %v4923_v35  ;;  %v4939_v53 = vpop.eup %3003  ;;  %3023 = vpow2.f32 %v1866_v37 }
 0x258   : > { %6717 = vst [vmem:[#allocation58_spill] sm:$0xff] %v4926_v10  ;;  %6721 = vst [vmem:[#allocation209_spill] sm:$0xff] %v4935_v23  ;;  %1539 = vadd.xlane.f32.xlu0 %v1538_v63  ;;  %v1543_v49 = vadd.f32 %v4911_v33, %v1542_v45  ;;  %v1876_v39 = vmul.f32 1.442695, %v4926_v10  ;;  %v4944_v20 = vsub.f32 %v6723_v58, %v1695_v34  ;;  %v4946_v5 = vpop.eup %3005  ;;  %3025 = vpow2.f32 %v1868_v8  ;;  %v6726_v54 = vld [vmem:[#allocation61_spill] sm:$0xff]  ;;  %v6730_v35 = vld [vmem:[#allocation64_spill] sm:$0xff] }
 0x259   : > { %6720 = vst [vmem:[#allocation62_spill] sm:$0xff] %v4933_v12  ;;  %6722 = vst [vmem:[#allocation210_spill] sm:$0xff] %v4939_v53  ;;  %v4949_v17 = vsub.f32 %v6726_v54, %v1695_v34  ;;  %v4952_v42 = vsub.f32 %v6728_v27, %v1695_v34  ;;  %v4955_v30 = vsub.f32 %v6730_v35, %v1695_v34  ;;  %v4957_v37 = vpop.eup %3007  ;;  %3027 = vpow2.f32 %v1870_v51 }
 0x25a   : > { %6724 = vst [vmem:[#allocation60_spill] sm:$0xff] %v4944_v20  ;;  %6725 = vst [vmem:[#allocation211_spill] sm:$0xff] %v4946_v5  ;;  %1544 = vadd.xlane.f32.xlu1 %v1543_v49  ;;  %v1878_v45 = vmul.f32 1.442695, %v4933_v12  ;;  %v1546_v63 = vadd.f32 %v4928_v46, %v4917_v21  ;;  %v4962_v58 = vpop.eup %3009  ;;  %3029 = vpow2.f32 %v1872_v18  ;;  %v1880_v8 = vmul.f32 1.442695, %v4944_v20 }
 0x25b   : > { %6727 = vst [vmem:[#allocation61_spill] sm:$0xff] %v4949_v17  ;;  %6729 = vst [vmem:[#allocation63_spill] sm:$0xff] %v4952_v42  ;;  %v1882_v27 = vmul.f32 1.442695, %v4949_v17  ;;  %v1884_v54 = vmul.f32 1.442695, %v4952_v42  ;;  %v4967_v35 = vpop.eup %3011  ;;  %3031 = vpow2.f32 %v1874_v2  ;;  %v1551_v49 = vadd.f32 %v4957_v37, %v4946_v5 }
 0x25c   : > { %6731 = vst [vmem:[#allocation64_spill] sm:$0xff] %v4955_v30  ;;  %6732 = vst [vmem:[#allocation212_spill] sm:$0xff] %v4957_v37  ;;  %v1886_v51 = vmul.f32 1.442695, %v4955_v30  ;;  %v1547_v34 = vadd.f32 %v4935_v23, %v1546_v63  ;;  %v1700_v33 = vpop.xlane.xlu0 %1699  ;;  %v3014_v46 = vpop.eup %3013  ;;  %3033 = vpow2.f32 %v1876_v39  ;;  %v6735_v18 = vld [vmem:[#allocation65_spill] sm:$0xff]  ;;  %v6737_v12 = vld [vmem:[#allocation67_spill] sm:$0xff] }
 0x25d   : > { %6733 = vst [vmem:[#allocation213_spill] sm:$0xff] %v4962_v58  ;;  %6734 = vst [vmem:[#allocation214_spill] sm:$0xff] %v4967_v35  ;;  %v4974_v21 = vsub.f32 %v6735_v18, %v1700_v33  ;;  %v4977_v17 = vsub.f32 %v6737_v12, %v1700_v33  ;;  %v6739_v42 = vld [vmem:[#allocation66_spill] sm:$0xff]  ;;  %v3016_v2 = vpop.eup %3015  ;;  %3035 = vpow2.f32 %v1878_v45  ;;  %v1552_v63 = vadd.f32 %v4962_v58, %v1551_v49 }
 0x25e   : > { %v4980_v20 = vsub.f32 %v6739_v42, %v1700_v33  ;;  %v1548_v30 = vadd.f32 %v4939_v53, %v1547_v34  ;;  %v6741_v23 = vld [vmem:[#allocation70_spill] sm:$0xff]  ;;  %v1705_v5 = vpop.xlane.xlu1 %1704  ;;  %v3018_v39 = vpop.eup %3017  ;;  %3037 = vpow2.f32 %v1880_v8  ;;  %v6743_v34 = vld [vmem:[#allocation68_spill] sm:$0xff]  ;;  %v6747_v8 = vld [vmem:[#allocation71_spill] sm:$0xff] }
 0x25f   : > { %6736 = vst [vmem:[#allocation65_spill] sm:$0xff] %v4974_v21  ;;  %6738 = vst [vmem:[#allocation67_spill] sm:$0xff] %v4977_v17  ;;  %v4985_v37 = vsub.f32 %v6741_v23, %v1700_v33  ;;  %v1888_v18 = vmul.f32 1.442695, %v4974_v21  ;;  %v1890_v12 = vmul.f32 1.442695, %v4977_v17  ;;  %v3020_v10 = vpop.eup %3019  ;;  %3039 = vpow2.f32 %v1882_v27 }
 0x260   : > { %6740 = vst [vmem:[#allocation66_spill] sm:$0xff] %v4980_v20  ;;  %1549 = vadd.xlane.f32.xlu0 %v1548_v30  ;;  %v1553_v42 = vadd.f32 %v4967_v35, %v1552_v63  ;;  %v1892_v45 = vmul.f32 1.442695, %v4980_v20  ;;  %v4992_v53 = vsub.f32 %v6743_v34, %v1705_v5  ;;  %v3022_v49 = vpop.eup %3021  ;;  %3041 = vpow2.f32 %v1884_v54  ;;  %v6745_v23 = vld [vmem:[#allocation69_spill] sm:$0xff]  ;;  %v6749_v21 = vld [vmem:[#allocation72_spill] sm:$0xff] }
 0x261   : > { %6742 = vst [vmem:[#allocation70_spill] sm:$0xff] %v4985_v37  ;;  %v4995_v33 = vsub.f32 %v6745_v23, %v1705_v5  ;;  %v4998_v58 = vsub.f32 %v6747_v8, %v1705_v5  ;;  %v5001_v17 = vsub.f32 %v6749_v21, %v1705_v5  ;;  %v3024_v27 = vpop.eup %3023  ;;  %3043 = vpow2.f32 %v1886_v51 }
 0x262   : > { %6744 = vst [vmem:[#allocation68_spill] sm:$0xff] %v4992_v53  ;;  %1554 = vadd.xlane.f32.xlu1 %v1553_v42  ;;  %v1894_v30 = vmul.f32 1.442695, %v4985_v37  ;;  %v2016_v63 = vadd.f32 %v3016_v2, %v3014_v46  ;;  %v3026_v35 = vpop.eup %3025  ;;  %3045 = vpow2.f32 %v1888_v18  ;;  %v1896_v34 = vmul.f32 1.442695, %v4992_v53  ;;  %v6751_v42 = vld [vmem:[#allocation73_spill] sm:$0xff] }
 0x263   : > { %6746 = vst [vmem:[#allocation69_spill] sm:$0xff] %v4995_v33  ;;  %6748 = vst [vmem:[#allocation71_spill] sm:$0xff] %v4998_v58  ;;  %v1898_v54 = vmul.f32 1.442695, %v4995_v33  ;;  %v1900_v23 = vmul.f32 1.442695, %v4998_v58  ;;  %v3028_v20 = vpop.eup %3027  ;;  %3047 = vpow2.f32 %v1890_v12  ;;  %v2021_v5 = vadd.f32 %v3024_v27, %v3022_v49 }
 0x264   : > { %6750 = vst [vmem:[#allocation72_spill] sm:$0xff] %v5001_v17  ;;  %v1902_v8 = vmul.f32 1.442695, %v5001_v17  ;;  %v2017_v21 = vadd.f32 %v3018_v39, %v2016_v63  ;;  %v1710_v31 = vpop.xlane.xlu0 %1709  ;;  %v3030_v51 = vpop.eup %3029  ;;  %3049 = vpow2.f32 %v1892_v45  ;;  %v6753_v46 = vld [vmem:[#allocation75_spill] sm:$0xff]  ;;  %v6755_v18 = vld [vmem:[#allocation74_spill] sm:$0xff] }
 0x265   : > { %v5009_v37 = vsub.f32 %v6751_v42, %v1710_v31  ;;  %v5012_v2 = vsub.f32 %v6753_v46, %v1710_v31  ;;  %v5015_v53 = vsub.f32 %v6755_v18, %v1710_v31  ;;  %v3032_v33 = vpop.eup %3031  ;;  %3051 = vpow2.f32 %v1894_v30  ;;  %v6759_v18 = vld [vmem:[#allocation76_spill] sm:$0xff] }
 0x266   : > { %v2018_v58 = vadd.f32 %v3020_v10, %v2017_v21  ;;  %v2022_v12 = vadd.f32 %v3026_v35, %v2021_v5  ;;  %v5018_v17 = vsub.f32 %v6757_v62, %v1710_v31  ;;  %v1715_v39 = vpop.xlane.xlu1 %1714  ;;  %v3034_v49 = vpop.eup %3033  ;;  %3053 = vpow2.f32 %v1896_v34  ;;  %v6761_v62 = vld [vmem:[#allocation77_spill] sm:$0xff]  ;;  %v6763_v35 = vld [vmem:[#allocation79_spill] sm:$0xff]  ;;  %v6765_v21 = vld [vmem:[#allocation80_spill] sm:$0xff] }
 0x267   : > { %6752 = vst [vmem:[#allocation73_spill] sm:$0xff] %v5009_v37  ;;  %6754 = vst [vmem:[#allocation75_spill] sm:$0xff] %v5012_v2  ;;  %v1904_v45 = vmul.f32 1.442695, %v5009_v37  ;;  %v1906_v27 = vmul.f32 1.442695, %v5012_v2  ;;  %v3036_v63 = vpop.eup %3035  ;;  %3055 = vpow2.f32 %v1898_v54  ;;  %v5024_v30 = vsub.f32 %v6759_v18, %v1715_v39 }
 0x268   : > { %6756 = vst [vmem:[#allocation74_spill] sm:$0xff] %v5015_v53  ;;  %6758 = vst [vmem:[#allocation78_spill] sm:$0xff] %v5018_v17  ;;  %2019 = vadd.xlane.f32.xlu0 %v2018_v58  ;;  %v2023_v42 = vadd.f32 %v3028_v20, %v2022_v12  ;;  %v1908_v46 = vmul.f32 1.442695, %v5015_v53  ;;  %v3038_v10 = vpop.eup %3037  ;;  %3057 = vpow2.f32 %v1900_v23  ;;  %v5027_v31 = vsub.f32 %v6761_v62, %v1715_v39  ;;  %v6773_v37 = vld [vmem:[#allocation86_spill] sm:$0xff] }
 0x269   : > { %6760 = vst [vmem:[#allocation76_spill] sm:$0xff] %v5024_v30  ;;  %v5030_v34 = vsub.f32 %v6763_v35, %v1715_v39  ;;  %v5033_v5 = vsub.f32 %v6765_v21, %v1715_v39  ;;  %v3040_v2 = vpop.eup %3039  ;;  %3059 = vpow2.f32 %v1902_v8  ;;  %v1910_v20 = vmul.f32 1.442695, %v5018_v17 }
 0x26a   : > { %6762 = vst [vmem:[#allocation77_spill] sm:$0xff] %v5027_v31  ;;  %2024 = vadd.xlane.f32.xlu1 %v2023_v42  ;;  %v2026_v58 = vadd.f32 %v3032_v33, %v3030_v51  ;;  %v3042_v54 = vpop.eup %3041  ;;  %3061 = vpow2.f32 %v1904_v45  ;;  %v1912_v12 = vmul.f32 1.442695, %v5024_v30  ;;  %v1914_v23 = vmul.f32 1.442695, %v5027_v31  ;;  %v6767_v42 = vld [vmem:[#allocation81_spill] sm:$0xff] }
 0x26b   : > { %6764 = vst [vmem:[#allocation79_spill] sm:$0xff] %v5030_v34  ;;  %6766 = vst [vmem:[#allocation80_spill] sm:$0xff] %v5033_v5  ;;  %v1916_v18 = vmul.f32 1.442695, %v5030_v34  ;;  %v3044_v62 = vpop.eup %3043  ;;  %3063 = vpow2.f32 %v1906_v27  ;;  %v1918_v35 = vmul.f32 1.442695, %v5033_v5  ;;  %v2031_v21 = vadd.f32 %v3040_v2, %v3038_v10 }
 0x26c   : > { %v2027_v39 = vadd.f32 %v3034_v49, %v2026_v58  ;;  %v1720_v53 = vpop.xlane.xlu0 %1719  ;;  %v3046_v8 = vpop.eup %3045  ;;  %3065 = vpow2.f32 %v1908_v46  ;;  %v6769_v33 = vld [vmem:[#allocation83_spill] sm:$0xff]  ;;  %v6771_v45 = vld [vmem:[#allocation82_spill] sm:$0xff] }
 0x26d   : > { %v5041_v17 = vsub.f32 %v6767_v42, %v1720_v53  ;;  %v5044_v51 = vsub.f32 %v6769_v33, %v1720_v53  ;;  %v5047_v30 = vsub.f32 %v6771_v45, %v1720_v53  ;;  %v3048_v31 = vpop.eup %3047  ;;  %3067 = vpow2.f32 %v1910_v20  ;;  %v6775_v45 = vld [vmem:[#allocation84_spill] sm:$0xff] }
 0x26e   : > { %v2028_v34 = vadd.f32 %v3036_v63, %v2027_v39  ;;  %v2032_v27 = vadd.f32 %v3042_v54, %v2031_v21  ;;  %v5050_v5 = vsub.f32 %v6773_v37, %v1720_v53  ;;  %v1725_v2 = vpop.xlane.xlu1 %1724  ;;  %v3050_v49 = vpop.eup %3049  ;;  %3069 = vpow2.f32 %v1912_v12  ;;  %v6777_v53 = vld [vmem:[#allocation85_spill] sm:$0xff]  ;;  %v6779_v54 = vld [vmem:[#allocation87_spill] sm:$0xff]  ;;  %v6781_v39 = vld [vmem:[#allocation88_spill] sm:$0xff] }
 0x26f   : > { %6768 = vst [vmem:[#allocation81_spill] sm:$0xff] %v5041_v17  ;;  %6770 = vst [vmem:[#allocation83_spill] sm:$0xff] %v5044_v51  ;;  %v1920_v46 = vmul.f32 1.442695, %v5041_v17  ;;  %v1922_v10 = vmul.f32 1.442695, %v5044_v51  ;;  %v3052_v58 = vpop.eup %3051  ;;  %3071 = vpow2.f32 %v1914_v23  ;;  %v5056_v20 = vsub.f32 %v6775_v45, %v1725_v2 }
 0x270   : > { %6772 = vst [vmem:[#allocation82_spill] sm:$0xff] %v5047_v30  ;;  %6774 = vst [vmem:[#allocation86_spill] sm:$0xff] %v5050_v5  ;;  %2029 = vadd.xlane.f32.xlu0 %v2028_v34  ;;  %v2033_v42 = vadd.f32 %v3044_v62, %v2032_v27  ;;  %v1924_v33 = vmul.f32 1.442695, %v5047_v30  ;;  %v3054_v63 = vpop.eup %3053  ;;  %3073 = vpow2.f32 %v1916_v18  ;;  %v5059_v37 = vsub.f32 %v6777_v53, %v1725_v2  ;;  %v6789_v17 = vld [vmem:[#allocation94_spill] sm:$0xff] }
 0x271   : > { %6776 = vst [vmem:[#allocation84_spill] sm:$0xff] %v5056_v20  ;;  %v5062_v12 = vsub.f32 %v6779_v54, %v1725_v2  ;;  %v5065_v21 = vsub.f32 %v6781_v39, %v1725_v2  ;;  %v3056_v51 = vpop.eup %3055  ;;  %3075 = vpow2.f32 %v1918_v35  ;;  %v1926_v34 = vmul.f32 1.442695, %v5050_v5 }
 0x272   : > { %6778 = vst [vmem:[#allocation85_spill] sm:$0xff] %v5059_v37  ;;  %2034 = vadd.xlane.f32.xlu1 %v2033_v42  ;;  %v2036_v23 = vadd.f32 %v3048_v31, %v3046_v8  ;;  %v3058_v62 = vpop.eup %3057  ;;  %3077 = vpow2.f32 %v1920_v46  ;;  %v1928_v27 = vmul.f32 1.442695, %v5056_v20  ;;  %v1930_v18 = vmul.f32 1.442695, %v5059_v37  ;;  %v6783_v42 = vld [vmem:[#allocation89_spill] sm:$0xff] }
 0x273   : > { %6780 = vst [vmem:[#allocation87_spill] sm:$0xff] %v5062_v12  ;;  %6782 = vst [vmem:[#allocation88_spill] sm:$0xff] %v5065_v21  ;;  %v1932_v45 = vmul.f32 1.442695, %v5062_v12  ;;  %v3060_v53 = vpop.eup %3059  ;;  %3079 = vpow2.f32 %v1922_v10  ;;  %v1934_v54 = vmul.f32 1.442695, %v5065_v21  ;;  %v2041_v39 = vadd.f32 %v3056_v51, %v3054_v63 }
 0x274   : > { %v2037_v2 = vadd.f32 %v3050_v49, %v2036_v23  ;;  %v1730_v30 = vpop.xlane.xlu0 %1729  ;;  %v3062_v35 = vpop.eup %3061  ;;  %3081 = vpow2.f32 %v1924_v33  ;;  %v6785_v31 = vld [vmem:[#allocation91_spill] sm:$0xff]  ;;  %v6787_v46 = vld [vmem:[#allocation90_spill] sm:$0xff] }
 0x275   : > { %v5073_v5 = vsub.f32 %v6783_v42, %v1730_v30  ;;  %v5076_v8 = vsub.f32 %v6785_v31, %v1730_v30  ;;  %v5079_v20 = vsub.f32 %v6787_v46, %v1730_v30  ;;  %v3064_v37 = vpop.eup %3063  ;;  %3083 = vpow2.f32 %v1926_v34  ;;  %v6791_v46 = vld [vmem:[#allocation92_spill] sm:$0xff] }
 0x276   : > { %v2038_v12 = vadd.f32 %v3052_v58, %v2037_v2  ;;  %v2042_v10 = vadd.f32 %v3058_v62, %v2041_v39  ;;  %v5082_v21 = vsub.f32 %v6789_v17, %v1730_v30  ;;  %v1735_v51 = vpop.xlane.xlu1 %1734  ;;  %v3066_v49 = vpop.eup %3065  ;;  %3085 = vpow2.f32 %v1928_v27  ;;  %v6793_v17 = vld [vmem:[#allocation93_spill] sm:$0xff]  ;;  %v6795_v62 = vld [vmem:[#allocation95_spill] sm:$0xff]  ;;  %v6797_v2 = vld [vmem:[#allocation96_spill] sm:$0xff] }
 0x277   : > { %6784 = vst [vmem:[#allocation89_spill] sm:$0xff] %v5073_v5  ;;  %6786 = vst [vmem:[#allocation91_spill] sm:$0xff] %v5076_v8  ;;  %v1936_v33 = vmul.f32 1.442695, %v5073_v5  ;;  %v1938_v63 = vmul.f32 1.442695, %v5076_v8  ;;  %v3068_v23 = vpop.eup %3067  ;;  %3087 = vpow2.f32 %v1930_v18  ;;  %v5088_v34 = vsub.f32 %v6791_v46, %v1735_v51 }
 0x278   : > { %6788 = vst [vmem:[#allocation90_spill] sm:$0xff] %v5079_v20  ;;  %6790 = vst [vmem:[#allocation94_spill] sm:$0xff] %v5082_v21  ;;  %2039 = vadd.xlane.f32.xlu0 %v2038_v12  ;;  %v2043_v42 = vadd.f32 %v3060_v53, %v2042_v10  ;;  %v1940_v31 = vmul.f32 1.442695, %v5079_v20  ;;  %v3070_v58 = vpop.eup %3069  ;;  %3089 = vpow2.f32 %v1932_v45  ;;  %v5091_v30 = vsub.f32 %v6793_v17, %v1735_v51  ;;  %v6805_v5 = vld [vmem:[#allocation102_spill] sm:$0xff] }
 0x279   : > { %6792 = vst [vmem:[#allocation92_spill] sm:$0xff] %v5088_v34  ;;  %v5094_v27 = vsub.f32 %v6795_v62, %v1735_v51  ;;  %v5097_v39 = vsub.f32 %v6797_v2, %v1735_v51  ;;  %v3072_v8 = vpop.eup %3071  ;;  %3091 = vpow2.f32 %v1934_v54  ;;  %v1942_v12 = vmul.f32 1.442695, %v5082_v21 }
 0x27a   : > { %6794 = vst [vmem:[#allocation93_spill] sm:$0xff] %v5091_v30  ;;  %2044 = vadd.xlane.f32.xlu1 %v2043_v42  ;;  %v2046_v18 = vadd.f32 %v3064_v37, %v3062_v35  ;;  %v3074_v53 = vpop.eup %3073  ;;  %3093 = vpow2.f32 %v1936_v33  ;;  %v1944_v10 = vmul.f32 1.442695, %v5088_v34  ;;  %v1946_v45 = vmul.f32 1.442695, %v5091_v30  ;;  %v6799_v42 = vld [vmem:[#allocation97_spill] sm:$0xff] }
 0x27b   : > { %6796 = vst [vmem:[#allocation95_spill] sm:$0xff] %v5094_v27  ;;  %6798 = vst [vmem:[#allocation96_spill] sm:$0xff] %v5097_v39  ;;  %v1948_v46 = vmul.f32 1.442695, %v5094_v27  ;;  %v3076_v17 = vpop.eup %3075  ;;  %3095 = vpow2.f32 %v1938_v63  ;;  %v1950_v62 = vmul.f32 1.442695, %v5097_v39  ;;  %v2051_v2 = vadd.f32 %v3072_v8, %v3070_v58 }
 0x27c   : > { %v2047_v51 = vadd.f32 %v3066_v49, %v2046_v18  ;;  %v1740_v20 = vpop.xlane.xlu0 %1739  ;;  %v3078_v54 = vpop.eup %3077  ;;  %3097 = vpow2.f32 %v1940_v31  ;;  %v6801_v37 = vld [vmem:[#allocation99_spill] sm:$0xff]  ;;  %v6803_v33 = vld [vmem:[#allocation98_spill] sm:$0xff] }
 0x27d   : > { %v5105_v21 = vsub.f32 %v6799_v42, %v1740_v20  ;;  %v5108_v35 = vsub.f32 %v6801_v37, %v1740_v20  ;;  %v5111_v34 = vsub.f32 %v6803_v33, %v1740_v20  ;;  %v3080_v30 = vpop.eup %3079  ;;  %3099 = vpow2.f32 %v1942_v12  ;;  %v6807_v33 = vld [vmem:[#allocation100_spill] sm:$0xff] }
 0x27e   : > { %v2048_v27 = vadd.f32 %v3068_v23, %v2047_v51  ;;  %v2052_v63 = vadd.f32 %v3074_v53, %v2051_v2  ;;  %v5114_v39 = vsub.f32 %v6805_v5, %v1740_v20  ;;  %v1745_v8 = vpop.xlane.xlu1 %1744  ;;  %v3082_v49 = vpop.eup %3081  ;;  %3101 = vpow2.f32 %v1944_v10  ;;  %v6809_v5 = vld [vmem:[#allocation101_spill] sm:$0xff]  ;;  %v6811_v53 = vld [vmem:[#allocation103_spill] sm:$0xff]  ;;  %v6813_v51 = vld [vmem:[#allocation104_spill] sm:$0xff] }
 0x27f   : > { %6800 = vst [vmem:[#allocation97_spill] sm:$0xff] %v5105_v21  ;;  %6802 = vst [vmem:[#allocation99_spill] sm:$0xff] %v5108_v35  ;;  %v1952_v31 = vmul.f32 1.442695, %v5105_v21  ;;  %v1954_v58 = vmul.f32 1.442695, %v5108_v35  ;;  %v3084_v18 = vpop.eup %3083  ;;  %3103 = vpow2.f32 %v1946_v45  ;;  %v5120_v12 = vsub.f32 %v6807_v33, %v1745_v8 }
 0x280   : > { %6804 = vst [vmem:[#allocation98_spill] sm:$0xff] %v5111_v34  ;;  %6806 = vst [vmem:[#allocation102_spill] sm:$0xff] %v5114_v39  ;;  %2049 = vadd.xlane.f32.xlu0 %v2048_v27  ;;  %v2053_v42 = vadd.f32 %v3076_v17, %v2052_v63  ;;  %v1956_v37 = vmul.f32 1.442695, %v5111_v34  ;;  %v3086_v23 = vpop.eup %3085  ;;  %3105 = vpow2.f32 %v1948_v46  ;;  %v5123_v20 = vsub.f32 %v6809_v5, %v1745_v8  ;;  %v6821_v21 = vld [vmem:[#allocation110_spill] sm:$0xff] }
 0x281   : > { %6808 = vst [vmem:[#allocation100_spill] sm:$0xff] %v5120_v12  ;;  %v5126_v10 = vsub.f32 %v6811_v53, %v1745_v8  ;;  %v5129_v2 = vsub.f32 %v6813_v51, %v1745_v8  ;;  %v3088_v35 = vpop.eup %3087  ;;  %3107 = vpow2.f32 %v1950_v62  ;;  %v1958_v27 = vmul.f32 1.442695, %v5114_v39 }
 0x282   : > { %6810 = vst [vmem:[#allocation101_spill] sm:$0xff] %v5123_v20  ;;  %2054 = vadd.xlane.f32.xlu1 %v2053_v42  ;;  %v2056_v45 = vadd.f32 %v3080_v30, %v3078_v54  ;;  %v3090_v17 = vpop.eup %3089  ;;  %3109 = vpow2.f32 %v1952_v31  ;;  %v1960_v63 = vmul.f32 1.442695, %v5120_v12  ;;  %v1962_v46 = vmul.f32 1.442695, %v5123_v20  ;;  %v6815_v42 = vld [vmem:[#allocation105_spill] sm:$0xff] }
 0x283   : > { %6812 = vst [vmem:[#allocation103_spill] sm:$0xff] %v5126_v10  ;;  %6814 = vst [vmem:[#allocation104_spill] sm:$0xff] %v5129_v2  ;;  %v1964_v33 = vmul.f32 1.442695, %v5126_v10  ;;  %v3092_v5 = vpop.eup %3091  ;;  %3111 = vpow2.f32 %v1954_v58  ;;  %v1966_v53 = vmul.f32 1.442695, %v5129_v2  ;;  %v2061_v51 = vadd.f32 %v3088_v35, %v3086_v23 }
 0x284   : > { %v2057_v8 = vadd.f32 %v3082_v49, %v2056_v45  ;;  %v1750_v34 = vpop.xlane.xlu0 %1749  ;;  %v3094_v62 = vpop.eup %3093  ;;  %3113 = vpow2.f32 %v1956_v37  ;;  %v6817_v30 = vld [vmem:[#allocation107_spill] sm:$0xff]  ;;  %v6819_v31 = vld [vmem:[#allocation106_spill] sm:$0xff] }
 0x285   : > { %v5137_v39 = vsub.f32 %v6815_v42, %v1750_v34  ;;  %v5140_v54 = vsub.f32 %v6817_v30, %v1750_v34  ;;  %v5143_v12 = vsub.f32 %v6819_v31, %v1750_v34  ;;  %v3096_v20 = vpop.eup %3095  ;;  %3115 = vpow2.f32 %v1958_v27  ;;  %v6823_v31 = vld [vmem:[#allocation108_spill] sm:$0xff] }
 0x286   : > { %v2058_v10 = vadd.f32 %v3084_v18, %v2057_v8  ;;  %v2062_v58 = vadd.f32 %v3090_v17, %v2061_v51  ;;  %v5146_v2 = vsub.f32 %v6821_v21, %v1750_v34  ;;  %v1755_v35 = vpop.xlane.xlu1 %1754  ;;  %v3098_v49 = vpop.eup %3097  ;;  %3117 = vpow2.f32 %v1960_v63  ;;  %v6825_v21 = vld [vmem:[#allocation109_spill] sm:$0xff]  ;;  %v6827_v17 = vld [vmem:[#allocation111_spill] sm:$0xff]  ;;  %v6829_v8 = vld [vmem:[#allocation112_spill] sm:$0xff] }
 0x287   : > { %6816 = vst [vmem:[#allocation105_spill] sm:$0xff] %v5137_v39  ;;  %6818 = vst [vmem:[#allocation107_spill] sm:$0xff] %v5140_v54  ;;  %v1968_v37 = vmul.f32 1.442695, %v5137_v39  ;;  %v1970_v23 = vmul.f32 1.442695, %v5140_v54  ;;  %v3100_v45 = vpop.eup %3099  ;;  %3119 = vpow2.f32 %v1962_v46  ;;  %v5152_v27 = vsub.f32 %v6823_v31, %v1755_v35 }
 0x288   : > { %6820 = vst [vmem:[#allocation106_spill] sm:$0xff] %v5143_v12  ;;  %6822 = vst [vmem:[#allocation110_spill] sm:$0xff] %v5146_v2  ;;  %2059 = vadd.xlane.f32.xlu0 %v2058_v10  ;;  %v2063_v42 = vadd.f32 %v3092_v5, %v2062_v58  ;;  %v1972_v30 = vmul.f32 1.442695, %v5143_v12  ;;  %v3102_v18 = vpop.eup %3101  ;;  %3121 = vpow2.f32 %v1964_v33  ;;  %v5155_v34 = vsub.f32 %v6825_v21, %v1755_v35 }
 0x289   : > { %6824 = vst [vmem:[#allocation108_spill] sm:$0xff] %v5152_v27  ;;  %v5158_v63 = vsub.f32 %v6827_v17, %v1755_v35  ;;  %v5161_v51 = vsub.f32 %v6829_v8, %v1755_v35  ;;  %v3104_v54 = vpop.eup %3103  ;;  %3123 = vpow2.f32 %v1966_v53  ;;  %v1974_v10 = vmul.f32 1.442695, %v5146_v2 }
 0x28a   : > { %6826 = vst [vmem:[#allocation109_spill] sm:$0xff] %v5155_v34  ;;  %2064 = vadd.xlane.f32.xlu1 %v2063_v42  ;;  %v2066_v46 = vadd.f32 %v3096_v20, %v3094_v62  ;;  %v3106_v5 = vpop.eup %3105  ;;  %3125 = vpow2.f32 %v1968_v37  ;;  %v1976_v58 = vmul.f32 1.442695, %v5152_v27  ;;  %v1978_v31 = vmul.f32 1.442695, %v5155_v34  ;;  %v6831_v37 = vld [vmem:[#allocation113_spill] sm:$0xff] }
 0x28b   : > { %6828 = vst [vmem:[#allocation111_spill] sm:$0xff] %v5158_v63  ;;  %6830 = vst [vmem:[#allocation112_spill] sm:$0xff] %v5161_v51  ;;  %v3108_v33 = vpop.eup %3107  ;;  %3127 = vpow2.f32 %v1970_v23  ;;  %v2071_v17 = vadd.f32 %v3104_v54, %v3102_v18  ;;  %v1980_v35 = vmul.f32 1.442695, %v5158_v63  ;;  %v1982_v53 = vmul.f32 1.442695, %v5161_v51 }
 0x28c   : > { %v2067_v21 = vadd.f32 %v3098_v49, %v2066_v46  ;;  %v3110_v12 = vpop.eup %3109  ;;  %3129 = vpow2.f32 %v1972_v30  ;;  %v6833_v23 = vld [vmem:[#allocation115_spill] sm:$0xff]  ;;  %v6835_v54 = vld [vmem:[#allocation114_spill] sm:$0xff] }
 0x28d   : > { %v1760_v42 = vpop.xlane.xlu0 %1759  ;;  %v3112_v8 = vpop.eup %3111  ;;  %3131 = vpow2.f32 %v1974_v10  ;;  %v2072_v62 = vadd.f32 %v3106_v5, %v2071_v17  ;;  %v6838_v5 = vld [vmem:[#allocation116_spill] sm:$0xff] }
 0x28e   : > { %v2068_v20 = vadd.f32 %v3100_v45, %v2067_v21  ;;  %v5169_v2 = vsub.f32 %v6831_v37, %v1760_v42  ;;  %v3114_v27 = vpop.eup %3113  ;;  %3133 = vpow2.f32 %v1976_v58  ;;  %v5172_v34 = vsub.f32 %v6833_v23, %v1760_v42 }
 0x28f   : > { %v5175_v49 = vsub.f32 %v6835_v54, %v1760_v42  ;;  %v5178_v30 = vsub.f32 %v4309_v38, %v1760_v42  ;;  %v1765_v18 = vpop.xlane.xlu1 %1764  ;;  %v3116_v46 = vpop.eup %3115  ;;  %3135 = vpow2.f32 %v1978_v31  ;;  %v2073_v45 = vadd.f32 %v3108_v33, %v2072_v62  ;;  %v6840_v42 = vld [vmem:[#allocation117_spill] sm:$0xff] }
 0x290   : > { %6832 = vst [vmem:[#allocation113_spill] sm:$0xff] %v5169_v2  ;;  %6834 = vst [vmem:[#allocation115_spill] sm:$0xff] %v5172_v34  ;;  %2069 = vadd.xlane.f32.xlu0 %v2068_v20  ;;  %v1984_v10 = vmul.f32 1.442695, %v5169_v2  ;;  %v5182_v21 = vsub.f32 %v6838_v5, %v1765_v18  ;;  %v3118_v58 = vpop.eup %3117  ;;  %3137 = vpow2.f32 %v1980_v35  ;;  %v1986_v17 = vmul.f32 1.442695, %v5172_v34 }
 0x291   : > { %6836 = vst [vmem:[#allocation114_spill] sm:$0xff] %v5175_v49  ;;  %6837 = vst [vmem:[#allocation215_spill] sm:$0xff] %v5178_v30  ;;  %v1988_v37 = vmul.f32 1.442695, %v5175_v49  ;;  %v1990_v23 = vmul.f32 1.442695, %v5178_v30  ;;  %v3120_v38 = vpop.eup %3119  ;;  %3139 = vpow2.f32 %v1982_v53  ;;  %2074 = vadd.xlane.f32.xlu1 %v2073_v45  ;;  %v5188_v31 = vsub.f32 %v6840_v42, %v1765_v18 }
 0x292   : > { %6839 = vst [vmem:[#allocation116_spill] sm:$0xff] %v5182_v21  ;;  %v5191_v33 = vsub.f32 %v4312_v43, %v1765_v18  ;;  %v5194_v20 = vsub.f32 %v4327_v16, %v1765_v18  ;;  %v3122_v62 = vpop.eup %3121  ;;  %3141 = vpow2.f32 %v1984_v10  ;;  %v1992_v35 = vmul.f32 1.442695, %v5182_v21 }
 0x293   : > { %6841 = vst [vmem:[#allocation117_spill] sm:$0xff] %v5188_v31  ;;  %v2076_v54 = vadd.f32 %v3112_v8, %v3110_v12  ;;  %v2081_v5 = vadd.f32 %v3120_v38, %v3118_v58  ;;  %v3124_v49 = vpop.eup %3123  ;;  %3143 = vpow2.f32 %v1986_v17  ;;  %v1994_v53 = vmul.f32 1.442695, %v5188_v31 }
 0x294   : > { %6842 = vst [vmem:[#allocation216_spill] sm:$0xff] %v5191_v33  ;;  %6843 = vst [vmem:[#allocation217_spill] sm:$0xff] %v5194_v20  ;;  %v3126_v45 = vpop.eup %3125  ;;  %3145 = vpow2.f32 %v1988_v37  ;;  %v1996_v42 = vmul.f32 1.442695, %v5191_v33  ;;  %v1998_v16 = vmul.f32 1.442695, %v5194_v20 }
 0x295   : > { %v2077_v30 = vadd.f32 %v3114_v27, %v2076_v54  ;;  %v2082_v43 = vadd.f32 %v3122_v62, %v2081_v5  ;;  %v3128_v51 = vpop.eup %3127  ;;  %3147 = vpow2.f32 %v1990_v23  ;;  %v1770_v18 = vpop.xlane.xlu0 %1769  ;;  %v6880_v20 = vld [vmem:[#allocation130_spill] sm:$0xff] }
 0x296   : > { %v3130_v10 = vpop.eup %3129  ;;  %3149 = vpow2.f32 %v1992_v35  ;;  %v5201_v8 = vsub.f32 %v4330_v50, %v1770_v18  ;;  %v5204_v17 = vsub.f32 %v4338_v0, %v1770_v18  ;;  %v5207_v27 = vsub.f32 %v4342_v28, %v1770_v18 }
 0x297   : > { %v2078_v21 = vadd.f32 %v3116_v46, %v2077_v30  ;;  %v2083_v12 = vadd.f32 %v3124_v49, %v2082_v43  ;;  %v3132_v58 = vpop.eup %3131  ;;  %3151 = vpow2.f32 %v1994_v53  ;;  %v5210_v37 = vsub.f32 %v4351_v19, %v1770_v18 }
 0x298   : > { %6844 = vst [vmem:[#allocation218_spill] sm:$0xff] %v5201_v8  ;;  %6845 = vst [vmem:[#allocation219_spill] sm:$0xff] %v5204_v17  ;;  %v3134_v23 = vpop.eup %3133  ;;  %3153 = vpow2.f32 %v1996_v42  ;;  %v2000_v49 = vmul.f32 1.442695, %v5201_v8  ;;  %v2086_v50 = vadd.f32 %v3128_v51, %v3126_v45  ;;  %v2002_v38 = vmul.f32 1.442695, %v5204_v17 }
 0x299   : > { %6846 = vst [vmem:[#allocation220_spill] sm:$0xff] %v5207_v27  ;;  %6847 = vst [vmem:[#allocation221_spill] sm:$0xff] %v5210_v37  ;;  %2079 = vadd.xlane.f32.xlu0 %v2078_v21  ;;  %2084 = vadd.xlane.f32.xlu1 %v2083_v12  ;;  %v1775_v30 = vpop.xlane.xlu1 %1774  ;;  %v3136_v46 = vpop.eup %3135  ;;  %3155 = vpow2.f32 %v1998_v16  ;;  %v2004_v0 = vmul.f32 1.442695, %v5207_v27  ;;  %v2006_v28 = vmul.f32 1.442695, %v5210_v37 }
 0x29a   : > { %v3138_v62 = vpop.eup %3137  ;;  %3157 = vpow2.f32 %v2000_v49  ;;  %v5217_v19 = vsub.f32 %v4348_v3, %v1775_v30  ;;  %v5220_v21 = vsub.f32 %v4357_v55, %v1775_v30  ;;  %v5223_v35 = vsub.f32 %v4354_v7, %v1775_v30 }
 0x29b   : > { %v3140_v51 = vpop.eup %3139  ;;  %3159 = vpow2.f32 %v2002_v38  ;;  %v5226_v54 = vsub.f32 %v4394_v22, %v1775_v30  ;;  %v2087_v5 = vadd.f32 %v3130_v10, %v2086_v50  ;;  %v2091_v53 = vadd.f32 %v3136_v46, %v3134_v23 }
 0x29c   : > { %6848 = vst [vmem:[#allocation222_spill] sm:$0xff] %v5217_v19  ;;  %6849 = vst [vmem:[#allocation223_spill] sm:$0xff] %v5220_v21  ;;  %v3142_v45 = vpop.eup %3141  ;;  %3161 = vpow2.f32 %v2004_v0  ;;  %v2008_v42 = vmul.f32 1.442695, %v5217_v19  ;;  %v2010_v3 = vmul.f32 1.442695, %v5220_v21 }
 0x29d   : > { %6850 = vst [vmem:[#allocation224_spill] sm:$0xff] %v5223_v35  ;;  %6851 = vst [vmem:[#allocation225_spill] sm:$0xff] %v5226_v54  ;;  %v3144_v43 = vpop.eup %3143  ;;  %3163 = vpow2.f32 %v2006_v28  ;;  %v2012_v55 = vmul.f32 1.442695, %v5223_v35  ;;  %v2088_v16 = vadd.f32 %v3132_v58, %v2087_v5  ;;  %v2092_v7 = vadd.f32 %v3138_v62, %v2091_v53 }
 0x29e   : > { %v3146_v18 = vpop.eup %3145  ;;  %3165 = vpow2.f32 %v2008_v42  ;;  %v2096_v12 = vadd.f32 %v3144_v43, %v3142_v45  ;;  %v2014_v22 = vmul.f32 1.442695, %v5226_v54 }
 0x29f   : > { %v3148_v49 = vpop.eup %3147  ;;  %3167 = vpow2.f32 %v2010_v3  ;;  %2089 = vadd.xlane.f32.xlu0 %v2088_v16  ;;  %v2093_v10 = vadd.f32 %v3140_v51, %v2092_v7 }
 0x2a0   : > { %v3150_v23 = vpop.eup %3149  ;;  %v2097_v30 = vadd.f32 %v3146_v18, %v2096_v12  ;;  %3169 = vpow2.f32 %v2012_v55 }
 0x2a1   : > { %v3152_v50 = vpop.eup %3151  ;;  %2094 = vadd.xlane.f32.xlu1 %v2093_v10  ;;  %3171 = vpow2.f32 %v2014_v22 }
 0x2a2   : > { %v3154_v46 = vpop.eup %3153  ;;  %v2098_v38 = vadd.f32 %v3148_v49, %v2097_v30  ;;  %v2101_v0 = vadd.f32 %v3152_v50, %v3150_v23  ;;  %v5232_v22 = vpop.xlane.xlu0 %1459 }
 0x2a3   : > { %v3156_v28 = vpop.eup %3155  ;;  %6852 = vst [vmem:[#allocation226_spill] sm:$0xff] %v5232_v22  ;;  %3173 = vlog2.f32 %v5232_v22  ;;  %v6882_v22 = vld [vmem:[#allocation134_spill] sm:$0xff] }
 0x2a4   : > { %v3158_v58 = vpop.eup %3157  ;;  %2099 = vadd.xlane.f32.xlu0 %v2098_v38  ;;  %v2102_v62 = vadd.f32 %v3154_v46, %v2101_v0 }
 0x2a5   : > { %v3160_v5 = vpop.eup %3159 }
 0x2a6   : > { %v3162_v53 = vpop.eup %3161  ;;  %v2103_v45 = vadd.f32 %v3156_v28, %v2102_v62  ;;  %v2106_v42 = vadd.f32 %v3160_v5, %v3158_v58 }
 0x2a7   : > { %v3164_v3 = vpop.eup %3163 }
 0x2a8   : > { %v3166_v43 = vpop.eup %3165  ;;  %2104 = vadd.xlane.f32.xlu1 %v2103_v45  ;;  %v2107_v51 = vadd.f32 %v3162_v53, %v2106_v42  ;;  %v5234_v23 = vpop.xlane.xlu1 %1464 }
 0x2a9   : > { %v3168_v16 = vpop.eup %3167  ;;  %6853 = vst [vmem:[#allocation227_spill] sm:$0xff] %v5234_v23  ;;  %3175 = vlog2.f32 %v5234_v23  ;;  %v6875_v23 = vld [vmem:[#allocation122_spill] sm:$0xff] }
 0x2aa   : > { %v2108_v7 = vadd.f32 %v3164_v3, %v2107_v51  ;;  %v2111_v55 = vadd.f32 %v3168_v16, %v3166_v43  ;;  %v3170_v18 = vpop.eup %3169 }
 0x2ab   : > { %v3172_v49 = vpop.eup %3171 }
 0x2ac   : > { %2109 = vadd.xlane.f32.xlu0 %v2108_v7  ;;  %v2112_v12 = vadd.f32 %v3170_v18, %v2111_v55 }
 0x2ad   : > { %v5236_v30 = vpop.xlane.xlu0 %1469  ;;  %v3174_v45 = vpop.eup %3173 }
 0x2ae   : > { %v2113_v10 = vadd.f32 %v3172_v49, %v2112_v12  ;;  %6854 = vst [vmem:[#allocation228_spill] sm:$0xff] %v5236_v30  ;;  %3177 = vlog2.f32 %v5236_v30  ;;  %v5269_v16 = vmul.f32 0.6931472, %v3174_v45  ;;  %v6872_v45 = vld [vmem:[#allocation121_spill] sm:$0xff] }
 0x2b0   : > { %2114 = vadd.xlane.f32.xlu1 %v2113_v10  ;;  %v5238_v50 = vpop.xlane.xlu1 %1474 }
 0x2b1   : > { %6855 = vst [vmem:[#allocation229_spill] sm:$0xff] %v5238_v50  ;;  %3179 = vlog2.f32 %v5238_v50 }
 0x2b3   : > { %v3176_v3 = vpop.eup %3175 }
 0x2b4   : > { %v5272_v55 = vmul.f32 0.6931472, %v3176_v3  ;;  %v6868_v3 = vld [vmem:[#allocation118_spill] sm:$0xff] }
 0x2b5   : > { %v5240_v46 = vpop.xlane.xlu0 %1479 }
 0x2b6   : > { %6856 = vst [vmem:[#allocation230_spill] sm:$0xff] %v5240_v46  ;;  %v5242_v38 = vpop.xlane.xlu1 %1484  ;;  %3181 = vlog2.f32 %v5240_v46 }
 0x2b7   : > { %6857 = vst [vmem:[#allocation231_spill] sm:$0xff] %v5242_v38  ;;  %3183 = vlog2.f32 %v5242_v38 }
 0x2b8   : > { %v3178_v51 = vpop.eup %3177 }
 0x2b9   : > { %v5277_v49 = vmul.f32 0.6931472, %v3178_v51  ;;  %v6870_v51 = vld [vmem:[#allocation119_spill] sm:$0xff] }
 0x2bb   : > { %v3180_v7 = vpop.eup %3179 }
 0x2bd   : > { %v5244_v0 = vpop.xlane.xlu0 %1489 }
 0x2be   : > { %6858 = vst [vmem:[#allocation232_spill] sm:$0xff] %v5244_v0  ;;  %3185 = vlog2.f32 %v5244_v0 }
 0x2bf   : > { %v5247_v28 = vpop.xlane.xlu1 %1494 }
 0x2c0   : > { %6859 = vst [vmem:[#allocation233_spill] sm:$0xff] %v5247_v28  ;;  %3187 = vlog2.f32 %v5247_v28  ;;  %v3182_v12 = vpop.eup %3181  ;;  %v5282_v28 = vmul.f32 0.6931472, %v3180_v7 }
 0x2c1   : > { %v5299_v50 = vmul.f32 0.6931472, %v3182_v12 }
 0x2c5   : > { %v5250_v58 = vpop.xlane.xlu0 %1499 }
 0x2c6   : > { %6860 = vst [vmem:[#allocation234_spill] sm:$0xff] %v5250_v58  ;;  %3189 = vlog2.f32 %v5250_v58  ;;  %v3184_v58 = vpop.eup %3183 }
 0x2c7   : > { %v5254_v62 = vpop.xlane.xlu1 %1504  ;;  %v5306_v30 = vmul.f32 0.6931472, %v3184_v58 }
 0x2c8   : > { %6861 = vst [vmem:[#allocation235_spill] sm:$0xff] %v5254_v62  ;;  %3191 = vlog2.f32 %v5254_v62  ;;  %v3186_v46 = vpop.eup %3185 }
 0x2ca   : > { %v3188_v7 = vpop.eup %3187 }
 0x2cb   : > { %v5339_v37 = vmul.f32 0.6931472, %v3188_v7 }
 0x2cd   : > { %v5257_v5 = vpop.xlane.xlu0 %1509 }
 0x2ce   : > { %6862 = vst [vmem:[#allocation236_spill] sm:$0xff] %v5257_v5  ;;  %3193 = vlog2.f32 %v5257_v5 }
 0x2cf   : > { %v5260_v53 = vpop.xlane.xlu1 %1514 }
 0x2d0   : > { %6863 = vst [vmem:[#allocation237_spill] sm:$0xff] %v5260_v53  ;;  %3195 = vlog2.f32 %v5260_v53  ;;  %v6871_v53 = vld [vmem:[#allocation120_spill] sm:$0xff] }
 0x2d5   : > { %v5263_v42 = vpop.xlane.xlu0 %1519 }
 0x2d6   : > { %6864 = vst [vmem:[#allocation238_spill] sm:$0xff] %v5263_v42  ;;  %3197 = vlog2.f32 %v5263_v42 }
 0x2d7   : > { %v5267_v43 = vpop.xlane.xlu1 %1524 }
 0x2d8   : > { %6865 = vst [vmem:[#allocation239_spill] sm:$0xff] %v5267_v43  ;;  %3199 = vlog2.f32 %v5267_v43  ;;  %v5322_v43 = vmul.f32 0.6931472, %v3186_v46 }
 0x2dd   : > { %v5275_v18 = vpop.xlane.xlu0 %1529 }
 0x2de   : > { %6866 = vst [vmem:[#allocation240_spill] sm:$0xff] %v5275_v18  ;;  %3201 = vlog2.f32 %v5275_v18  ;;  %v3190_v18 = vpop.eup %3189 }
 0x2df   : > { %v5280_v10 = vpop.xlane.xlu1 %1534  ;;  %v3192_v5 = vpop.eup %3191  ;;  %v5348_v0 = vmul.f32 0.6931472, %v3190_v18 }
 0x2e0   : > { %6867 = vst [vmem:[#allocation241_spill] sm:$0xff] %v5280_v10  ;;  %3203 = vlog2.f32 %v5280_v10  ;;  %v3194_v54 = vpop.eup %3193 }
 0x2e1   : > { %6878 = vst [vmem:[#allocation122_spill] sm:$0xff] %v5348_v0  ;;  %v3196_v46 = vpop.eup %3195  ;;  %v6939_v0 = vld [vmem:[#allocation52_spill] sm:$0xff] }
 0x2e2   : > { %v3198_v58 = vpop.eup %3197 }
 0x2e3   : > { %v3200_v19 = vpop.eup %3199  ;;  %v5386_v17 = vmul.f32 0.6931472, %v3198_v58 }
 0x2e4   : > { %v5400_v56 = vmul.f32 0.6931472, %v3200_v19 }
 0x2e5   : > { %v5289_v62 = vpop.xlane.xlu0 %1539 }
 0x2e6   : > { %6869 = vst [vmem:[#allocation118_spill] sm:$0xff] %v5289_v62  ;;  %3205 = vlog2.f32 %v5289_v62  ;;  %v6876_v62 = vld [vmem:[#allocation126_spill] sm:$0xff]  ;;  %6893 = vst [vmem:[#allocation242_spill] sm:$0xff] %v5400_v56 }
 0x2e7   : > { %v5309_v38 = vpop.xlane.xlu1 %1544 }
 0x2e8   : > { %6873 = vst [vmem:[#allocation119_spill] sm:$0xff] %v5309_v38  ;;  %3207 = vlog2.f32 %v5309_v38  ;;  %v5355_v38 = vmul.f32 0.6931472, %v3192_v5  ;;  %v3202_v10 = vpop.eup %3201 }
 0x2e9   : > { %v5406_v34 = vmul.f32 0.6931472, %v3202_v10  ;;  %v6946_v10 = vld [vmem:[#allocation123_spill] sm:$0xff] }
 0x2ea   : > { %6879 = vst [vmem:[#allocation126_spill] sm:$0xff] %v5355_v38  ;;  %v3204_v31 = vpop.eup %3203 }
 0x2eb   : > { %6896 = vst [vmem:[#allocation243_spill] sm:$0xff] %v5406_v34  ;;  %v5414_v7 = vmul.f32 0.6931472, %v3204_v31  ;;  %v6934_v34 = vld [vmem:[#allocation50_spill] sm:$0xff] }
 0x2ed   : > { %v5325_v42 = vpop.xlane.xlu0 %1549  ;;  %6900 = vst [vmem:[#allocation244_spill] sm:$0xff] %v5414_v7  ;;  %v6945_v7 = vld [vmem:[#allocation55_spill] sm:$0xff] }
 0x2ee   : > { %6874 = vst [vmem:[#allocation120_spill] sm:$0xff] %v5325_v42  ;;  %3209 = vlog2.f32 %v5325_v42  ;;  %v5363_v42 = vmul.f32 0.6931472, %v3194_v54  ;;  %v6883_v54 = vld [vmem:[#allocation139_spill] sm:$0xff] }
 0x2ef   : > { %v5342_v12 = vpop.xlane.xlu1 %1554  ;;  %6886 = vst [vmem:[#allocation139_spill] sm:$0xff] %v5386_v17 }
 0x2f0   : > { %6877 = vst [vmem:[#allocation121_spill] sm:$0xff] %v5342_v12  ;;  %6881 = vst [vmem:[#allocation130_spill] sm:$0xff] %v5363_v42  ;;  %3211 = vlog2.f32 %v5342_v12  ;;  %v5378_v12 = vmul.f32 0.6931472, %v3196_v46  ;;  %v3206_v35 = vpop.eup %3205  ;;  %v6944_v46 = vsub.f32 %v6871_v53, %v5269_v16  ;;  %v6951_v53 = vld [vmem:[#allocation125_spill] sm:$0xff] }
 0x2f1   : > { %v5422_v5 = vmul.f32 0.6931472, %v3206_v35 }
 0x2f2   : > { %6884 = vst [vmem:[#allocation134_spill] sm:$0xff] %v5378_v12  ;;  %v3208_v19 = vpop.eup %3207 }
 0x2f3   : > { %6904 = vst [vmem:[#allocation245_spill] sm:$0xff] %v5422_v5  ;;  %v5438_v39 = vmul.f32 0.6931472, %v3208_v19  ;;  %v6933_v5 = vld [vmem:[#allocation51_spill] sm:$0xff] }
 0x2f5   : > { %v2020_v33 = vpop.xlane.xlu0 %2019  ;;  %6912 = vst [vmem:[#allocation246_spill] sm:$0xff] %v5438_v39 }
 0x2f6   : > { %3213 = vlog2.f32 %v2020_v33  ;;  %v6932_v33 = vld [vmem:[#allocation49_spill] sm:$0xff] }
 0x2f7   : > { %v2025_v63 = vpop.xlane.xlu1 %2024 }
 0x2f8   : > { %3215 = vlog2.f32 %v2025_v63  ;;  %v3210_v38 = vpop.eup %3209 }
 0x2f9   : > { %v5446_v8 = vmul.f32 0.6931472, %v3210_v38 }
 0x2fa   : > { %v3212_v42 = vpop.eup %3211 }
 0x2fb   : > { %6916 = vst [vmem:[#allocation247_spill] sm:$0xff] %v5446_v8  ;;  %v5460_v63 = vmul.f32 0.6931472, %v3212_v42 }
 0x2fd   : > { %v2030_v27 = vpop.xlane.xlu0 %2029 }
 0x2fe   : > { %3217 = vlog2.f32 %v2030_v27 }
 0x2ff   : > { %v2035_v35 = vpop.xlane.xlu1 %2034 }
 0x300   : > { %v3214_v27 = vpop.eup %3213  ;;  %3219 = vlog2.f32 %v2035_v35  ;;  %v6936_v35 = vld [vmem:[#allocation54_spill] sm:$0xff] }
 0x301   : > { %v2117_v56 = vmul.f32 0.6931472, %v3214_v27  ;;  %v6940_v27 = vld [vmem:[#allocation53_spill] sm:$0xff] }
 0x302   : > { %v3216_v38 = vpop.eup %3215 }
 0x303   : > { %v2156_v18 = vsub.f32 %v6932_v33, %v2117_v56  ;;  %v2157_v2 = vsub.f32 %v6933_v5, %v2117_v56  ;;  %v2119_v58 = vmul.f32 0.6931472, %v3216_v38  ;;  %v2158_v21 = vsub.f32 %v6934_v34, %v2117_v56 }
 0x304   : > { %v2159_v42 = vsub.f32 %v6936_v35, %v2117_v56  ;;  %v6941_v5 = vsub.f32 %v4315_v24, %v5269_v16  ;;  %v6942_v38 = vsub.f32 %v6868_v3, %v5269_v16  ;;  %v6943_v56 = vsub.f32 %v6870_v51, %v5269_v16  ;;  %v6947_v24 = vld [vmem:[#allocation124_spill] sm:$0xff] }
 0x305   : > { %v2160_v12 = vsub.f32 %v6939_v0, %v2119_v58  ;;  %v2161_v33 = vsub.f32 %v6940_v27, %v2119_v58  ;;  %v2040_v39 = vpop.xlane.xlu0 %2039  ;;  %v2162_v27 = vsub.f32 %v6945_v7, %v2119_v58  ;;  %v6952_v7 = vsub.f32 %v4363_v59, %v5272_v55  ;;  %v6958_v59 = vld [vmem:[#allocation47_spill] sm:$0xff] }
 0x306   : > { %v2236_v34 = vsub.f32 %v6941_v5, %v2156_v18  ;;  %v2237_v17 = vsub.f32 %v6942_v38, %v2157_v2  ;;  %3221 = vlog2.f32 %v2040_v39  ;;  %v2238_v35 = vsub.f32 %v6943_v56, %v2158_v21  ;;  %v6948_v5 = vld [vmem:[#allocation56_spill] sm:$0xff]  ;;  %v6950_v21 = vld [vmem:[#allocation45_spill] sm:$0xff]  ;;  %v6955_v38 = vld [vmem:[#allocation127_spill] sm:$0xff] }
 0x307   : > { %v2239_v0 = vsub.f32 %v6944_v46, %v2159_v42  ;;  %v2045_v31 = vpop.xlane.xlu1 %2044  ;;  %v2163_v8 = vsub.f32 %v6948_v5, %v2119_v58  ;;  %v6949_v39 = vsub.f32 %v4360_v4, %v5272_v55  ;;  %v2241_v46 = vsub.f32 %v6952_v7, %v2161_v33  ;;  %v6966_v33 = vld [vmem:[#allocation62_spill] sm:$0xff] }
 0x308   : > { %v2316_v19 = vmul.f32 %v6946_v10, %v2236_v34  ;;  %v2317_v18 = vmul.f32 %v6947_v24, %v2237_v17  ;;  %v3218_v3 = vpop.eup %3217  ;;  %3223 = vlog2.f32 %v2045_v31  ;;  %v2318_v16 = vmul.f32 %v6951_v53, %v2238_v35  ;;  %v6956_v31 = vld [vmem:[#allocation128_spill] sm:$0xff]  ;;  %v6957_v35 = vld [vmem:[#allocation129_spill] sm:$0xff]  ;;  %v6961_v53 = vld [vmem:[#allocation131_spill] sm:$0xff] }
 0x309   : > { %v2240_v2 = vsub.f32 %v6949_v39, %v2160_v12  ;;  %v2121_v10 = vmul.f32 0.6931472, %v3218_v3  ;;  %v6953_v17 = vsub.f32 %v4366_v41, %v5272_v55  ;;  %v6954_v4 = vsub.f32 %v6872_v45, %v5272_v55  ;;  %v6959_v39 = vld [vmem:[#allocation57_spill] sm:$0xff]  ;;  %v6962_v55 = vld [vmem:[#allocation132_spill] sm:$0xff] }
 0x30a   : > { %v2396_v42 = vadd.f32 %v2317_v18, %v2316_v19  ;;  %v3220_v34 = vpop.eup %3219  ;;  %v2319_v56 = vmul.f32 %v6955_v38, %v2239_v0  ;;  %v2321_v5 = vmul.f32 %v6957_v35, %v2241_v46  ;;  %v6960_v18 = vld [vmem:[#allocation59_spill] sm:$0xff]  ;;  %v6965_v38 = vld [vmem:[#allocation61_spill] sm:$0xff] }
 0x30b   : > { %v2242_v58 = vsub.f32 %v6953_v17, %v2162_v27  ;;  %v2243_v12 = vsub.f32 %v6954_v4, %v2163_v8  ;;  %v2320_v24 = vmul.f32 %v6956_v31, %v2240_v2  ;;  %v2164_v19 = vsub.f32 %v6959_v39, %v2121_v10  ;;  %v6963_v17 = vld [vmem:[#allocation58_spill] sm:$0xff]  ;;  %v6964_v4 = vld [vmem:[#allocation60_spill] sm:$0xff] }
 0x30c   : > { %v2165_v3 = vsub.f32 %v6960_v18, %v2121_v10  ;;  %v2123_v41 = vmul.f32 0.6931472, %v3220_v34  ;;  %v2397_v27 = vadd.f32 %v2396_v42, %v2318_v16  ;;  %v2166_v0 = vsub.f32 %v6963_v17, %v2121_v10  ;;  %v6975_v17 = vld [vmem:[#allocation136_spill] sm:$0xff] }
 0x30d   : > { %v2322_v7 = vmul.f32 %v6961_v53, %v2242_v58  ;;  %v2323_v8 = vmul.f32 %v6962_v55, %v2243_v12  ;;  %v2401_v45 = vadd.f32 %v2321_v5, %v2320_v24  ;;  %v2050_v31 = vpop.xlane.xlu0 %2049  ;;  %v2167_v51 = vsub.f32 %v6966_v33, %v2121_v10  ;;  %v6971_v33 = vld [vmem:[#allocation63_spill] sm:$0xff] }
 0x30e   : > { %v2168_v2 = vsub.f32 %v6964_v4, %v2123_v41  ;;  %v2169_v46 = vsub.f32 %v6965_v38, %v2123_v41  ;;  %v2398_v35 = vadd.f32 %v2397_v27, %v2319_v56  ;;  %3225 = vlog2.f32 %v2050_v31  ;;  %v6972_v27 = vld [vmem:[#allocation64_spill] sm:$0xff] }
 0x30f   : > { %v2402_v39 = vadd.f32 %v2401_v45, %v2322_v7  ;;  %v6967_v16 = vsub.f32 %v4378_v1, %v5277_v49  ;;  %v6968_v58 = vsub.f32 %v4382_v14, %v5277_v49  ;;  %v2055_v34 = vpop.xlane.xlu1 %2054  ;;  %v6969_v24 = vsub.f32 %v4385_v25, %v5277_v49  ;;  %v6973_v7 = vld [vmem:[#allocation133_spill] sm:$0xff] }
 0x310   : > { %2399 = vadd.xlane.f32.xlu0 %v2398_v35  ;;  %v6970_v56 = vsub.f32 %v4388_v40, %v5277_v49  ;;  %v2170_v18 = vsub.f32 %v6971_v33, %v2123_v41  ;;  %v2171_v53 = vsub.f32 %v6972_v27, %v2123_v41  ;;  %v3222_v1 = vpop.eup %3221  ;;  %3227 = vlog2.f32 %v2055_v34  ;;  %v6976_v25 = vld [vmem:[#allocation137_spill] sm:$0xff]  ;;  %v6983_v34 = vld [vmem:[#allocation138_spill] sm:$0xff] }
 0x311   : > { %v2244_v42 = vsub.f32 %v6967_v16, %v2164_v19  ;;  %v2245_v12 = vsub.f32 %v6968_v58, %v2165_v3  ;;  %v2246_v5 = vsub.f32 %v6969_v24, %v2166_v0  ;;  %v2403_v19 = vadd.f32 %v2402_v39, %v2323_v8  ;;  %v6974_v3 = vld [vmem:[#allocation135_spill] sm:$0xff]  ;;  %v6986_v33 = vld [vmem:[#allocation142_spill] sm:$0xff] }
 0x312   : > { %v2247_v10 = vsub.f32 %v6970_v56, %v2167_v51  ;;  %v2125_v45 = vmul.f32 0.6931472, %v3222_v1  ;;  %v6977_v40 = vsub.f32 %v4399_v36, %v5282_v28  ;;  %v3224_v51 = vpop.eup %3223  ;;  %v6978_v41 = vsub.f32 %v4402_v61, %v5282_v28  ;;  %v6984_v56 = vld [vmem:[#allocation140_spill] sm:$0xff]  ;;  %v6985_v61 = vld [vmem:[#allocation141_spill] sm:$0xff] }
 0x313   : > { %v2324_v14 = vmul.f32 %v6973_v7, %v2244_v42  ;;  %v2325_v55 = vmul.f32 %v6974_v3, %v2245_v12  ;;  %v2326_v4 = vmul.f32 %v6975_v17, %v2246_v5  ;;  %2404 = vadd.xlane.f32.xlu1 %v2403_v19  ;;  %v6979_v31 = vsub.f32 %v4405_v57, %v5282_v28  ;;  %v6981_v42 = vld [vmem:[#allocation65_spill] sm:$0xff]  ;;  %v6982_v12 = vld [vmem:[#allocation67_spill] sm:$0xff]  ;;  %v6987_v57 = vld [vmem:[#allocation68_spill] sm:$0xff] }
 0x314   : > { %v2327_v0 = vmul.f32 %v6976_v25, %v2247_v10  ;;  %v2248_v49 = vsub.f32 %v6977_v40, %v2168_v2  ;;  %v2249_v8 = vsub.f32 %v6978_v41, %v2169_v46  ;;  %v6980_v39 = vsub.f32 %v6875_v23, %v5282_v28  ;;  %v6988_v1 = vld [vmem:[#allocation69_spill] sm:$0xff]  ;;  %v6989_v28 = vld [vmem:[#allocation66_spill] sm:$0xff] }
 0x315   : > { %v2406_v38 = vadd.f32 %v2325_v55, %v2324_v14  ;;  %v2250_v35 = vsub.f32 %v6979_v31, %v2170_v18  ;;  %v2172_v58 = vsub.f32 %v6981_v42, %v2125_v45  ;;  %v2173_v36 = vsub.f32 %v6982_v12, %v2125_v45  ;;  %v2060_v23 = vpop.xlane.xlu0 %2059  ;;  %v6990_v7 = vld [vmem:[#allocation70_spill] sm:$0xff] }
 0x316   : > { %v2251_v16 = vsub.f32 %v6980_v39, %v2171_v53  ;;  %v2127_v2 = vmul.f32 0.6931472, %v3224_v51  ;;  %v2328_v24 = vmul.f32 %v6983_v34, %v2248_v49  ;;  %v2329_v10 = vmul.f32 %v6984_v56, %v2249_v8  ;;  %v6995_v8 = vld [vmem:[#allocation71_spill] sm:$0xff]  ;;  %v7000_v34 = vld [vmem:[#allocation149_spill] sm:$0xff] }
 0x317   : > { %v2407_v5 = vadd.f32 %v2406_v38, %v2326_v4  ;;  %v2330_v46 = vmul.f32 %v6985_v61, %v2250_v35  ;;  %v2174_v53 = vsub.f32 %v6989_v28, %v2125_v45  ;;  %v2175_v14 = vsub.f32 %v6990_v7, %v2125_v45  ;;  %v2065_v25 = vpop.xlane.xlu1 %2064  ;;  %v6996_v35 = vld [vmem:[#allocation143_spill] sm:$0xff] }
 0x318   : > { %v2331_v27 = vmul.f32 %v6986_v33, %v2251_v16  ;;  %v2176_v18 = vsub.f32 %v6987_v57, %v2127_v2  ;;  %v2177_v19 = vsub.f32 %v6988_v1, %v2127_v2  ;;  %3229 = vlog2.f32 %v2060_v23  ;;  %v3226_v31 = vpop.eup %3225  ;;  %v6997_v16 = vld [vmem:[#allocation72_spill] sm:$0xff]  ;;  %v7004_v33 = vld [vmem:[#allocation73_spill] sm:$0xff]  ;;  %v7005_v1 = vld [vmem:[#allocation75_spill] sm:$0xff] }
 0x319   : > { %v2408_v3 = vadd.f32 %v2407_v5, %v2327_v0  ;;  %v2411_v55 = vadd.f32 %v2329_v10, %v2328_v24  ;;  %v6991_v17 = vsub.f32 %v4422_v47, %v5299_v50  ;;  %v6992_v40 = vsub.f32 %v4425_v29, %v5299_v50 }
 0x31a   : > { %v6993_v51 = vsub.f32 %v6876_v62, %v5299_v50  ;;  %v6994_v41 = vsub.f32 %v4434_v26, %v5299_v50  ;;  %v2178_v0 = vsub.f32 %v6995_v8, %v2127_v2  ;;  %3231 = vlog2.f32 %v2065_v25  ;;  %v3228_v5 = vpop.eup %3227 }
 0x31b   : > { %v2252_v4 = vsub.f32 %v6991_v17, %v2172_v58  ;;  %v2253_v49 = vsub.f32 %v6992_v40, %v2173_v36  ;;  %2409 = vadd.xlane.f32.xlu0 %v2408_v3  ;;  %v2412_v47 = vadd.f32 %v2411_v55, %v2330_v46  ;;  %v2179_v42 = vsub.f32 %v6997_v16, %v2127_v2  ;;  %v6998_v58 = vld [vmem:[#allocation146_spill] sm:$0xff]  ;;  %v6999_v36 = vld [vmem:[#allocation148_spill] sm:$0xff]  ;;  %v7011_v17 = vld [vmem:[#allocation77_spill] sm:$0xff] }
 0x31c   : > { %v2254_v38 = vsub.f32 %v6993_v51, %v2174_v53  ;;  %v2255_v45 = vsub.f32 %v6994_v41, %v2175_v14  ;;  %v2129_v29 = vmul.f32 0.6931472, %v3226_v31  ;;  %v7001_v50 = vsub.f32 %v4441_v48, %v5306_v30  ;;  %v7008_v14 = vld [vmem:[#allocation155_spill] sm:$0xff]  ;;  %v7010_v55 = vld [vmem:[#allocation76_spill] sm:$0xff] }
 0x31d   : > { %v2332_v39 = vmul.f32 %v6996_v35, %v2252_v4  ;;  %v2333_v12 = vmul.f32 %v6998_v58, %v2253_v49  ;;  %v2413_v26 = vadd.f32 %v2412_v47, %v2331_v27  ;;  %v7002_v10 = vsub.f32 %v4444_v6, %v5306_v30  ;;  %v2070_v25 = vpop.xlane.xlu0 %2069  ;;  %v7012_v49 = vld [vmem:[#allocation74_spill] sm:$0xff] }
 0x31e   : > { %v2334_v62 = vmul.f32 %v6999_v36, %v2254_v38  ;;  %v2335_v24 = vmul.f32 %v7000_v34, %v2255_v45  ;;  %v2256_v56 = vsub.f32 %v7001_v50, %v2176_v18  ;;  %v7003_v2 = vsub.f32 %v4450_v13, %v5306_v30  ;;  %v7007_v18 = vld [vmem:[#allocation152_spill] sm:$0xff]  ;;  %v7013_v38 = vld [vmem:[#allocation157_spill] sm:$0xff]  ;;  %v2075_v8 = vpop.xlane.xlu1 %2074 }
 0x31f   : > { %v2257_v61 = vsub.f32 %v7002_v10, %v2177_v19  ;;  %v2180_v57 = vsub.f32 %v7004_v33, %v2129_v29  ;;  %v2181_v23 = vsub.f32 %v7005_v1, %v2129_v29  ;;  %v2131_v28 = vmul.f32 0.6931472, %v3228_v5  ;;  %2414 = vadd.xlane.f32.xlu1 %v2413_v26  ;;  %v7009_v19 = vld [vmem:[#allocation156_spill] sm:$0xff]  ;;  %v7022_v50 = vld [vmem:[#allocation161_spill] sm:$0xff] }
 0x320   : > { %v2258_v46 = vsub.f32 %v7003_v2, %v2178_v0  ;;  %v2416_v53 = vadd.f32 %v2333_v12, %v2332_v39  ;;  %v7006_v27 = vsub.f32 %v6880_v20, %v5306_v30  ;;  %v2336_v7 = vmul.f32 %v7007_v18, %v2256_v56  ;;  %v7014_v20 = vld [vmem:[#allocation78_spill] sm:$0xff]  ;;  %v7021_v26 = vld [vmem:[#allocation160_spill] sm:$0xff] }
 0x321   : > { %v2337_v6 = vmul.f32 %v7008_v14, %v2257_v61  ;;  %v2184_v13 = vsub.f32 %v7010_v55, %v2131_v28  ;;  %v2185_v4 = vsub.f32 %v7011_v17, %v2131_v28  ;;  %v2182_v51 = vsub.f32 %v7012_v49, %v2129_v29  ;;  %v7023_v61 = vld [vmem:[#allocation162_spill] sm:$0xff]  ;;  %v7032_v55 = vld [vmem:[#allocation84_spill] sm:$0xff]  ;;  %v7033_v17 = vld [vmem:[#allocation85_spill] sm:$0xff] }
 0x322   : > { %v2259_v48 = vsub.f32 %v7006_v27, %v2179_v42  ;;  %v2338_v3 = vmul.f32 %v7009_v19, %v2258_v46  ;;  %v2417_v40 = vadd.f32 %v2416_v53, %v2334_v62  ;;  %3233 = vlog2.f32 %v2070_v25  ;;  %v3230_v58 = vpop.eup %3229  ;;  %v7019_v62 = vld [vmem:[#allocation79_spill] sm:$0xff]  ;;  %v7024_v46 = vld [vmem:[#allocation80_spill] sm:$0xff]  ;;  %v7034_v49 = vld [vmem:[#allocation82_spill] sm:$0xff] }
 0x323   : > { %v2421_v45 = vadd.f32 %v2337_v6, %v2336_v7  ;;  %v2183_v30 = vsub.f32 %v7014_v20, %v2129_v29  ;;  %v7015_v31 = vsub.f32 %v4472_v60, %v5322_v43  ;;  %v7016_v35 = vsub.f32 %v4475_v44, %v5322_v43  ;;  %v7020_v60 = vld [vmem:[#allocation158_spill] sm:$0xff]  ;;  %v7031_v19 = vld [vmem:[#allocation163_spill] sm:$0xff] }
 0x324   : > { %v2339_v41 = vmul.f32 %v7013_v38, %v2259_v48  ;;  %v2418_v0 = vadd.f32 %v2417_v40, %v2335_v24  ;;  %v7017_v16 = vsub.f32 %v6882_v22, %v5322_v43  ;;  %3235 = vlog2.f32 %v2075_v8  ;;  %v3232_v10 = vpop.eup %3231  ;;  %v7037_v20 = vld [vmem:[#allocation166_spill] sm:$0xff] }
 0x325   : > { %v2260_v47 = vsub.f32 %v7015_v31, %v2180_v57  ;;  %v2261_v39 = vsub.f32 %v7016_v35, %v2181_v23  ;;  %v2422_v12 = vadd.f32 %v2421_v45, %v2338_v3  ;;  %v7018_v29 = vsub.f32 %v4484_v9, %v5322_v43  ;;  %v7026_v57 = vld [vmem:[#allocation81_spill] sm:$0xff]  ;;  %v7027_v23 = vld [vmem:[#allocation83_spill] sm:$0xff]  ;;  %v7038_v8 = vld [vmem:[#allocation86_spill] sm:$0xff] }
 0x326   : > { %v2262_v42 = vsub.f32 %v7017_v16, %v2182_v51  ;;  %v2186_v34 = vsub.f32 %v7019_v62, %v2131_v28  ;;  %v2133_v24 = vmul.f32 0.6931472, %v3230_v58  ;;  %2419 = vadd.xlane.f32.xlu0 %v2418_v0  ;;  %v2187_v33 = vsub.f32 %v7024_v46, %v2131_v28  ;;  %v2080_v38 = vpop.xlane.xlu0 %2079  ;;  %v7036_v45 = vld [vmem:[#allocation165_spill] sm:$0xff]  ;;  %v7039_v0 = vld [vmem:[#allocation122_spill] sm:$0xff]  ;;  %v7041_v35 = vld [vmem:[#allocation144_spill] sm:$0xff] }
 0x327   : > { %v2263_v36 = vsub.f32 %v7018_v29, %v2183_v30  ;;  %v2340_v5 = vmul.f32 %v7020_v60, %v2260_v47  ;;  %v2341_v44 = vmul.f32 %v7021_v26, %v2261_v39  ;;  %v2423_v22 = vadd.f32 %v2422_v12, %v2339_v41  ;;  %v7043_v12 = vld [vmem:[#allocation145_spill] sm:$0xff]  ;;  %v7045_v62 = vld [vmem:[#allocation147_spill] sm:$0xff]  ;;  %v7048_v26 = vld [vmem:[#allocation168_spill] sm:$0xff] }
 0x328   : > { %v2342_v56 = vmul.f32 %v7022_v50, %v2262_v42  ;;  %v7025_v9 = vsub.f32 %v4495_v52, %v5339_v37  ;;  %v2188_v1 = vsub.f32 %v7026_v57, %v2133_v24  ;;  %v2189_v53 = vsub.f32 %v7027_v23, %v2133_v24  ;;  %v7049_v50 = vld [vmem:[#allocation87_spill] sm:$0xff]  ;;  %v7051_v46 = vld [vmem:[#allocation170_spill] sm:$0xff]  ;;  %v7053_v57 = vld [vmem:[#allocation89_spill] sm:$0xff] }
 0x329   : > { %v2343_v2 = vmul.f32 %v7023_v61, %v2263_v36  ;;  %v2135_v27 = vmul.f32 0.6931472, %v3232_v10  ;;  %v2426_v48 = vadd.f32 %v2341_v44, %v2340_v5  ;;  %2424 = vadd.xlane.f32.xlu1 %v2423_v22  ;;  %v7028_v18 = vsub.f32 %v4498_v32, %v5339_v37  ;;  %v2085_v32 = vpop.xlane.xlu1 %2084  ;;  %v7047_v5 = vld [vmem:[#allocation167_spill] sm:$0xff]  ;;  %v7050_v61 = vld [vmem:[#allocation169_spill] sm:$0xff] }
 0x32a   : > { %v2264_v43 = vsub.f32 %v7025_v9, %v2184_v13  ;;  %v7029_v14 = vsub.f32 %v4503_v15, %v5339_v37  ;;  %v7030_v28 = vsub.f32 %v6883_v54, %v5339_v37  ;;  %v2190_v51 = vsub.f32 %v7034_v49, %v2133_v24  ;;  %v7052_v9 = vld [vmem:[#allocation88_spill] sm:$0xff]  ;;  %v7054_v23 = vld [vmem:[#allocation91_spill] sm:$0xff] }
 0x32b   : > { %v2265_v7 = vsub.f32 %v7028_v18, %v2185_v4  ;;  %v2192_v13 = vsub.f32 %v7032_v55, %v2135_v27  ;;  %v2193_v25 = vsub.f32 %v7033_v17, %v2135_v27  ;;  %v2427_v40 = vadd.f32 %v2426_v48, %v2342_v56  ;;  %v7035_v4 = vld [vmem:[#allocation164_spill] sm:$0xff]  ;;  %v7060_v17 = vld [vmem:[#allocation153_spill] sm:$0xff] }
 0x32c   : > { %v2266_v6 = vsub.f32 %v7029_v14, %v2186_v34  ;;  %v2267_v52 = vsub.f32 %v7030_v28, %v2187_v33  ;;  %v2344_v3 = vmul.f32 %v7031_v19, %v2264_v43  ;;  %v2191_v37 = vsub.f32 %v7038_v8, %v2133_v24  ;;  %v3234_v42 = vpop.eup %3233  ;;  %v7055_v14 = vld [vmem:[#allocation150_spill] sm:$0xff]  ;;  %v7058_v19 = vld [vmem:[#allocation151_spill] sm:$0xff]  ;;  %v7067_v8 = vld [vmem:[#allocation172_spill] sm:$0xff] }
 0x32d   : > { %v2345_v41 = vmul.f32 %v7035_v4, %v2265_v7  ;;  %3237 = vlog2.f32 %v2080_v38  ;;  %v2428_v54 = vadd.f32 %v2427_v40, %v2343_v2  ;;  %v7040_v31 = vsub.f32 %v4528_v11, %v7039_v0  ;;  %v7063_v38 = vld [vmem:[#allocation93_spill] sm:$0xff]  ;;  %v2090_v4 = vpop.xlane.xlu0 %2089 }
 0x32e   : > { %v2346_v15 = vmul.f32 %v7036_v45, %v2266_v6  ;;  %v2347_v30 = vmul.f32 %v7037_v20, %v2267_v52  ;;  %v7042_v39 = vsub.f32 %v7041_v35, %v7039_v0  ;;  %3239 = vlog2.f32 %v2085_v32  ;;  %v3236_v10 = vpop.eup %3235  ;;  %v7056_v6 = vld [vmem:[#allocation126_spill] sm:$0xff] }
 0x32f   : > { %v2268_v47 = vsub.f32 %v7040_v31, %v2188_v1  ;;  %v2431_v58 = vadd.f32 %v2345_v41, %v2344_v3  ;;  %v7044_v29 = vsub.f32 %v7043_v12, %v7039_v0  ;;  %v7046_v34 = vsub.f32 %v7045_v62, %v7039_v0  ;;  %2429 = vadd.xlane.f32.xlu0 %v2428_v54  ;;  %v7064_v45 = vld [vmem:[#allocation154_spill] sm:$0xff]  ;;  %v2095_v0 = vpop.xlane.xlu1 %2094 }
 0x330   : > { %v2269_v16 = vsub.f32 %v7042_v39, %v2189_v53  ;;  %v2137_v60 = vmul.f32 0.6931472, %v3234_v42  ;;  %v2194_v56 = vsub.f32 %v7049_v50, %v2135_v27  ;;  %v2195_v43 = vsub.f32 %v7052_v9, %v2135_v27  ;;  %v7062_v27 = vld [vmem:[#allocation92_spill] sm:$0xff]  ;;  %v7070_v39 = vld [vmem:[#allocation90_spill] sm:$0xff] }
 0x331   : > { %v2270_v36 = vsub.f32 %v7044_v29, %v2190_v51  ;;  %v2271_v24 = vsub.f32 %v7046_v34, %v2191_v37  ;;  %v2348_v11 = vmul.f32 %v7047_v5, %v2268_v47  ;;  %v2432_v22 = vadd.f32 %v2431_v58, %v2346_v15  ;;  %v7068_v37 = vld [vmem:[#allocation173_spill] sm:$0xff]  ;;  %v7069_v47 = vld [vmem:[#allocation174_spill] sm:$0xff]  ;;  %v7072_v29 = vld [vmem:[#allocation159_spill] sm:$0xff] }
 0x332   : > { %v2349_v44 = vmul.f32 %v7048_v26, %v2269_v16  ;;  %v2196_v1 = vsub.f32 %v7053_v57, %v2137_v60  ;;  %v2197_v53 = vsub.f32 %v7054_v23, %v2137_v60  ;;  %v2139_v48 = vmul.f32 0.6931472, %v3236_v10  ;;  %v7071_v42 = vld [vmem:[#allocation94_spill] sm:$0xff]  ;;  %v7083_v23 = vld [vmem:[#allocation175_spill] sm:$0xff] }
 0x333   : > { %v2350_v2 = vmul.f32 %v7050_v61, %v2270_v36  ;;  %v2351_v33 = vmul.f32 %v7051_v46, %v2271_v24  ;;  %v2433_v7 = vadd.f32 %v2432_v22, %v2347_v30  ;;  %v7057_v28 = vsub.f32 %v7055_v14, %v7056_v6  ;;  %v7073_v36 = vld [vmem:[#allocation130_spill] sm:$0xff]  ;;  %v7075_v24 = vld [vmem:[#allocation11_spill] sm:$0xff]  ;;  %v7082_v46 = vld [vmem:[#allocation96_spill] sm:$0xff] }
 0x334   : > { %v2436_v18 = vadd.f32 %v2349_v44, %v2348_v11  ;;  %v7059_v3 = vsub.f32 %v7058_v19, %v7056_v6  ;;  %v7061_v40 = vsub.f32 %v7060_v17, %v7056_v6  ;;  %v2200_v51 = vsub.f32 %v7062_v27, %v2139_v48  ;;  %v7077_v44 = vld [vmem:[#allocation10_spill] sm:$0xff]  ;;  %v7081_v61 = vld [vmem:[#allocation95_spill] sm:$0xff] }
 0x335   : > { %v2272_v52 = vsub.f32 %v7057_v28, %v2192_v13  ;;  %v2201_v32 = vsub.f32 %v7063_v38, %v2139_v48  ;;  %v7065_v15 = vsub.f32 %v7064_v45, %v7056_v6  ;;  %2434 = vadd.xlane.f32.xlu1 %v2433_v7  ;;  %3241 = vlog2.f32 %v2090_v4  ;;  %v7066_v13 = vld [vmem:[#allocation171_spill] sm:$0xff]  ;;  %v7079_v10 = vld [vmem:[#allocation14_spill] sm:$0xff]  ;;  %v7085_v6 = vld [vmem:[#allocation177_spill] sm:$0xff] }
 0x336   : > { %v2273_v55 = vsub.f32 %v7059_v3, %v2193_v25  ;;  %v2274_v49 = vsub.f32 %v7061_v40, %v2194_v56  ;;  %v2437_v41 = vadd.f32 %v2436_v18, %v2350_v2  ;;  %v2198_v16 = vsub.f32 %v7070_v39, %v2137_v60  ;;  %v7084_v18 = vld [vmem:[#allocation176_spill] sm:$0xff]  ;;  %v7087_v3 = vld [vmem:[#allocation97_spill] sm:$0xff]  ;;  %v7088_v40 = vld [vmem:[#allocation178_spill] sm:$0xff] }
 0x337   : > { %v2275_v20 = vsub.f32 %v7065_v15, %v2195_v43  ;;  %v2352_v30 = vmul.f32 %v7066_v13, %v2272_v52  ;;  %v2199_v58 = vsub.f32 %v7071_v42, %v2137_v60  ;;  %3243 = vlog2.f32 %v2095_v0  ;;  %v3238_v26 = vpop.eup %3237  ;;  %v7086_v52 = vld [vmem:[#allocation48_spill] sm:$0xff]  ;;  %v7089_v27 = vld [vmem:[#allocation99_spill] sm:$0xff]  ;;  %v7092_v15 = vld [vmem:[#allocation134_spill] sm:$0xff] }
 0x338   : > { %v2353_v25 = vmul.f32 %v7067_v8, %v2273_v55  ;;  %v2354_v54 = vmul.f32 %v7068_v37, %v2274_v49  ;;  %v2438_v31 = vadd.f32 %v2437_v41, %v2351_v33  ;;  %v7074_v62 = vsub.f32 %v7072_v29, %v7073_v36  ;;  %v3240_v9 = vpop.eup %3239  ;;  %v7090_v4 = vld [vmem:[#allocation100_spill] sm:$0xff]  ;;  %v2105_v37 = vpop.xlane.xlu1 %2104  ;;  %v7096_v0 = vld [vmem:[#allocation15_spill] sm:$0xff]  ;;  %v7100_v42 = vld [vmem:[#allocation98_spill] sm:$0xff] }
 0x339   : > { %v2355_v35 = vmul.f32 %v7069_v47, %v2275_v20  ;;  %v7076_v5 = vsub.f32 %v7075_v24, %v7073_v36  ;;  %v7078_v50 = vsub.f32 %v7077_v44, %v7073_v36  ;;  %v7080_v22 = vsub.f32 %v7079_v10, %v7073_v36  ;;  %v7091_v45 = vld [vmem:[#allocation12_spill] sm:$0xff]  ;;  %v7104_v24 = vld [vmem:[#allocation101_spill] sm:$0xff] }
 0x33a   : > { %v2441_v12 = vadd.f32 %v2353_v25, %v2352_v30  ;;  %v2276_v34 = vsub.f32 %v7074_v62, %v2196_v1  ;;  %2439 = vadd.xlane.f32.xlu0 %v2438_v31  ;;  %v2202_v2 = vsub.f32 %v7081_v61, %v2139_v48  ;;  %v2203_v33 = vsub.f32 %v7082_v46, %v2139_v48  ;;  %v2100_v1 = vpop.xlane.xlu0 %2099  ;;  %v7094_v30 = vld [vmem:[#allocation13_spill] sm:$0xff]  ;;  %v7102_v29 = vld [vmem:[#allocation180_spill] sm:$0xff]  ;;  %v7103_v62 = vld [vmem:[#allocation102_spill] sm:$0xff] }
 0x33b   : > { %v2277_v11 = vsub.f32 %v7076_v5, %v2197_v53  ;;  %v2278_v56 = vsub.f32 %v7078_v50, %v2198_v16  ;;  %v2279_v60 = vsub.f32 %v7080_v22, %v2199_v58  ;;  %v2141_v43 = vmul.f32 0.6931472, %v3238_v26  ;;  %v7105_v26 = vld [vmem:[#allocation181_spill] sm:$0xff] }
 0x33c   : > { %v2442_v57 = vadd.f32 %v2441_v12, %v2354_v54  ;;  %v2356_v53 = vmul.f32 %v7083_v23, %v2276_v34  ;;  %v2143_v14 = vmul.f32 0.6931472, %v3240_v9  ;;  %3245 = vlog2.f32 %v2100_v1  ;;  %v7101_v12 = vld [vmem:[#allocation179_spill] sm:$0xff]  ;;  %v7106_v50 = vld [vmem:[#allocation17_spill] sm:$0xff]  ;;  %v7111_v9 = vld [vmem:[#allocation18_spill] sm:$0xff] }
 0x33d   : > { %v2357_v7 = vmul.f32 %v7084_v18, %v2277_v11  ;;  %v2358_v28 = vmul.f32 %v7085_v6, %v2278_v56  ;;  %v1675_v19 = vsub.f32 %v7086_v52, %v5460_v63  ;;  %v2204_v55 = vsub.f32 %v7087_v3, %v2141_v43  ;;  %v7107_v56 = vld [vmem:[#allocation139_spill] sm:$0xff]  ;;  %v7113_v23 = vld [vmem:[#allocation182_spill] sm:$0xff] }
 0x33e   : > { %v2443_v17 = vadd.f32 %v2442_v57, %v2355_v35  ;;  %v2359_v48 = vmul.f32 %v7088_v40, %v2279_v60  ;;  %v2205_v38 = vsub.f32 %v7089_v27, %v2141_v43  ;;  %v2208_v41 = vsub.f32 %v7090_v4, %v2143_v14  ;;  %v7098_v35 = vld [vmem:[#allocation16_spill] sm:$0xff]  ;;  %v2110_v18 = vpop.xlane.xlu0 %2109  ;;  %v7116_v3 = vld [vmem:[#allocation183_spill] sm:$0xff] }
 0x33f   : > { %v2446_v49 = vadd.f32 %v2357_v7, %v2356_v53  ;;  %v7093_v20 = vsub.f32 %v7091_v45, %v7092_v15  ;;  %v7095_v8 = vsub.f32 %v7094_v30, %v7092_v15  ;;  %v7097_v31 = vsub.f32 %v7096_v0, %v7092_v15  ;;  %v3242_v34 = vpop.eup %3241  ;;  %v7114_v7 = vld [vmem:[#allocation22_spill] sm:$0xff]  ;;  %v7119_v4 = vld [vmem:[#allocation104_spill] sm:$0xff]  ;;  %v7233_v52 = vld [vmem:[#allocation227_spill] sm:$0xff] }
 0x340   : > { %2444 = vadd.xlane.f32.xlu1 %v2443_v17  ;;  %v7099_v39 = vsub.f32 %v7098_v35, %v7092_v15  ;;  %v2206_v58 = vsub.f32 %v7100_v42, %v2141_v43  ;;  %3247 = vlog2.f32 %v2105_v37  ;;  %v2209_v5 = vsub.f32 %v7104_v24, %v2143_v14  ;;  %v7117_v17 = vld [vmem:[#allocation103_spill] sm:$0xff] }
 0x341   : > { %v2280_v13 = vsub.f32 %v7093_v20, %v2200_v51  ;;  %v2281_v25 = vsub.f32 %v7095_v8, %v2201_v32  ;;  %v2447_v54 = vadd.f32 %v2446_v49, %v2358_v28  ;;  %v2282_v47 = vsub.f32 %v7097_v31, %v2202_v2  ;;  %v7109_v2 = vld [vmem:[#allocation19_spill] sm:$0xff]  ;;  %v3244_v1 = vpop.eup %3243  ;;  %v7122_v8 = vld [vmem:[#allocation185_spill] sm:$0xff] }
 0x342   : > { %v2283_v16 = vsub.f32 %v7099_v39, %v2203_v33  ;;  %v2207_v32 = vsub.f32 %v7103_v62, %v2141_v43  ;;  %v7108_v10 = vsub.f32 %v7106_v50, %v7107_v56  ;;  %v2145_v60 = vmul.f32 0.6931472, %v3242_v34  ;;  %v7120_v15 = vld [vmem:[#allocation107_spill] sm:$0xff]  ;;  %v7125_v39 = vld [vmem:[#allocation20_spill] sm:$0xff] }
 0x343   : > { %v2360_v51 = vmul.f32 %v7101_v12, %v2280_v13  ;;  %v2361_v36 = vmul.f32 %v7102_v29, %v2281_v25  ;;  %v2448_v11 = vadd.f32 %v2447_v54, %v2359_v48  ;;  %v2362_v44 = vmul.f32 %v7105_v26, %v2282_v47  ;;  %v7118_v48 = vld [vmem:[#allocation105_spill] sm:$0xff]  ;;  %v7121_v13 = vld [vmem:[#allocation184_spill] sm:$0xff]  ;;  %v7124_v47 = vld [vmem:[#allocation186_spill] sm:$0xff] }
 0x344   : > { %v2284_v22 = vsub.f32 %v7108_v10, %v2204_v55  ;;  %v7110_v46 = vsub.f32 %v7109_v2, %v7107_v56  ;;  %v7112_v57 = vsub.f32 %v7111_v9, %v7107_v56  ;;  %v2363_v53 = vmul.f32 %v7113_v23, %v2283_v16  ;;  %v7123_v54 = vld [vmem:[#allocation108_spill] sm:$0xff]  ;;  %v7126_v16 = vld [vmem:[#allocation242_spill] sm:$0xff]  ;;  %v7128_v29 = vld [vmem:[#allocation21_spill] sm:$0xff] }
 0x345   : > { %v2451_v61 = vadd.f32 %v2361_v36, %v2360_v51  ;;  %2449 = vadd.xlane.f32.xlu0 %v2448_v11  ;;  %v7115_v6 = vsub.f32 %v7114_v7, %v7107_v56  ;;  %v2210_v40 = vsub.f32 %v7117_v17, %v2143_v14  ;;  %v2212_v49 = vsub.f32 %v7118_v48, %v2145_v60  ;;  %v7132_v11 = vld [vmem:[#allocation24_spill] sm:$0xff]  ;;  %v7134_v50 = vld [vmem:[#allocation187_spill] sm:$0xff]  ;;  %v7135_v56 = vld [vmem:[#allocation106_spill] sm:$0xff] }
 0x346   : > { %v2285_v33 = vsub.f32 %v7110_v46, %v2205_v38  ;;  %v2286_v43 = vsub.f32 %v7112_v57, %v2206_v58  ;;  %v2364_v55 = vmul.f32 %v7116_v3, %v2284_v22  ;;  %v2147_v27 = vmul.f32 0.6931472, %v3244_v1  ;;  %v3246_v37 = vpop.eup %3245  ;;  %v7136_v22 = vld [vmem:[#allocation109_spill] sm:$0xff] }
 0x347   : > { %v2287_v28 = vsub.f32 %v7115_v6, %v2207_v32  ;;  %v2452_v38 = vadd.f32 %v2451_v61, %v2362_v44  ;;  %v2211_v45 = vsub.f32 %v7119_v4, %v2143_v14  ;;  %v2213_v20 = vsub.f32 %v7120_v15, %v2145_v60  ;;  %v2115_v14 = vpop.xlane.xlu1 %2114  ;;  %v7130_v32 = vld [vmem:[#allocation23_spill] sm:$0xff]  ;;  %v7137_v2 = vld [vmem:[#allocation113_spill] sm:$0xff]  ;;  %v7147_v15 = vld [vmem:[#allocation190_spill] sm:$0xff] }
 0x348   : > { %3249 = vlog2.f32 %v2110_v18  ;;  %v2365_v30 = vmul.f32 %v7121_v13, %v2285_v33  ;;  %v2366_v25 = vmul.f32 %v7122_v8, %v2286_v43  ;;  %v2216_v0 = vsub.f32 %v7123_v54, %v2147_v27  ;;  %v7138_v33 = vld [vmem:[#allocation188_spill] sm:$0xff]  ;;  %v7139_v43 = vld [vmem:[#allocation115_spill] sm:$0xff]  ;;  %v7140_v23 = vld [vmem:[#allocation189_spill] sm:$0xff] }
 0x349   : > { %v2453_v31 = vadd.f32 %v2452_v38, %v2363_v53  ;;  %v2367_v35 = vmul.f32 %v7124_v47, %v2287_v28  ;;  %v7127_v42 = vsub.f32 %v7125_v39, %v7126_v16  ;;  %v5762_v12 = vmul.f32 0.6931472, %v3246_v37  ;;  %v7141_v18 = vld [vmem:[#allocation110_spill] sm:$0xff]  ;;  %v7142_v6 = vld [vmem:[#allocation25_spill] sm:$0xff]  ;;  %v7143_v28 = vld [vmem:[#allocation243_spill] sm:$0xff] }
 0x34a   : > { %v2456_v51 = vadd.f32 %v2365_v30, %v2364_v55  ;;  %v7129_v36 = vsub.f32 %v7128_v29, %v7126_v16  ;;  %v7131_v34 = vsub.f32 %v7130_v32, %v7126_v16  ;;  %3251 = vlog2.f32 %v2115_v14  ;;  %v3248_v57 = vpop.eup %3247  ;;  %v7145_v38 = vld [vmem:[#allocation27_spill] sm:$0xff]  ;;  %v7148_v30 = vld [vmem:[#allocation26_spill] sm:$0xff]  ;;  %v7156_v14 = vld [vmem:[#allocation117_spill] sm:$0xff] }
 0x34b   : > { %v2288_v58 = vsub.f32 %v7127_v42, %v2208_v41  ;;  %2454 = vadd.xlane.f32.xlu1 %v2453_v31  ;;  %v7133_v26 = vsub.f32 %v7132_v11, %v7126_v16  ;;  %v2214_v10 = vsub.f32 %v7135_v56, %v2145_v60  ;;  %v2217_v61 = vsub.f32 %v7136_v22, %v2147_v27  ;;  %v7150_v37 = vld [vmem:[#allocation191_spill] sm:$0xff]  ;;  %v7153_v39 = vld [vmem:[#allocation30_spill] sm:$0xff]  ;;  %v7157_v29 = vld [vmem:[#allocation193_spill] sm:$0xff] }
 0x34c   : > { %v2289_v62 = vsub.f32 %v7129_v36, %v2209_v5  ;;  %v2290_v24 = vsub.f32 %v7131_v34, %v2210_v40  ;;  %v2220_v46 = vsub.f32 %v7137_v2, %v5762_v12  ;;  %v2457_v5 = vadd.f32 %v2456_v51, %v2366_v25  ;;  %v7151_v54 = vld [vmem:[#allocation111_spill] sm:$0xff]  ;;  %v7159_v34 = vld [vmem:[#allocation28_spill] sm:$0xff]  ;;  %v7162_v56 = vld [vmem:[#allocation29_spill] sm:$0xff] }
 0x34d   : > { %v2291_v44 = vsub.f32 %v7133_v26, %v2211_v45  ;;  %v2368_v41 = vmul.f32 %v7134_v50, %v2288_v58  ;;  %v2221_v1 = vsub.f32 %v7139_v43, %v5762_v12  ;;  %v2215_v7 = vsub.f32 %v7141_v18, %v2145_v60  ;;  %v7164_v2 = vld [vmem:[#allocation31_spill] sm:$0xff] }
 0x34e   : > { %v2369_v9 = vmul.f32 %v7138_v33, %v2289_v62  ;;  %v2370_v53 = vmul.f32 %v7140_v23, %v2290_v24  ;;  %v7144_v3 = vsub.f32 %v7142_v6, %v7143_v28  ;;  %v5786_v17 = vmul.f32 0.6931472, %v3248_v57  ;;  %v7158_v62 = vld [vmem:[#allocation112_spill] sm:$0xff]  ;;  %v7168_v23 = vld [vmem:[#allocation195_spill] sm:$0xff] }
 0x34f   : > { %v2458_v40 = vadd.f32 %v2457_v5, %v2367_v35  ;;  %v7146_v4 = vsub.f32 %v7145_v38, %v7143_v28  ;;  %v2371_v13 = vmul.f32 %v7147_v15, %v2291_v44  ;;  %v7149_v8 = vsub.f32 %v7148_v30, %v7143_v28  ;;  %v7160_v24 = vld [vmem:[#allocation244_spill] sm:$0xff]  ;;  %v7173_v38 = vld [vmem:[#allocation218_spill] sm:$0xff] }
 0x350   : > { %v2292_v55 = vsub.f32 %v7144_v3, %v2212_v49  ;;  %v2461_v48 = vadd.f32 %v2369_v9, %v2368_v41  ;;  %v2218_v31 = vsub.f32 %v7151_v54, %v2147_v27  ;;  %v7152_v49 = vld [vmem:[#allocation116_spill] sm:$0xff]  ;;  %v7154_v16 = vsub.f32 %v7153_v39, %v7143_v28 }
 0x351   : > { %v2293_v45 = vsub.f32 %v7146_v4, %v2213_v20  ;;  %v2294_v25 = vsub.f32 %v7149_v8, %v2214_v10  ;;  %v2224_v47 = vsub.f32 %v7152_v49, %v5786_v17  ;;  %2459 = vadd.xlane.f32.xlu0 %v2458_v40  ;;  %v7155_v20 = vld [vmem:[#allocation192_spill] sm:$0xff]  ;;  %v2225_v51 = vsub.f32 %v7156_v14, %v5786_v17  ;;  %v7176_v8 = vld [vmem:[#allocation197_spill] sm:$0xff]  ;;  %v7183_v14 = vld [vmem:[#allocation34_spill] sm:$0xff] }
 0x352   : > { %v2372_v60 = vmul.f32 %v7150_v37, %v2292_v55  ;;  %v2462_v35 = vadd.f32 %v2461_v48, %v2370_v53  ;;  %v2295_v42 = vsub.f32 %v7154_v16, %v2215_v7  ;;  %v2219_v32 = vsub.f32 %v7158_v62, %v2147_v27  ;;  %v3250_v44 = vpop.eup %3249  ;;  %v7166_v57 = vld [vmem:[#allocation32_spill] sm:$0xff]  ;;  %v7170_v7 = vld [vmem:[#allocation194_spill] sm:$0xff]  ;;  %v7172_v55 = vld [vmem:[#allocation215_spill] sm:$0xff] }
 0x353   : > { %v2373_v58 = vmul.f32 %v7155_v20, %v2293_v45  ;;  %v2374_v36 = vmul.f32 %v7157_v29, %v2294_v25  ;;  %v7161_v11 = vsub.f32 %v7159_v34, %v7160_v24  ;;  %v7163_v10 = vsub.f32 %v7162_v56, %v7160_v24  ;;  %v7171_v3 = vld [vmem:[#allocation196_spill] sm:$0xff]  ;;  %v7174_v45 = vld [vmem:[#allocation219_spill] sm:$0xff]  ;;  %v7178_v49 = vld [vmem:[#allocation245_spill] sm:$0xff] }
 0x354   : > { %v2463_v50 = vadd.f32 %v2462_v35, %v2371_v13  ;;  %v7165_v5 = vsub.f32 %v7164_v2, %v7160_v24  ;;  %v2153_v9 = vmul.f32 0.6931472, %v3250_v44  ;;  %v7167_v43 = vsub.f32 %v7166_v57, %v7160_v24  ;;  %v3252_v48 = vpop.eup %3251  ;;  %v7175_v13 = vld [vmem:[#allocation220_spill] sm:$0xff]  ;;  %v7180_v16 = vld [vmem:[#allocation198_spill] sm:$0xff]  ;;  %v7181_v20 = vld [vmem:[#allocation35_spill] sm:$0xff] }
 0x355   : > { %v2296_v26 = vsub.f32 %v7161_v11, %v2216_v0  ;;  %v2466_v41 = vadd.f32 %v2373_v58, %v2372_v60  ;;  %v2297_v22 = vsub.f32 %v7163_v10, %v2217_v61  ;;  %v7169_v0 = vld [vmem:[#allocation114_spill] sm:$0xff]  ;;  %v2375_v6 = vmul.f32 %v7170_v7, %v2295_v42  ;;  %v7185_v62 = vld [vmem:[#allocation216_spill] sm:$0xff]  ;;  %v7187_v11 = vld [vmem:[#allocation223_spill] sm:$0xff] }
 0x356   : > { %v2298_v33 = vsub.f32 %v7165_v5, %v2218_v31  ;;  %v2299_v27 = vsub.f32 %v7167_v43, %v2219_v32  ;;  %v2222_v18 = vsub.f32 %v7169_v0, %v5762_v12  ;;  %2464 = vadd.xlane.f32.xlu1 %v2463_v50  ;;  %v2223_v40 = vsub.f32 %v7172_v55, %v5762_v12  ;;  %v7177_v31 = vld [vmem:[#allocation33_spill] sm:$0xff]  ;;  %v7186_v34 = vld [vmem:[#allocation222_spill] sm:$0xff]  ;;  %v7190_v56 = vld [vmem:[#allocation224_spill] sm:$0xff] }
 0x357   : > { %v2376_v53 = vmul.f32 %v7168_v23, %v2296_v26  ;;  %v2467_v28 = vadd.f32 %v2466_v41, %v2374_v36  ;;  %v2377_v61 = vmul.f32 %v7171_v3, %v2297_v22  ;;  %v2228_v4 = vsub.f32 %v7173_v38, %v2153_v9  ;;  %v7192_v2 = vld [vmem:[#allocation200_spill] sm:$0xff]  ;;  %v7196_v0 = vld [vmem:[#allocation246_spill] sm:$0xff]  ;;  %v7200_v55 = vld [vmem:[#allocation39_spill] sm:$0xff] }
 0x358   : > { %v2229_v15 = vsub.f32 %v7174_v45, %v2153_v9  ;;  %v2230_v30 = vsub.f32 %v7175_v13, %v2153_v9  ;;  %v2378_v25 = vmul.f32 %v7176_v8, %v2298_v33  ;;  %v2155_v37 = vmul.f32 0.6931472, %v3252_v48  ;;  %v7193_v33 = vld [vmem:[#allocation201_spill] sm:$0xff]  ;;  %v7204_v8 = vld [vmem:[#allocation247_spill] sm:$0xff] }
 0x359   : > { %v2468_v60 = vadd.f32 %v2467_v28, %v2375_v6  ;;  %v2471_v54 = vadd.f32 %v2377_v61, %v2376_v53  ;;  %v7179_v35 = vsub.f32 %v7177_v31, %v7178_v49  ;;  %v2379_v42 = vmul.f32 %v7180_v16, %v2299_v27  ;;  %v7194_v27 = vld [vmem:[#allocation217_spill] sm:$0xff]  ;;  %v7195_v53 = vld [vmem:[#allocation36_spill] sm:$0xff]  ;;  %v7208_v31 = vld [vmem:[#allocation203_spill] sm:$0xff] }
 0x35a   : > { %v7182_v12 = vsub.f32 %v7181_v20, %v7178_v49  ;;  %v7184_v29 = vsub.f32 %v7183_v14, %v7178_v49  ;;  %v2226_v32 = vsub.f32 %v7185_v62, %v5786_v17  ;;  %v2232_v24 = vsub.f32 %v7186_v34, %v2155_v37  ;;  %v7198_v6 = vld [vmem:[#allocation37_spill] sm:$0xff]  ;;  %v7212_v20 = vld [vmem:[#allocation202_spill] sm:$0xff] }
 0x35b   : > { %v2300_v39 = vsub.f32 %v7179_v35, %v2220_v46  ;;  %v2233_v26 = vsub.f32 %v7187_v11, %v2155_v37  ;;  %2469 = vadd.xlane.f32.xlu0 %v2468_v60  ;;  %v2472_v44 = vadd.f32 %v2471_v54, %v2378_v25  ;;  %v7188_v46 = vld [vmem:[#allocation38_spill] sm:$0xff]  ;;  %v2234_v10 = vsub.f32 %v7190_v56, %v2155_v37  ;;  %v7202_v38 = vld [vmem:[#allocation221_spill] sm:$0xff]  ;;  %v7209_v35 = vld [vmem:[#allocation204_spill] sm:$0xff] }
 0x35c   : > { %v2301_v58 = vsub.f32 %v7182_v12, %v2221_v1  ;;  %v2302_v36 = vsub.f32 %v7184_v29, %v2222_v18  ;;  %v7189_v50 = vsub.f32 %v7188_v46, %v7178_v49  ;;  %v7191_v1 = vld [vmem:[#allocation199_spill] sm:$0xff]  ;;  %v2227_v23 = vsub.f32 %v7194_v27, %v5786_v17  ;;  %v7203_v13 = vld [vmem:[#allocation41_spill] sm:$0xff]  ;;  %v7206_v17 = vld [vmem:[#allocation40_spill] sm:$0xff] }
 0x35d   : > { %v2380_v22 = vmul.f32 %v7191_v1, %v2300_v39  ;;  %v2473_v43 = vadd.f32 %v2472_v44, %v2379_v42  ;;  %v7197_v18 = vsub.f32 %v7195_v53, %v7196_v0  ;;  %v7199_v28 = vsub.f32 %v7198_v6, %v7196_v0  ;;  %v7210_v39 = vld [vmem:[#allocation43_spill] sm:$0xff]  ;;  %v7215_v29 = vld [vmem:[#allocation46_spill] sm:$0xff] }
 0x35e   : > { %v2303_v41 = vsub.f32 %v7189_v50, %v2223_v40  ;;  %v2381_v5 = vmul.f32 %v7192_v2, %v2301_v58  ;;  %v2382_v57 = vmul.f32 %v7193_v33, %v2302_v36  ;;  %v7201_v40 = vsub.f32 %v7200_v55, %v7196_v0  ;;  %v7213_v58 = vld [vmem:[#allocation42_spill] sm:$0xff]  ;;  %v7218_v44 = vld [vmem:[#allocation207_spill] sm:$0xff]  ;;  %v7219_v50 = vld [vmem:[#allocation208_spill] sm:$0xff] }
 0x35f   : > { %v2304_v7 = vsub.f32 %v7197_v18, %v2224_v47  ;;  %v2305_v3 = vsub.f32 %v7199_v28, %v2225_v51  ;;  %v2231_v45 = vsub.f32 %v7202_v38, %v2153_v9  ;;  %v7205_v25 = vsub.f32 %v7203_v13, %v7204_v8  ;;  %2474 = vadd.xlane.f32.xlu1 %v2473_v43  ;;  %v7223_v43 = vld [vmem:[#allocation44_spill] sm:$0xff]  ;;  %v7226_v18 = vld [vmem:[#allocation210_spill] sm:$0xff]  ;;  %v7228_v55 = vld [vmem:[#allocation211_spill] sm:$0xff] }
 0x360   : > { %v2476_v61 = vadd.f32 %v2381_v5, %v2380_v22  ;;  %v2306_v48 = vsub.f32 %v7201_v40, %v2226_v32  ;;  %v7207_v54 = vsub.f32 %v7206_v17, %v7196_v0  ;;  %v7211_v16 = vsub.f32 %v7210_v39, %v7204_v8  ;;  %v7217_v32 = vld [vmem:[#allocation205_spill] sm:$0xff]  ;;  %v7229_v40 = vld [vmem:[#allocation212_spill] sm:$0xff]  ;;  %v7231_v13 = vld [vmem:[#allocation214_spill] sm:$0xff] }
 0x361   : > { %v2308_v60 = vsub.f32 %v7205_v25, %v2228_v4  ;;  %v2384_v49 = vmul.f32 %v7208_v31, %v2304_v7  ;;  %v2385_v51 = vmul.f32 %v7209_v35, %v2305_v3  ;;  %v2383_v12 = vmul.f32 %v7212_v20, %v2303_v41  ;;  %v7221_v41 = vld [vmem:[#allocation209_spill] sm:$0xff]  ;;  %v7236_v35 = vld [vmem:[#allocation230_spill] sm:$0xff] }
 0x362   : > { %v2307_v47 = vsub.f32 %v7207_v54, %v2227_v23  ;;  %v2309_v42 = vsub.f32 %v7211_v16, %v2229_v15  ;;  %v2477_v9 = vadd.f32 %v2476_v61, %v2382_v57  ;;  %v7214_v14 = vsub.f32 %v7213_v58, %v7204_v8  ;;  %v7220_v15 = vld [vmem:[#allocation206_spill] sm:$0xff]  ;;  %v7222_v5 = vld [vmem:[#allocation225_spill] sm:$0xff]  ;;  %v7238_v58 = vld [vmem:[#allocation232_spill] sm:$0xff] }
 0x363   : > { %v7216_v36 = vsub.f32 %v7215_v29, %v7204_v8  ;;  %v2386_v34 = vmul.f32 %v7217_v32, %v2306_v48  ;;  %v2481_v11 = vadd.f32 %v2385_v51, %v2384_v49  ;;  %v2388_v46 = vmul.f32 %v7218_v44, %v2308_v60 }
 0x364   : > { %v2310_v4 = vsub.f32 %v7214_v14, %v2230_v30  ;;  %v2389_v56 = vmul.f32 %v7219_v50, %v2309_v42  ;;  %v2478_v1 = vadd.f32 %v2477_v9, %v2383_v12  ;;  %v2387_v22 = vmul.f32 %v7220_v15, %v2307_v47  ;;  %v7235_v47 = vld [vmem:[#allocation229_spill] sm:$0xff]  ;;  %v7237_v42 = vld [vmem:[#allocation231_spill] sm:$0xff] }
 0x365   : > { %v2311_v62 = vsub.f32 %v7216_v36, %v2231_v45  ;;  %v2235_v33 = vsub.f32 %v7222_v5, %v2155_v37  ;;  %v2482_v57 = vadd.f32 %v2481_v11, %v2386_v34  ;;  %v7224_v27 = vsub.f32 %v7223_v43, %v5460_v63  ;;  %v7240_v11 = vld [vmem:[#allocation234_spill] sm:$0xff] }
 0x366   : > { %v2390_v2 = vmul.f32 %v7221_v41, %v2310_v4  ;;  %v2486_v30 = vadd.f32 %v2389_v56, %v2388_v46  ;;  %v7225_v53 = vsub.f32 %v6950_v21, %v5460_v63  ;;  %2479 = vadd.xlane.f32.xlu0 %v2478_v1  ;;  %v7227_v6 = vsub.f32 %v6958_v59, %v5460_v63  ;;  %v7232_v63 = vld [vmem:[#allocation226_spill] sm:$0xff]  ;;  %v7241_v56 = vld [vmem:[#allocation235_spill] sm:$0xff]  ;;  %v7242_v41 = vld [vmem:[#allocation236_spill] sm:$0xff] }
 0x367   : > { %v2312_v23 = vsub.f32 %v7224_v27, %v2232_v24  ;;  %v2391_v7 = vmul.f32 %v7226_v18, %v2311_v62  ;;  %v2315_v37 = vsub.f32 %v1675_v19, %v2235_v33  ;;  %v2483_v3 = vadd.f32 %v2482_v57, %v2387_v22  ;;  %v7234_v19 = vld [vmem:[#allocation228_spill] sm:$0xff]  ;;  %v7239_v62 = vld [vmem:[#allocation233_spill] sm:$0xff] }
 0x368   : > { %v2313_v0 = vsub.f32 %v7225_v53, %v2233_v26  ;;  %v2314_v28 = vsub.f32 %v7227_v6, %v2234_v10  ;;  %v2487_v61 = vadd.f32 %v2486_v30, %v2390_v2  ;;  %v7230_v26 = vld [vmem:[#allocation213_spill] sm:$0xff]  ;;  %3253 = vrcp.f32 %v7232_v63  ;;  %v7244_v53 = vld [vmem:[#allocation238_spill] sm:$0xff]  ;;  %v7250_v63 = vld [vmem:[#allocation120_spill] sm:$0xff] }
 0x369   : > { %v2392_v24 = vmul.f32 %v7228_v55, %v2312_v23  ;;  %2484 = vadd.xlane.f32.xlu1 %v2483_v3  ;;  %v2395_v59 = vmul.f32 %v7231_v13, %v2315_v37  ;;  %3255 = vrcp.f32 %v7233_v52  ;;  %v7243_v57 = vld [vmem:[#allocation237_spill] sm:$0xff]  ;;  %v7246_v3 = vld [vmem:[#allocation240_spill] sm:$0xff] }
 0x36a   : > { %v2393_v48 = vmul.f32 %v7229_v40, %v2313_v0  ;;  %v2488_v21 = vadd.f32 %v2487_v61, %v2391_v7  ;;  %v2394_v38 = vmul.f32 %v7230_v26, %v2314_v28  ;;  %3257 = vrcp.f32 %v7234_v19  ;;  %v7245_v7 = vld [vmem:[#allocation239_spill] sm:$0xff]  ;;  %v7247_v40 = vld [vmem:[#allocation241_spill] sm:$0xff] }
 0x36b   : > { %3259 = vrcp.f32 %v7235_v47 }
 0x36c   : > { %v2491_v45 = vadd.f32 %v2393_v48, %v2392_v24  ;;  %2489 = vadd.xlane.f32.xlu0 %v2488_v21  ;;  %3261 = vrcp.f32 %v7236_v35 }
 0x36d   : > { %3263 = vrcp.f32 %v7237_v42 }
 0x36e   : > { %v2492_v8 = vadd.f32 %v2491_v45, %v2394_v38  ;;  %3265 = vrcp.f32 %v7238_v58  ;;  %v7248_v38 = vld [vmem:[#allocation118_spill] sm:$0xff] }
 0x36f   : > { %3267 = vrcp.f32 %v7239_v62 }
 0x370   : > { %v2493_v10 = vadd.f32 %v2492_v8, %v2395_v59  ;;  %3269 = vrcp.f32 %v7240_v11  ;;  %v7249_v8 = vld [vmem:[#allocation119_spill] sm:$0xff] }
 0x371   : > { %3271 = vrcp.f32 %v7241_v56 }
 0x372   : > { %2494 = vadd.xlane.f32.xlu1 %v2493_v10  ;;  %v3254_v25 = vpop.eup %3253  ;;  %3273 = vrcp.f32 %v7242_v41 }
 0x373   : > { %v3256_v54 = vpop.eup %3255  ;;  %3275 = vrcp.f32 %v7243_v57 }
 0x374   : > { %v3258_v51 = vpop.eup %3257  ;;  %3277 = vrcp.f32 %v7244_v53 }
 0x375   : > { %v3260_v20 = vpop.eup %3259  ;;  %3279 = vrcp.f32 %v7245_v7 }
 0x376   : > { %v3262_v14 = vpop.eup %3261  ;;  %3281 = vrcp.f32 %v7246_v3 }
 0x377   : > { %v3264_v36 = vpop.eup %3263  ;;  %3283 = vrcp.f32 %v7247_v40 }
 0x378   : > { %v3266_v44 = vpop.eup %3265  ;;  %3285 = vrcp.f32 %v7248_v38 }
 0x379   : > { %v3268_v1 = vpop.eup %3267  ;;  %3287 = vrcp.f32 %v7249_v8 }
 0x37a   : > { %v3270_v2 = vpop.eup %3269  ;;  %3289 = vrcp.f32 %v7250_v63 }
 0x37b   : > { %v3272_v30 = vpop.eup %3271 }
 0x37c   : > { %v3274_v23 = vpop.eup %3273 }
 0x37d   : > { %v3276_v6 = vpop.eup %3275 }
 0x37e   : > { %v3278_v61 = vpop.eup %3277 }
 0x37f   : > { %v3280_v48 = vpop.eup %3279 }
 0x380   : > { %v3282_v45 = vpop.eup %3281 }
 0x381   : > { %v3284_v10 = vpop.eup %3283 }
 0x39d   : > { %v2400_v60 = vpop.xlane.xlu0 %2399 }
 0x39e   : > { %v2516_v17 = vmul.f32 %v3254_v25, %v2400_v60  ;;  %v7251_v25 = vld [vmem:[#allocation121_spill] sm:$0xff]  ;;  %v3286_v60 = vpop.eup %3285 }
 0x39f   : > { %3291 = vrcp.f32 %v7251_v25  ;;  %v3288_v47 = vpop.eup %3287 }
 0x3a0   : > { %2537 = vst.msk [vmem:[%s5911_s28] sm:$0xff] %vm2536_vm0, %v2516_v17  ;;  %v2405_v31 = vpop.xlane.xlu1 %2404  ;;  %v3290_v35 = vpop.eup %3289 }
 0x3a1   : > { %v2517_v49 = vmul.f32 %v3256_v54, %v2405_v31 }
 0x3a3   : > { %2538 = vst.msk [vmem:[%s5911_s28 + $0x8] sm:$0xff] %vm2536_vm0, %v2517_v49 }
 0x3a8   : > { %v2410_v39 = vpop.xlane.xlu0 %2409 }
 0x3a9   : > { %v2518_v16 = vmul.f32 %v3258_v51, %v2410_v39 }
 0x3ab   : > { %2539 = vst.msk [vmem:[%s5911_s28 + $0x10] sm:$0xff] %vm2536_vm0, %v2518_v16  ;;  %v3292_v16 = vpop.eup %3291 }
 0x3ac   : > { %v2415_v12 = vpop.xlane.xlu1 %2414 }
 0x3ad   : > { %v2519_v9 = vmul.f32 %v3260_v20, %v2415_v12 }
 0x3af   : > { %2540 = vst.msk [vmem:[%s5911_s28 + $0x18] sm:$0xff] %vm2536_vm0, %v2519_v9 }
 0x3b3   : > { %v2420_v4 = vpop.xlane.xlu0 %2419 }
 0x3b4   : > { %v2520_v29 = vmul.f32 %v3262_v14, %v2420_v4 }
 0x3b6   : > { %2541 = vst.msk [vmem:[%s5911_s28 + $0x20] sm:$0xff] %vm2536_vm0, %v2520_v29  ;;  %v2425_v32 = vpop.xlane.xlu1 %2424 }
 0x3b7   : > { %v2521_v34 = vmul.f32 %v3264_v36, %v2425_v32 }
 0x3b9   : > { %2542 = vst.msk [vmem:[%s5911_s28 + $0x28] sm:$0xff] %vm2536_vm0, %v2521_v34 }
 0x3bc   : > { %v2430_v46 = vpop.xlane.xlu0 %2429 }
 0x3bd   : > { %v2522_v50 = vmul.f32 %v3266_v44, %v2430_v46 }
 0x3bf   : > { %2543 = vst.msk [vmem:[%s5911_s28 + $0x30] sm:$0xff] %vm2536_vm0, %v2522_v50 }
 0x3c2   : > { %v2435_v15 = vpop.xlane.xlu1 %2434 }
 0x3c3   : > { %v2523_v22 = vmul.f32 %v3268_v1, %v2435_v15 }
 0x3c5   : > { %2544 = vst.msk [vmem:[%s5911_s28 + $0x38] sm:$0xff] %vm2536_vm0, %v2523_v22 }
 0x3c7   : > { %v2440_v5 = vpop.xlane.xlu0 %2439 }
 0x3c8   : > { %v2524_v33 = vmul.f32 %v3270_v2, %v2440_v5 }
 0x3ca   : > { %2545 = vst.msk [vmem:[%s5911_s28 + $0x40] sm:$0xff] %vm2536_vm0, %v2524_v33 }
 0x3cd   : > { %v2445_v43 = vpop.xlane.xlu1 %2444 }
 0x3ce   : > { %v2525_v27 = vmul.f32 %v3272_v30, %v2445_v43 }
 0x3d0   : > { %2546 = vst.msk [vmem:[%s5911_s28 + $0x48] sm:$0xff] %vm2536_vm0, %v2525_v27 }
 0x3d2   : > { %v2450_v0 = vpop.xlane.xlu0 %2449 }
 0x3d3   : > { %v2526_v18 = vmul.f32 %v3274_v23, %v2450_v0 }
 0x3d5   : > { %2547 = vst.msk [vmem:[%s5911_s28 + $0x50] sm:$0xff] %vm2536_vm0, %v2526_v18 }
 0x3d8   : > { %v2455_v28 = vpop.xlane.xlu1 %2454 }
 0x3d9   : > { %v2527_v37 = vmul.f32 %v3276_v6, %v2455_v28 }
 0x3db   : > { %2548 = vst.msk [vmem:[%s5911_s28 + $0x58] sm:$0xff] %vm2536_vm0, %v2527_v37 }
 0x3de   : > { %v2460_v55 = vpop.xlane.xlu0 %2459 }
 0x3df   : > { %v2528_v24 = vmul.f32 %v3278_v61, %v2460_v55 }
 0x3e1   : > { %2549 = vst.msk [vmem:[%s5911_s28 + $0x60] sm:$0xff] %vm2536_vm0, %v2528_v24 }
 0x3e3   : > { %v2465_v21 = vpop.xlane.xlu1 %2464 }
 0x3e4   : > { %v2529_v26 = vmul.f32 %v3280_v48, %v2465_v21 }
 0x3e6   : > { %2550 = vst.msk [vmem:[%s5911_s28 + $0x68] sm:$0xff] %vm2536_vm0, %v2529_v26 }
 0x3e8   : > { %v2470_v13 = vpop.xlane.xlu0 %2469 }
 0x3e9   : > { %v2530_v59 = vmul.f32 %v3282_v45, %v2470_v13 }
 0x3eb   : > { %2551 = vst.msk [vmem:[%s5911_s28 + $0x70] sm:$0xff] %vm2536_vm0, %v2530_v59 }
 0x3ec   : > { %v2475_v52 = vpop.xlane.xlu1 %2474 }
 0x3ed   : > { %v2531_v19 = vmul.f32 %v3284_v10, %v2475_v52 }
 0x3ef   : > { %2552 = vst.msk [vmem:[%s5911_s28 + $0x78] sm:$0xff] %vm2536_vm0, %v2531_v19 }
 0x3f3   : > { %v2480_v17 = vpop.xlane.xlu0 %2479 }
 0x3f4   : > { %v2532_v54 = vmul.f32 %v3286_v60, %v2480_v17 }
 0x3f6   : > { %2553 = vst.msk [vmem:[%s5911_s28 + $0x80] sm:$0xff] %vm2536_vm0, %v2532_v54  ;;  %v2485_v31 = vpop.xlane.xlu1 %2484 }
 0x3f7   : > { %v2533_v49 = vmul.f32 %v3288_v47, %v2485_v31 }
 0x3f9   : > { %v2490_v51 = vpop.xlane.xlu0 %2489  ;;  %2554 = vst.msk [vmem:[%s5911_s28 + $0x88] sm:$0xff] %vm2536_vm0, %v2533_v49 }
 0x3fa   : > { %v2534_v39 = vmul.f32 %v3290_v35, %v2490_v51 }
 0x3fc   : > { %2555 = vst.msk [vmem:[%s5911_s28 + $0x90] sm:$0xff] %vm2536_vm0, %v2534_v39 }
 0x3ff   : > { %v2495_v42 = vpop.xlane.xlu1 %2494 }
 0x400   : > { %v2535_v20 = vmul.f32 %v3292_v16, %v2495_v42 }
 0x402   : > { %2556 = vst.msk [vmem:[%s5911_s28 + $0x98] sm:$0xff] %vm2536_vm0, %v2535_v20 }
 0x403 PF: > { %p17_p9 = scmp.ge.s32.totalorder %s3502_s25, 6   ;;  %s7252_s15 = smov %s3415_s16 }
 0x404   : > { %s7253_s16 = smov %s3419_s17  ;;  %s7254_s17 = smov %s3528_s14 }
 0x405   : > { %s7255_s18 = smov %s3502_s25  ;;  %19 = sbr.rel (!%p17_p9) target bundleno = 5 (0x5), region = 93 }
 0x40c   :  { %2579 = vsyncpa [#allocation3], 1 }
 0x40d   :  { %2581 = vsyncpa [#allocation3 + $0x1], 1 }
 0x40e   :  { %2582 = vsyncpa [#allocation5], 1 }
 0x40f   :  { %2584 = vsyncpa [#allocation5 + $0x1], 1 }

</bundles_post_ra>
